<compile_context>
chip_gen: v7x
topology: tpu7x:2x2x1
jax: 0.10.0
libtpu: 0.0.40
codegen_flags: <defaults>
</compile_context>

<pallas_src>
import jax
import jax.numpy as jnp
from jax import lax
from jax.experimental import pallas as pl
from jax.experimental.pallas import tpu as pltpu


def _round_up(x, m):
    return -(-x // m) * m


def _frame_geometry(H, W, bpg):
    """Geometry of the lane buffer holding `bpg` flattened zero-padded frames."""
    Hp, Wp = H + 2, W + 2
    L0 = Hp * Wp                     # one flattened padded frame
    margin = Wp + 1                  # max |lane offset| of a 3x3 tap
    seg = _round_up(L0, 128)         # per-frame lane stride (128-aligned)
    base = _round_up(margin, 128)    # 128-aligned left margin (>= margin)
    Qp = bpg * seg                   # lane width the convs compute over
    lbuf = base + Qp + base          # full scratch lane width (right margin >= margin)
    return Hp, Wp, L0, margin, seg, base, Qp, lbuf


def _make_fused_kernel(nblocks, H, W, c_out, bpg):
    """Whole-ConvNet kernel for one group of `bpg` batch elements (one grid step)."""
    _, Wp, _, _, seg, base, Qp, lbuf = _frame_geometry(H, W, bpg)
    inv_hw = 1.0 / (H * W)

    def kernel(*args):
        x_ref, mask_ref = args[0], args[1]
        blk_refs = args[2:2 + 2 * nblocks]
        se_w1t_ref, se_w2_ref, fw_ref, fb_ref = args[2 + 2 * nblocks:6 + 2 * nblocks]
        o_ref = args[6 + 2 * nblocks]
        buf_ref = args[7 + 2 * nblocks]      # VMEM scratch: padded activation frames

        # Zero ONLY the lane margins (aligned 128-wide chunks). The frame region
        # [base, base+Qp) is fully overwritten by the first layer's store, so it
        # never needs clearing.  (No @pl.when(pid==0) guard: stays correct under
        # a core-parallel batch axis where each core owns its own scratch.)
        buf_ref[:, :base] = jnp.zeros((c_out, base), jnp.float32)
        buf_ref[:, base + Qp:lbuf] = jnp.zeros((c_out, lbuf - base - Qp), jnp.float32)

        # Hoist the mask broadcast out of the unrolled layer loop (no CSE in JAX).
        mask_b = jnp.broadcast_to(mask_ref[...], (c_out, Qp))

        def x_tap(o):    # layer 0 reads the (already zero-padded) input frames
            return x_ref[0, :, base + o:base + o + Qp]

        def buf_tap(o):  # later layers read the scratch activation frames
            return buf_ref[:, base + o:base + o + Qp]

        def conv3x3(read_tap, w_ref):
            # Split-K: 3 accumulated matmuls of K = 3*Cin (one per tap row dy)
            # instead of materializing a 9*Cin tap stack.
            k3 = w_ref.shape[1] // 3                       # 3 * cin of this conv
            acc = None
            for dy in range(3):
                row = jnp.concatenate(
                    [read_tap((dy - 1) * Wp + (dx - 1)) for dx in range(3)],
                    axis=0)                                # (3*cin, Qp)
                w_dy = w_ref[:, dy * k3:(dy + 1) * k3]     # (c_out, 3*cin)
                part = jnp.dot(w_dy, row, preferred_element_type=jnp.float32)
                acc = part if acc is None else acc + part
            return acc                                     # (c_out, Qp), f32

        # (nlayers-1) x [conv (BN scale pre-folded) -> +shift -> LeakyReLU(0.2)]
        y = None
        for l in range(nblocks):
            shift = blk_refs[2 * l + 1][...]               # (c_out, 1)
            y = conv3x3(x_tap if l == 0 else buf_tap, blk_refs[2 * l]) + shift
            y = jnp.maximum(y, 0.2 * y)                    # LeakyReLU(0.2)
            y = y * mask_b                                 # re-zero border/gaps => fresh "same" pad
            if l < nblocks - 1:
                buf_ref[:, base:base + Qp] = y             # 128-aligned, lane-dense store

        # SELayer per batch element (elements are folded along lanes, one 128-
        # aligned segment each).  Tiny FCs via VPU multiplies + reductions.
        for j in range(bpg):
            yseg = y[:, j * seg:(j + 1) * seg]             # (c_out, seg)
            pooled = jnp.sum(yseg, axis=1, keepdims=True) * inv_hw         # (c_out, 1)
            h = jnp.maximum(
                jnp.sum(se_w1t_ref[...] * pooled, axis=0, keepdims=True), 0.0)   # (1, C/r)
            s = jax.nn.sigmoid(
                jnp.sum(se_w2_ref[...] * h, axis=1, keepdims=True))              # (c_out, 1)
            buf_ref[:, base + j * seg:base + (j + 1) * seg] = yseg * s

        # Final conv: bias, no BN, no activation.  Full lane-dense block store;
        # border/gap lanes hold garbage and are sliced away in the wrapper.
        out = conv3x3(buf_tap, fw_ref) + fb_ref[...]
        o_ref[0] = out.astype(o_ref.dtype)

    return kernel


def convnet_forward(params, x_nchw, eps=1e-5, batch_per_step=None):
    """Fused ConvNet forward. x_nchw: (N, C_in, H, W) -> (N, C_out, H, W).

    batch_per_step: how many batch elements are folded (along lanes) into one
    grid step.  Default N (one step) — best on single-TensorCore parts
    (v5e/v6e).  On v7x pass N//2 so both TensorCores get a grid step.
    """
    N, c_in, H, W = x_nchw.shape
    nblocks = len(params["blocks"])
    assert nblocks >= 1  # TODO(synk): nlayers == 1 (no hidden conv blocks) not wired up.
    c_out = params["final_w"].shape[-1]
    c_red = params["se_w1"].shape[0]

    bpg = N if batch_per_step is None else batch_per_step
    assert N % bpg == 0
    G = N // bpg
    Hp, Wp, L0, _, seg, base, Qp, lbuf = _frame_geometry(H, W, bpg)

    # ---- one-time parameter prep: fold BN scale into the conv weights and
    #      transpose to (Cout, 9*Cin) (K ordered dy, dx, cin) for split-K matmuls.
    # TODO(synk): cast weights/frames to bf16 here for production channel counts
    #             (C>=64) on v6e/v7x; keep f32 accumulation.
    flat_params = []
    for blk in params["blocks"]:
        scale = blk["gamma"] * lax.rsqrt(blk["var"] + eps)     # eval-mode BN fold
        shift = blk["beta"] - blk["mean"] * scale
        w = blk["w"] * scale                                   # (3,3,cin,cout) * (cout,)
        kcin, kcout = w.shape[2], w.shape[3]
        flat_params += [w.reshape(9 * kcin, kcout).T, shift.reshape(kcout, 1)]
    se_w1t = params["se_w1"].T                                 # (C, C/r)
    se_w2 = params["se_w2"]                                    # (C, C/r)
    fcin = params["final_w"].shape[2]
    fw_t = params["final_w"].reshape(9 * fcin, c_out).T        # (Cout, 9*C)
    fb = params["final_b"].reshape(c_out, 1)

    # ---- input: NCHW -> zero-padded frames, one 128-aligned lane segment per
    #      batch element, bpg elements per grid step.
    xf = jnp.pad(x_nchw, ((0, 0), (0, 0), (1, 1), (1, 1))).reshape(N, c_in, L0)
    xf = jnp.pad(xf, ((0, 0), (0, 0), (0, seg - L0)))                 # (N, c_in, seg)
    xf = xf.reshape(G, bpg, c_in, seg).transpose(0, 2, 1, 3).reshape(G, c_in, Qp)
    xb = jnp.pad(xf, ((0, 0), (0, 0), (base, lbuf - base - Qp)))      # (G, c_in, lbuf)

    # Mask: 1 on each element's HxW image interior, 0 on padding ring / gaps / tail.
    m = jnp.zeros((Hp, Wp), jnp.float32).at[1:-1, 1:-1].set(1.0).reshape(L0)
    mask = jnp.tile(jnp.pad(m, (0, seg - L0)), bpg).reshape(1, Qp)

    kernel = _make_fused_kernel(nblocks, H, W, c_out, bpg)

    def _full(shape):
        return pl.BlockSpec(shape, lambda g: (0,) * len(shape))

    in_specs = [pl.BlockSpec((1, c_in, lbuf), lambda g: (g, 0, 0)), _full((1, Qp))]
    for blk in params["blocks"]:
        kcin, kcout = blk["w"].shape[2], blk["w"].shape[3]
        in_specs += [_full((kcout, 9 * kcin)), _full((kcout, 1))]
    in_specs += [_full((c_out, c_red)), _full((c_out, c_red)),
                 _full((c_out, 9 * fcin)), _full((c_out, 1))]

    # Advisory cost estimate for XLA's scheduler around the fused custom call.
    flops = 0
    cin_l = c_in
    for blk in params["blocks"]:
        flops += 2 * N * c_out * 9 * cin_l * H * W
        cin_l = blk["w"].shape[3]
    flops += 2 * N * c_out * 9 * fcin * H * W
    flops += 4 * N * c_out * c_red                                   # SE FCs
    param_bytes = 4 * sum(int(p.size) for p in flat_params) + \
        4 * (int(se_w1t.size) + int(se_w2.size) + int(fw_t.size) + int(fb.size))
    bytes_accessed = 4 * (N * c_in * lbuf // bpg + N * c_out * Qp // bpg) * G + param_bytes
    cost = pl.CostEstimate(flops=flops, transcendentals=N * c_out,
                           bytes_accessed=bytes_accessed)

    out = pl.pallas_call(
        kernel,
        out_shape=jax.ShapeDtypeStruct((G, c_out, Qp), x_nchw.dtype),
        grid=(G,),
        in_specs=in_specs,
        out_specs=pl.BlockSpec((1, c_out, Qp), lambda g: (g, 0, 0)),
        scratch_shapes=[pltpu.VMEM((c_out, lbuf), jnp.float32)],
        compiler_params=pltpu.CompilerParams(
            dimension_semantics=("parallel",),      # use CORE_PARALLEL on v7x with G=2
            vmem_limit_bytes=32 * 1024 * 1024),
        cost_estimate=cost,
    )(xb, mask, *flat_params, se_w1t, se_w2, fw_t, fb)

    # Lane buffer -> NCHW image interiors.
    out = out.reshape(G, c_out, bpg, seg)[:, :, :, :L0]
    out = out.transpose(0, 2, 1, 3).reshape(N, c_out, Hp, Wp)
    return out[:, :, 1:-1, 1:-1]


# ----------------------------------------------------------------------------
# Deterministic synthetic parameters + pure-JAX reference (for self-check)
# ----------------------------------------------------------------------------
def init_convnet_params(key, in_channels, out_channels, nlayers, reduction=8):
    params = {"blocks": []}
    in_c = in_channels
    for _ in range(nlayers - 1):
        key, k1, k2, k3, k4, k5 = jax.random.split(key, 6)
        params["blocks"].append(dict(
            w=0.1 * jax.random.normal(k1, (3, 3, in_c, out_channels), jnp.float32),  # HWIO
            gamma=1.0 + 0.1 * jax.random.normal(k2, (out_channels,), jnp.float32),
            beta=0.1 * jax.random.normal(k3, (out_channels,), jnp.float32),
            mean=0.1 * jax.random.normal(k4, (out_channels,), jnp.float32),  # BN running stats
            var=0.5 + jax.random.uniform(k5, (out_channels,), jnp.float32),
        ))
        in_c = out_channels
    cr = in_c // reduction
    key, k1, k2, k3, k4 = jax.random.split(key, 5)
    params["se_w1"] = 0.3 * jax.random.normal(k1, (cr, in_c), jnp.float32)   # nn.Linear(C, C/r)
    params["se_w2"] = 0.3 * jax.random.normal(k2, (in_c, cr), jnp.float32)   # nn.Linear(C/r, C)
    params["final_w"] = 0.1 * jax.random.normal(k3, (3, 3, in_c, out_channels), jnp.float32)
    params["final_b"] = 0.1 * jax.random.normal(k4, (out_channels,), jnp.float32)
    return params


def convnet_reference(params, x_nchw, eps=1e-5):
    """Pure-JAX (XLA) reference used only to validate the Pallas kernel."""
    dn = ("NCHW", "HWIO", "NCHW")
    x = x_nchw
    for blk in params["blocks"]:
        y = lax.conv_general_dilated(x, blk["w"], (1, 1), "SAME", dimension_numbers=dn)
        scale = blk["gamma"] * lax.rsqrt(blk["var"] + eps)
        shift = blk["beta"] - blk["mean"] * scale
        y = y * scale[None, :, None, None] + shift[None, :, None, None]
        x = jnp.where(y > 0, y, 0.2 * y)
    pooled = jnp.mean(x, axis=(2, 3))                                  # (N, C)
    h = jnp.maximum(pooled @ params["se_w1"].T, 0.0)                   # (N, C/r)
    s = jax.nn.sigmoid(h @ params["se_w2"].T)                          # (N, C)
    x = x * s[:, :, None, None]
    y = lax.conv_general_dilated(x, params["final_w"], (1, 1), "SAME", dimension_numbers=dn)
    return y + params["final_b"][None, :, None, None]


if __name__ == "__main__":
    # Small shapes consistent with the module: N=2, Cin=8, Cout=16, H=W=16, nlayers=3.
    N, C_IN, C_OUT, H, W, NLAYERS = 2, 8, 16, 16, 16, 3

    key = jax.random.PRNGKey(0)
    key, kx, kp = jax.random.split(key, 3)
    x = jax.random.normal(kx, (N, C_IN, H, W), jnp.float32)  # NCHW (PyTorch convention)
    params = init_convnet_params(kp, C_IN, C_OUT, NLAYERS)

    out = jax.block_until_ready(jax.jit(convnet_forward)(params, x))
    assert out.shape == (N, C_OUT, H, W), out.shape
    assert bool(jnp.all(jnp.isfinite(out)))

    ref = jax.block_until_ready(convnet_reference(params, x))
    err = float(jnp.max(jnp.abs(out - ref)))
    assert err < 2e-3, f"mismatch vs pure-JAX reference: max abs err = {err}"

    print("KERNEL_OK")
</pallas_src>

<mosaic_0001>
module attributes {stable_mosaic.version = 11 : i64} {
  func.func @kernel(%arg0: i32, %arg1: memref<1x8x1024xf32, #tpu.memory_space<vmem>>, %arg2: memref<1x768xf32, #tpu.memory_space<vmem>>, %arg3: memref<16x72xf32, #tpu.memory_space<vmem>>, %arg4: memref<16x1xf32, #tpu.memory_space<vmem>>, %arg5: memref<16x144xf32, #tpu.memory_space<vmem>>, %arg6: memref<16x1xf32, #tpu.memory_space<vmem>>, %arg7: memref<16x2xf32, #tpu.memory_space<vmem>>, %arg8: memref<16x2xf32, #tpu.memory_space<vmem>>, %arg9: memref<16x144xf32, #tpu.memory_space<vmem>>, %arg10: memref<16x1xf32, #tpu.memory_space<vmem>>, %arg11: memref<1x16x768xf32, #tpu.memory_space<vmem>>, %arg12: memref<16x1024xf32, #tpu.memory_space<vmem>>) attributes {dimension_semantics = [#tpu.dimension_semantics<parallel>], iteration_bounds = array<i64: 1>, scalar_prefetch = 0 : i64, scratch_operands = 1 : i64, tpu.core_type = #tpu.core_type<tc>, window_params = [{transform_indices = @transform_0, window_bounds = array<i64: 1, 8, 1024>}, {pipeline_mode = #tpu.pipeline_mode<synchronous>, transform_indices = @transform_1, window_bounds = array<i64: 1, 768>}, {pipeline_mode = #tpu.pipeline_mode<synchronous>, transform_indices = @transform_2, window_bounds = array<i64: 16, 72>}, {pipeline_mode = #tpu.pipeline_mode<synchronous>, transform_indices = @transform_3, window_bounds = array<i64: 16, 1>}, {pipeline_mode = #tpu.pipeline_mode<synchronous>, transform_indices = @transform_4, window_bounds = array<i64: 16, 144>}, {pipeline_mode = #tpu.pipeline_mode<synchronous>, transform_indices = @transform_5, window_bounds = array<i64: 16, 1>}, {pipeline_mode = #tpu.pipeline_mode<synchronous>, transform_indices = @transform_6, window_bounds = array<i64: 16, 2>}, {pipeline_mode = #tpu.pipeline_mode<synchronous>, transform_indices = @transform_7, window_bounds = array<i64: 16, 2>}, {pipeline_mode = #tpu.pipeline_mode<synchronous>, transform_indices = @transform_8, window_bounds = array<i64: 16, 144>}, {pipeline_mode = #tpu.pipeline_mode<synchronous>, transform_indices = @transform_9, window_bounds = array<i64: 16, 1>}, {transform_indices = @transform_10, window_bounds = array<i64: 1, 16, 768>}]} {
    %cst = arith.constant 0.000000e+00 : f32
    %0 = vector.broadcast %cst : f32 to vector<16x128xf32>
    %c0 = arith.constant 0 : index
    %c0_0 = arith.constant 0 : index
    %1 = vector.load %arg12[%c0, %c0_0] : memref<16x1024xf32, #tpu.memory_space<vmem>>, vector<16x128xf32>
    tpu.vector_store %arg12[%c0, %c0_0], %0 {strides = array<i32>} : memref<16x1024xf32, #tpu.memory_space<vmem>>, vector<16x128xf32>,
    %cst_1 = arith.constant 0.000000e+00 : f32
    %2 = vector.broadcast %cst_1 : f32 to vector<16x128xf32>
    %c0_2 = arith.constant 0 : index
    %c896 = arith.constant 896 : index
    %3 = vector.load %arg12[%c0_2, %c896] : memref<16x1024xf32, #tpu.memory_space<vmem>>, vector<16x128xf32>
    tpu.vector_store %arg12[%c0_2, %c896], %2 {strides = array<i32>} : memref<16x1024xf32, #tpu.memory_space<vmem>>, vector<16x128xf32>,
    %c0_3 = arith.constant 0 : index
    %c0_4 = arith.constant 0 : index
    %4 = vector.load %arg2[%c0_3, %c0_4] : memref<1x768xf32, #tpu.memory_space<vmem>>, vector<1x768xf32>
    %5 = vector.shape_cast %4 : vector<1x768xf32> to vector<1x768xf32>
    %6 = vector.broadcast %5 : vector<1x768xf32> to vector<16x768xf32>
    %c0_5 = arith.constant 0 : index
    %c0_6 = arith.constant 0 : index
    %7 = vector.load %arg4[%c0_5, %c0_6] : memref<16x1xf32, #tpu.memory_space<vmem>>, vector<16x1xf32>
    %c0_7 = arith.constant 0 : index
    %c0_8 = arith.constant 0 : index
    %c109 = arith.constant 109 : index
    %8 = vector.load %arg1[%c0_7, %c0_8, %c109] : memref<1x8x1024xf32, #tpu.memory_space<vmem>>, vector<1x8x768xf32>
    %9 = vector.shape_cast %8 : vector<1x8x768xf32> to vector<8x768xf32>
    %c0_9 = arith.constant 0 : index
    %c0_10 = arith.constant 0 : index
    %c110 = arith.constant 110 : index
    %10 = vector.load %arg1[%c0_9, %c0_10, %c110] : memref<1x8x1024xf32, #tpu.memory_space<vmem>>, vector<1x8x768xf32>
    %11 = vector.shape_cast %10 : vector<1x8x768xf32> to vector<8x768xf32>
    %c0_11 = arith.constant 0 : index
    %c0_12 = arith.constant 0 : index
    %c111 = arith.constant 111 : index
    %12 = vector.load %arg1[%c0_11, %c0_12, %c111] : memref<1x8x1024xf32, #tpu.memory_space<vmem>>, vector<1x8x768xf32>
    %13 = vector.shape_cast %12 : vector<1x8x768xf32> to vector<8x768xf32>
    %14 = tpu.concatenate %9, %11, %13 in 0 : vector<8x768xf32>, vector<8x768xf32>, vector<8x768xf32> -> vector<24x768xf32>
    %c0_13 = arith.constant 0 : index
    %c0_14 = arith.constant 0 : index
    %15 = vector.load %arg3[%c0_13, %c0_14] : memref<16x72xf32, #tpu.memory_space<vmem>>, vector<16x24xf32>
    %cst_15 = arith.constant dense<0.000000e+00> : vector<16x768xf32>
    %16 = tpu.matmul %15, %14, %cst_15 {dimension_numbers = #tpu.dot_dimension_numbers<[1], [0], [0], [1], [0, 0, 1, 1], [], []>} : vector<16x24xf32>, vector<24x768xf32>, vector<16x768xf32> -> vector<16x768xf32>
    %c0_16 = arith.constant 0 : index
    %c0_17 = arith.constant 0 : index
    %c127 = arith.constant 127 : index
    %17 = vector.load %arg1[%c0_16, %c0_17, %c127] : memref<1x8x1024xf32, #tpu.memory_space<vmem>>, vector<1x8x768xf32>
    %18 = vector.shape_cast %17 : vector<1x8x768xf32> to vector<8x768xf32>
    %c0_18 = arith.constant 0 : index
    %c0_19 = arith.constant 0 : index
    %c128 = arith.constant 128 : index
    %19 = vector.load %arg1[%c0_18, %c0_19, %c128] : memref<1x8x1024xf32, #tpu.memory_space<vmem>>, vector<1x8x768xf32>
    %20 = vector.shape_cast %19 : vector<1x8x768xf32> to vector<8x768xf32>
    %c0_20 = arith.constant 0 : index
    %c0_21 = arith.constant 0 : index
    %c129 = arith.constant 129 : index
    %21 = vector.load %arg1[%c0_20, %c0_21, %c129] : memref<1x8x1024xf32, #tpu.memory_space<vmem>>, vector<1x8x768xf32>
    %22 = vector.shape_cast %21 : vector<1x8x768xf32> to vector<8x768xf32>
    %23 = tpu.concatenate %18, %20, %22 in 0 : vector<8x768xf32>, vector<8x768xf32>, vector<8x768xf32> -> vector<24x768xf32>
    %c0_22 = arith.constant 0 : index
    %c24 = arith.constant 24 : index
    %24 = vector.load %arg3[%c0_22, %c24] : memref<16x72xf32, #tpu.memory_space<vmem>>, vector<16x24xf32>
    %cst_23 = arith.constant dense<0.000000e+00> : vector<16x768xf32>
    %25 = tpu.matmul %24, %23, %cst_23 {dimension_numbers = #tpu.dot_dimension_numbers<[1], [0], [0], [1], [0, 0, 1, 1], [], []>} : vector<16x24xf32>, vector<24x768xf32>, vector<16x768xf32> -> vector<16x768xf32>
    %26 = arith.addf %16, %25 : vector<16x768xf32>
    %c0_24 = arith.constant 0 : index
    %c0_25 = arith.constant 0 : index
    %c145 = arith.constant 145 : index
    %27 = vector.load %arg1[%c0_24, %c0_25, %c145] : memref<1x8x1024xf32, #tpu.memory_space<vmem>>, vector<1x8x768xf32>
    %28 = vector.shape_cast %27 : vector<1x8x768xf32> to vector<8x768xf32>
    %c0_26 = arith.constant 0 : index
    %c0_27 = arith.constant 0 : index
    %c146 = arith.constant 146 : index
    %29 = vector.load %arg1[%c0_26, %c0_27, %c146] : memref<1x8x1024xf32, #tpu.memory_space<vmem>>, vector<1x8x768xf32>
    %30 = vector.shape_cast %29 : vector<1x8x768xf32> to vector<8x768xf32>
    %c0_28 = arith.constant 0 : index
    %c0_29 = arith.constant 0 : index
    %c147 = arith.constant 147 : index
    %31 = vector.load %arg1[%c0_28, %c0_29, %c147] : memref<1x8x1024xf32, #tpu.memory_space<vmem>>, vector<1x8x768xf32>
    %32 = vector.shape_cast %31 : vector<1x8x768xf32> to vector<8x768xf32>
    %33 = tpu.concatenate %28, %30, %32 in 0 : vector<8x768xf32>, vector<8x768xf32>, vector<8x768xf32> -> vector<24x768xf32>
    %c0_30 = arith.constant 0 : index
    %c48 = arith.constant 48 : index
    %34 = vector.load %arg3[%c0_30, %c48] : memref<16x72xf32, #tpu.memory_space<vmem>>, vector<16x24xf32>
    %cst_31 = arith.constant dense<0.000000e+00> : vector<16x768xf32>
    %35 = tpu.matmul %34, %33, %cst_31 {dimension_numbers = #tpu.dot_dimension_numbers<[1], [0], [0], [1], [0, 0, 1, 1], [], []>} : vector<16x24xf32>, vector<24x768xf32>, vector<16x768xf32> -> vector<16x768xf32>
    %36 = arith.addf %26, %35 : vector<16x768xf32>
    %37 = vector.broadcast %7 : vector<16x1xf32> to vector<16x768xf32>
    %38 = arith.addf %36, %37 : vector<16x768xf32>
    %cst_32 = arith.constant 2.000000e-01 : f32
    %39 = vector.broadcast %cst_32 : f32 to vector<16x768xf32>
    %40 = arith.mulf %39, %38 : vector<16x768xf32>
    %41 = arith.maximumf %38, %40 : vector<16x768xf32>
    %42 = arith.mulf %41, %6 : vector<16x768xf32>
    %c0_33 = arith.constant 0 : index
    %c128_34 = arith.constant 128 : index
    %43 = vector.load %arg12[%c0_33, %c128_34] : memref<16x1024xf32, #tpu.memory_space<vmem>>, vector<16x768xf32>
    tpu.vector_store %arg12[%c0_33, %c128_34], %42 {strides = array<i32>} : memref<16x1024xf32, #tpu.memory_space<vmem>>, vector<16x768xf32>,
    %c0_35 = arith.constant 0 : index
    %c0_36 = arith.constant 0 : index
    %44 = vector.load %arg6[%c0_35, %c0_36] : memref<16x1xf32, #tpu.memory_space<vmem>>, vector<16x1xf32>
    %c0_37 = arith.constant 0 : index
    %c109_38 = arith.constant 109 : index
    %45 = vector.load %arg12[%c0_37, %c109_38] : memref<16x1024xf32, #tpu.memory_space<vmem>>, vector<16x768xf32>
    %c0_39 = arith.constant 0 : index
    %c110_40 = arith.constant 110 : index
    %46 = vector.load %arg12[%c0_39, %c110_40] : memref<16x1024xf32, #tpu.memory_space<vmem>>, vector<16x768xf32>
    %c0_41 = arith.constant 0 : index
    %c111_42 = arith.constant 111 : index
    %47 = vector.load %arg12[%c0_41, %c111_42] : memref<16x1024xf32, #tpu.memory_space<vmem>>, vector<16x768xf32>
    %48 = tpu.concatenate %45, %46, %47 in 0 : vector<16x768xf32>, vector<16x768xf32>, vector<16x768xf32> -> vector<48x768xf32>
    %c0_43 = arith.constant 0 : index
    %c0_44 = arith.constant 0 : index
    %49 = vector.load %arg5[%c0_43, %c0_44] : memref<16x144xf32, #tpu.memory_space<vmem>>, vector<16x48xf32>
    %cst_45 = arith.constant dense<0.000000e+00> : vector<16x768xf32>
    %50 = tpu.matmul %49, %48, %cst_45 {dimension_numbers = #tpu.dot_dimension_numbers<[1], [0], [0], [1], [0, 0, 1, 1], [], []>} : vector<16x48xf32>, vector<48x768xf32>, vector<16x768xf32> -> vector<16x768xf32>
    %c0_46 = arith.constant 0 : index
    %c127_47 = arith.constant 127 : index
    %51 = vector.load %arg12[%c0_46, %c127_47] : memref<16x1024xf32, #tpu.memory_space<vmem>>, vector<16x768xf32>
    %c0_48 = arith.constant 0 : index
    %c128_49 = arith.constant 128 : index
    %52 = vector.load %arg12[%c0_48, %c128_49] : memref<16x1024xf32, #tpu.memory_space<vmem>>, vector<16x768xf32>
    %c0_50 = arith.constant 0 : index
    %c129_51 = arith.constant 129 : index
    %53 = vector.load %arg12[%c0_50, %c129_51] : memref<16x1024xf32, #tpu.memory_space<vmem>>, vector<16x768xf32>
    %54 = tpu.concatenate %51, %52, %53 in 0 : vector<16x768xf32>, vector<16x768xf32>, vector<16x768xf32> -> vector<48x768xf32>
    %c0_52 = arith.constant 0 : index
    %c48_53 = arith.constant 48 : index
    %55 = vector.load %arg5[%c0_52, %c48_53] : memref<16x144xf32, #tpu.memory_space<vmem>>, vector<16x48xf32>
    %cst_54 = arith.constant dense<0.000000e+00> : vector<16x768xf32>
    %56 = tpu.matmul %55, %54, %cst_54 {dimension_numbers = #tpu.dot_dimension_numbers<[1], [0], [0], [1], [0, 0, 1, 1], [], []>} : vector<16x48xf32>, vector<48x768xf32>, vector<16x768xf32> -> vector<16x768xf32>
    %57 = arith.addf %50, %56 : vector<16x768xf32>
    %c0_55 = arith.constant 0 : index
    %c145_56 = arith.constant 145 : index
    %58 = vector.load %arg12[%c0_55, %c145_56] : memref<16x1024xf32, #tpu.memory_space<vmem>>, vector<16x768xf32>
    %c0_57 = arith.constant 0 : index
    %c146_58 = arith.constant 146 : index
    %59 = vector.load %arg12[%c0_57, %c146_58] : memref<16x1024xf32, #tpu.memory_space<vmem>>, vector<16x768xf32>
    %c0_59 = arith.constant 0 : index
    %c147_60 = arith.constant 147 : index
    %60 = vector.load %arg12[%c0_59, %c147_60] : memref<16x1024xf32, #tpu.memory_space<vmem>>, vector<16x768xf32>
    %61 = tpu.concatenate %58, %59, %60 in 0 : vector<16x768xf32>, vector<16x768xf32>, vector<16x768xf32> -> vector<48x768xf32>
    %c0_61 = arith.constant 0 : index
    %c96 = arith.constant 96 : index
    %62 = vector.load %arg5[%c0_61, %c96] : memref<16x144xf32, #tpu.memory_space<vmem>>, vector<16x48xf32>
    %cst_62 = arith.constant dense<0.000000e+00> : vector<16x768xf32>
    %63 = tpu.matmul %62, %61, %cst_62 {dimension_numbers = #tpu.dot_dimension_numbers<[1], [0], [0], [1], [0, 0, 1, 1], [], []>} : vector<16x48xf32>, vector<48x768xf32>, vector<16x768xf32> -> vector<16x768xf32>
    %64 = arith.addf %57, %63 : vector<16x768xf32>
    %65 = vector.broadcast %44 : vector<16x1xf32> to vector<16x768xf32>
    %66 = arith.addf %64, %65 : vector<16x768xf32>
    %cst_63 = arith.constant 2.000000e-01 : f32
    %67 = vector.broadcast %cst_63 : f32 to vector<16x768xf32>
    %68 = arith.mulf %67, %66 : vector<16x768xf32>
    %69 = arith.maximumf %66, %68 : vector<16x768xf32>
    %70 = arith.mulf %69, %6 : vector<16x768xf32>
    %71 = vector.extract_strided_slice %70 {offsets = [0, 0], sizes = [16, 384], strides = [1, 1]} : vector<16x768xf32> to vector<16x384xf32>
    %cst_64 = arith.constant dense<0.000000e+00> : vector<16xf32>
    %72 = vector.multi_reduction <add>, %71, %cst_64 [1] : vector<16x384xf32> to vector<16xf32>
    %73 = vector.shape_cast %72 : vector<16xf32> to vector<16x1xf32>
    %cst_65 = arith.constant 3.906250e-03 : f32
    %74 = vector.broadcast %cst_65 : f32 to vector<16x1xf32>
    %75 = arith.mulf %73, %74 : vector<16x1xf32>
    %c0_66 = arith.constant 0 : index
    %c0_67 = arith.constant 0 : index
    %76 = vector.load %arg7[%c0_66, %c0_67] : memref<16x2xf32, #tpu.memory_space<vmem>>, vector<16x2xf32>
    %77 = vector.broadcast %75 : vector<16x1xf32> to vector<16x2xf32>
    %78 = arith.mulf %76, %77 : vector<16x2xf32>
    %cst_68 = arith.constant dense<0.000000e+00> : vector<2xf32>
    %79 = vector.multi_reduction <add>, %78, %cst_68 [0] : vector<16x2xf32> to vector<2xf32>
    %80 = vector.shape_cast %79 : vector<2xf32> to vector<1x2xf32>
    %cst_69 = arith.constant 0.000000e+00 : f32
    %81 = vector.broadcast %cst_69 : f32 to vector<1x2xf32>
    %82 = arith.maximumf %80, %81 : vector<1x2xf32>
    %c0_70 = arith.constant 0 : index
    %c0_71 = arith.constant 0 : index
    %83 = vector.load %arg8[%c0_70, %c0_71] : memref<16x2xf32, #tpu.memory_space<vmem>>, vector<16x2xf32>
    %84 = vector.broadcast %82 : vector<1x2xf32> to vector<16x2xf32>
    %85 = arith.mulf %83, %84 : vector<16x2xf32>
    %cst_72 = arith.constant dense<0.000000e+00> : vector<16xf32>
    %86 = vector.multi_reduction <add>, %85, %cst_72 [1] : vector<16x2xf32> to vector<16xf32>
    %87 = vector.shape_cast %86 : vector<16xf32> to vector<16x1xf32>
    %88 = arith.negf %87 : vector<16x1xf32>
    %89 = math.exp %88 : vector<16x1xf32>
    %cst_73 = arith.constant 1.000000e+00 : f32
    %90 = vector.broadcast %cst_73 : f32 to vector<16x1xf32>
    %91 = arith.addf %90, %89 : vector<16x1xf32>
    %92 = arith.divf %90, %91 : vector<16x1xf32>
    %93 = vector.broadcast %92 : vector<16x1xf32> to vector<16x384xf32>
    %94 = arith.mulf %71, %93 : vector<16x384xf32>
    %c0_74 = arith.constant 0 : index
    %c128_75 = arith.constant 128 : index
    %95 = vector.load %arg12[%c0_74, %c128_75] : memref<16x1024xf32, #tpu.memory_space<vmem>>, vector<16x384xf32>
    tpu.vector_store %arg12[%c0_74, %c128_75], %94 {strides = array<i32>} : memref<16x1024xf32, #tpu.memory_space<vmem>>, vector<16x384xf32>,
    %96 = vector.extract_strided_slice %70 {offsets = [0, 384], sizes = [16, 384], strides = [1, 1]} : vector<16x768xf32> to vector<16x384xf32>
    %cst_76 = arith.constant dense<0.000000e+00> : vector<16xf32>
    %97 = vector.multi_reduction <add>, %96, %cst_76 [1] : vector<16x384xf32> to vector<16xf32>
    %98 = vector.shape_cast %97 : vector<16xf32> to vector<16x1xf32>
    %cst_77 = arith.constant 3.906250e-03 : f32
    %99 = vector.broadcast %cst_77 : f32 to vector<16x1xf32>
    %100 = arith.mulf %98, %99 : vector<16x1xf32>
    %c0_78 = arith.constant 0 : index
    %c0_79 = arith.constant 0 : index
    %101 = vector.load %arg7[%c0_78, %c0_79] : memref<16x2xf32, #tpu.memory_space<vmem>>, vector<16x2xf32>
    %102 = vector.broadcast %100 : vector<16x1xf32> to vector<16x2xf32>
    %103 = arith.mulf %101, %102 : vector<16x2xf32>
    %cst_80 = arith.constant dense<0.000000e+00> : vector<2xf32>
    %104 = vector.multi_reduction <add>, %103, %cst_80 [0] : vector<16x2xf32> to vector<2xf32>
    %105 = vector.shape_cast %104 : vector<2xf32> to vector<1x2xf32>
    %cst_81 = arith.constant 0.000000e+00 : f32
    %106 = vector.broadcast %cst_81 : f32 to vector<1x2xf32>
    %107 = arith.maximumf %105, %106 : vector<1x2xf32>
    %c0_82 = arith.constant 0 : index
    %c0_83 = arith.constant 0 : index
    %108 = vector.load %arg8[%c0_82, %c0_83] : memref<16x2xf32, #tpu.memory_space<vmem>>, vector<16x2xf32>
    %109 = vector.broadcast %107 : vector<1x2xf32> to vector<16x2xf32>
    %110 = arith.mulf %108, %109 : vector<16x2xf32>
    %cst_84 = arith.constant dense<0.000000e+00> : vector<16xf32>
    %111 = vector.multi_reduction <add>, %110, %cst_84 [1] : vector<16x2xf32> to vector<16xf32>
    %112 = vector.shape_cast %111 : vector<16xf32> to vector<16x1xf32>
    %113 = arith.negf %112 : vector<16x1xf32>
    %114 = math.exp %113 : vector<16x1xf32>
    %cst_85 = arith.constant 1.000000e+00 : f32
    %115 = vector.broadcast %cst_85 : f32 to vector<16x1xf32>
    %116 = arith.addf %115, %114 : vector<16x1xf32>
    %117 = arith.divf %115, %116 : vector<16x1xf32>
    %118 = vector.broadcast %117 : vector<16x1xf32> to vector<16x384xf32>
    %119 = arith.mulf %96, %118 : vector<16x384xf32>
    %c0_86 = arith.constant 0 : index
    %c512 = arith.constant 512 : index
    %120 = vector.load %arg12[%c0_86, %c512] : memref<16x1024xf32, #tpu.memory_space<vmem>>, vector<16x384xf32>
    tpu.vector_store %arg12[%c0_86, %c512], %119 {strides = array<i32>} : memref<16x1024xf32, #tpu.memory_space<vmem>>, vector<16x384xf32>,
    %c0_87 = arith.constant 0 : index
    %c109_88 = arith.constant 109 : index
    %121 = vector.load %arg12[%c0_87, %c109_88] : memref<16x1024xf32, #tpu.memory_space<vmem>>, vector<16x768xf32>
    %c0_89 = arith.constant 0 : index
    %c110_90 = arith.constant 110 : index
    %122 = vector.load %arg12[%c0_89, %c110_90] : memref<16x1024xf32, #tpu.memory_space<vmem>>, vector<16x768xf32>
    %c0_91 = arith.constant 0 : index
    %c111_92 = arith.constant 111 : index
    %123 = vector.load %arg12[%c0_91, %c111_92] : memref<16x1024xf32, #tpu.memory_space<vmem>>, vector<16x768xf32>
    %124 = tpu.concatenate %121, %122, %123 in 0 : vector<16x768xf32>, vector<16x768xf32>, vector<16x768xf32> -> vector<48x768xf32>
    %c0_93 = arith.constant 0 : index
    %c0_94 = arith.constant 0 : index
    %125 = vector.load %arg9[%c0_93, %c0_94] : memref<16x144xf32, #tpu.memory_space<vmem>>, vector<16x48xf32>
    %cst_95 = arith.constant dense<0.000000e+00> : vector<16x768xf32>
    %126 = tpu.matmul %125, %124, %cst_95 {dimension_numbers = #tpu.dot_dimension_numbers<[1], [0], [0], [1], [0, 0, 1, 1], [], []>} : vector<16x48xf32>, vector<48x768xf32>, vector<16x768xf32> -> vector<16x768xf32>
    %c0_96 = arith.constant 0 : index
    %c127_97 = arith.constant 127 : index
    %127 = vector.load %arg12[%c0_96, %c127_97] : memref<16x1024xf32, #tpu.memory_space<vmem>>, vector<16x768xf32>
    %c0_98 = arith.constant 0 : index
    %c128_99 = arith.constant 128 : index
    %128 = vector.load %arg12[%c0_98, %c128_99] : memref<16x1024xf32, #tpu.memory_space<vmem>>, vector<16x768xf32>
    %c0_100 = arith.constant 0 : index
    %c129_101 = arith.constant 129 : index
    %129 = vector.load %arg12[%c0_100, %c129_101] : memref<16x1024xf32, #tpu.memory_space<vmem>>, vector<16x768xf32>
    %130 = tpu.concatenate %127, %128, %129 in 0 : vector<16x768xf32>, vector<16x768xf32>, vector<16x768xf32> -> vector<48x768xf32>
    %c0_102 = arith.constant 0 : index
    %c48_103 = arith.constant 48 : index
    %131 = vector.load %arg9[%c0_102, %c48_103] : memref<16x144xf32, #tpu.memory_space<vmem>>, vector<16x48xf32>
    %cst_104 = arith.constant dense<0.000000e+00> : vector<16x768xf32>
    %132 = tpu.matmul %131, %130, %cst_104 {dimension_numbers = #tpu.dot_dimension_numbers<[1], [0], [0], [1], [0, 0, 1, 1], [], []>} : vector<16x48xf32>, vector<48x768xf32>, vector<16x768xf32> -> vector<16x768xf32>
    %133 = arith.addf %126, %132 : vector<16x768xf32>
    %c0_105 = arith.constant 0 : index
    %c145_106 = arith.constant 145 : index
    %134 = vector.load %arg12[%c0_105, %c145_106] : memref<16x1024xf32, #tpu.memory_space<vmem>>, vector<16x768xf32>
    %c0_107 = arith.constant 0 : index
    %c146_108 = arith.constant 146 : index
    %135 = vector.load %arg12[%c0_107, %c146_108] : memref<16x1024xf32, #tpu.memory_space<vmem>>, vector<16x768xf32>
    %c0_109 = arith.constant 0 : index
    %c147_110 = arith.constant 147 : index
    %136 = vector.load %arg12[%c0_109, %c147_110] : memref<16x1024xf32, #tpu.memory_space<vmem>>, vector<16x768xf32>
    %137 = tpu.concatenate %134, %135, %136 in 0 : vector<16x768xf32>, vector<16x768xf32>, vector<16x768xf32> -> vector<48x768xf32>
    %c0_111 = arith.constant 0 : index
    %c96_112 = arith.constant 96 : index
    %138 = vector.load %arg9[%c0_111, %c96_112] : memref<16x144xf32, #tpu.memory_space<vmem>>, vector<16x48xf32>
    %cst_113 = arith.constant dense<0.000000e+00> : vector<16x768xf32>
    %139 = tpu.matmul %138, %137, %cst_113 {dimension_numbers = #tpu.dot_dimension_numbers<[1], [0], [0], [1], [0, 0, 1, 1], [], []>} : vector<16x48xf32>, vector<48x768xf32>, vector<16x768xf32> -> vector<16x768xf32>
    %140 = arith.addf %133, %139 : vector<16x768xf32>
    %c0_114 = arith.constant 0 : index
    %c0_115 = arith.constant 0 : index
    %141 = vector.load %arg10[%c0_114, %c0_115] : memref<16x1xf32, #tpu.memory_space<vmem>>, vector<16x1xf32>
    %142 = vector.broadcast %141 : vector<16x1xf32> to vector<16x768xf32>
    %143 = arith.addf %140, %142 : vector<16x768xf32>
    %c0_116 = arith.constant 0 : index
    %c0_117 = arith.constant 0 : index
    %c0_118 = arith.constant 0 : index
    %144 = vector.load %arg11[%c0_116, %c0_117, %c0_118] : memref<1x16x768xf32, #tpu.memory_space<vmem>>, vector<1x16x768xf32>
    %145 = vector.shape_cast %144 : vector<1x16x768xf32> to vector<16x768xf32>
    %146 = vector.shape_cast %143 : vector<16x768xf32> to vector<1x16x768xf32>
    tpu.vector_store %arg11[%c0_116, %c0_117, %c0_118], %146 {strides = array<i32>} : memref<1x16x768xf32, #tpu.memory_space<vmem>>, vector<1x16x768xf32>,
    return
  }
  func.func @transform_0(%arg0: i32) -> (i32, i32, i32) {
    %c0_i32 = arith.constant 0 : i32
    %c0_i32_0 = arith.constant 0 : i32
    %c0_i32_1 = arith.constant 0 : i32
    return %arg0, %c0_i32, %c0_i32_0 : i32, i32, i32
  }
  func.func @transform_1(%arg0: i32) -> (i32, i32) {
    %c0_i32 = arith.constant 0 : i32
    %c0_i32_0 = arith.constant 0 : i32
    %c0_i32_1 = arith.constant 0 : i32
    return %c0_i32, %c0_i32_0 : i32, i32
  }
  func.func @transform_2(%arg0: i32) -> (i32, i32) {
    %c0_i32 = arith.constant 0 : i32
    %c0_i32_0 = arith.constant 0 : i32
    %c0_i32_1 = arith.constant 0 : i32
    return %c0_i32, %c0_i32_0 : i32, i32
  }
  func.func @transform_3(%arg0: i32) -> (i32, i32) {
    %c0_i32 = arith.constant 0 : i32
    %c0_i32_0 = arith.constant 0 : i32
    %c0_i32_1 = arith.constant 0 : i32
    return %c0_i32, %c0_i32_0 : i32, i32
  }
  func.func @transform_4(%arg0: i32) -> (i32, i32) {
    %c0_i32 = arith.constant 0 : i32
    %c0_i32_0 = arith.constant 0 : i32
    %c0_i32_1 = arith.constant 0 : i32
    return %c0_i32, %c0_i32_0 : i32, i32
  }
  func.func @transform_5(%arg0: i32) -> (i32, i32) {
    %c0_i32 = arith.constant 0 : i32
    %c0_i32_0 = arith.constant 0 : i32
    %c0_i32_1 = arith.constant 0 : i32
    return %c0_i32, %c0_i32_0 : i32, i32
  }
  func.func @transform_6(%arg0: i32) -> (i32, i32) {
    %c0_i32 = arith.constant 0 : i32
    %c0_i32_0 = arith.constant 0 : i32
    %c0_i32_1 = arith.constant 0 : i32
    return %c0_i32, %c0_i32_0 : i32, i32
  }
  func.func @transform_7(%arg0: i32) -> (i32, i32) {
    %c0_i32 = arith.constant 0 : i32
    %c0_i32_0 = arith.constant 0 : i32
    %c0_i32_1 = arith.constant 0 : i32
    return %c0_i32, %c0_i32_0 : i32, i32
  }
  func.func @transform_8(%arg0: i32) -> (i32, i32) {
    %c0_i32 = arith.constant 0 : i32
    %c0_i32_0 = arith.constant 0 : i32
    %c0_i32_1 = arith.constant 0 : i32
    return %c0_i32, %c0_i32_0 : i32, i32
  }
  func.func @transform_9(%arg0: i32) -> (i32, i32) {
    %c0_i32 = arith.constant 0 : i32
    %c0_i32_0 = arith.constant 0 : i32
    %c0_i32_1 = arith.constant 0 : i32
    return %c0_i32, %c0_i32_0 : i32, i32
  }
  func.func @transform_10(%arg0: i32) -> (i32, i32, i32) {
    %c0_i32 = arith.constant 0 : i32
    %c0_i32_0 = arith.constant 0 : i32
    %c0_i32_1 = arith.constant 0 : i32
    return %arg0, %c0_i32, %c0_i32_0 : i32, i32, i32
  }
}

</mosaic_0001>

<bundles_post_ra>
// kernel: convnet_forward.1
= control target key start
LH: loop header
LB: loop body
LE: loop exit
PB: predicated region body
PF: predicated region fallthrough
CT: control target
= control target key end

     0   :  { %s5757_s19 = smov 126   ;;  %s5758_s26 = smov 127   ;;  %vm122_vm0 = vcmask 1031168   ;;  %vm101_vm1 = vcmask 1039360   ;;  %v8179_v54 = vmov 0.0   ;;  %vm213_vm2 = vcmask 7168   ;;  %s8168_s0 = inlined_call_operand.vmem [shape: f32[1,8,1024], index: 0, kind: input, shape index: {}]   ;;  %s8169_s2 = inlined_call_operand.vmem [shape: f32[16,72], index: 2, kind: input, shape index: {}]   ;;  %s8170_s3 = inlined_call_operand.vmem [shape: f32[16,1], index: 3, kind: input, shape index: {}]   ;;  %s8171_s4 = inlined_call_operand.vmem [shape: f32[16,144], index: 4, kind: input, shape index: {}]   ;;  %s8172_s1 = inlined_call_operand.vmem [shape: f32[1,768], index: 1, kind: input, shape index: {}]   ;;  %s8173_s5 = inlined_call_operand.vmem [shape: f32[16,1], index: 5, kind: input, shape index: {}]   ;;  %s8174_s6 = inlined_call_operand.vmem [shape: f32[16,2], index: 6, kind: input, shape index: {}]   ;;  %s8175_s7 = inlined_call_operand.vmem [shape: f32[16,2], index: 7, kind: input, shape index: {}]   ;;  %s8176_s8 = inlined_call_operand.vmem [shape: f32[16,144], index: 8, kind: input, shape index: {}]   ;;  %s8177_s9 = inlined_call_operand.vmem [shape: f32[16,1], index: 9, kind: input, shape index: {}]   ;;  %s8178_s10 = inlined_call_operand.vmem [shape: f32[1,16,768], index: 10, kind: output, shape index: {}]  }
   0x1   :  { %v131_v0 = vld [vmem:[%s8168_s0 + $0x8] sm:$0xff]  ;;  %v75_v1 = vld [vmem:[%s8168_s0 + $0x10] sm:$0xff]  ;;  %v5831_v2 = vld [vmem:[%s8168_s0 + $0x18] sm:$0xff]  ;;  %s5760_s13 = smov 104   ;;  %s5761_s16 = smov 19   ;;  %319 = vmatprep.mubr.f32.mxu0 %v8179_v54  ;;  %396 = vmatprep.mubr.f32.mxu1 %v8179_v54  ;;  %vm250_vm3 = vcmask 195584  }
   0x2   :  { %145 = vrot.lane.b32.xlu1 %v131_v0, %s5757_s19  ;;  %v4685_v3 = vpack.i.bf16 %v75_v1, %v131_v0  ;;  %v5837_v4 = vld [vmem:[%s8168_s0 + $0x28] sm:$0xff]  ;;  %v5842_v5 = vld [vmem:[%s8168_s0 + $0x20] sm:$0xff]  ;;  %v79_v6 = vld [vmem:[%s8168_s0 + $0x30] sm:$0xff]  ;;  %v4745_v18 = vpack.i.bf16 %v5831_v2, %v75_v1  ;;  %s5762_s17 = smov 111   ;;  %vm528_vm4 = vcmask 154624   ;;  %vm866_vm5 = vcmask 908288  }
   0x3   :  { %v4690_v7 = vpack.i.bf16 %v5837_v4, %v5831_v2  ;;  %v4695_v8 = vpack.i.bf16 %v5842_v5, %v79_v6  ;;  %v137_v9 = vld [vmem:[%s8168_s0 + $0x38] sm:$0xff]  ;;  %v5865_v10 = vld [vmem:[%s8168_s0] sm:$0xff]  ;;  %v4710_v12 = vpack.i.bf16 %v5837_v4, %v131_v0  ;;  %v4705_v13 = vpack.i.bf16 %v5842_v5, %v5831_v2  ;;  %s5759_s0 = smov 1   ;;  %v5904_v17 = vld [vmem:[%s8169_s2 + $0x8] sm:$0xff]  ;;  %s5766_s30 = smov 32  }
   0x4   :  { %4686 = vrot.lane.b32.xlu0 %v4685_v3, %s5758_s26  ;;  %v4700_v11 = vpack.i.bf16 %v75_v1, %v5865_v10  ;;  %v5888_v14 = vpack.i.bf16 %v137_v9, %v79_v6  ;;  %v4725_v15 = vpack.i.bf16 %v79_v6, %v5837_v4  ;;  %v5898_v16 = vld [vmem:[%s8169_s2] sm:$0xff]  ;;  %v4750_v19 = vpack.i.bf16 %v5842_v5, %v131_v0  ;;  %s5764_s2 = smov 80  }
   0x5   :  { %vm1562_vm6 = vcmask 392192   ;;  %vm2245_vm7 = vcmask 261120   ;;  %vm2723_vm8 = vcmask 15360  }
   0x6   :  { %147 = vrot.lane.b32.xlu1 %v75_v1, %s5757_s19 }
   0x8   :  { %4691 = vrot.lane.b32.xlu0 %v4690_v7, %s5758_s26 }
   0xa   :  { %4696 = vrot.lane.b32.xlu1 %v4695_v8, %s5758_s26 }
   0xc   :  { %149 = vrot.lane.b32.xlu0 %v5831_v2, %s5757_s19 }
   0xe   :  { %155 = vrot.lane.b32.xlu1 %v79_v6, %s5757_s19 }
  0x10   :  { %153 = vrot.lane.b32.xlu0 %v5837_v4, %s5757_s19 }
  0x12   :  { %151 = vrot.lane.b32.xlu1 %v5842_v5, %s5757_s19 }
  0x14   :  { %157 = vrot.lane.b32.xlu0 %v137_v9, %s5757_s19 }
  0x16   :  { %110 = vrot.lane.b32.xlu1 %v131_v0, %s5757_s19 }
  0x18   :  { %4701 = vrot.lane.b32.xlu0 %v4700_v11, %s5758_s26 }
  0x1a   :  { %114 = vrot.lane.b32.xlu1 %v5831_v2, %s5757_s19 }
  0x1c   :  { %112 = vrot.lane.b32.xlu0 %v75_v1, %s5757_s19 }
  0x1e   :  { %118 = vrot.lane.b32.xlu1 %v5837_v4, %s5757_s19 }
  0x20   :  { %108 = vrot.lane.b32.xlu0 %v5865_v10, %s5757_s19 }
  0x22   :  { %116 = vrot.lane.b32.xlu1 %v5842_v5, %s5757_s19 }
  0x24   :  { %120 = vrot.lane.b32.xlu0 %v79_v6, %s5757_s19 }
  0x26   :  { %4711 = vrot.lane.b32.xlu1 %v4710_v12, %s5758_s26 }
  0x28   :  { %4706 = vrot.lane.b32.xlu0 %v4705_v13, %s5758_s26 }
  0x2a   :  { %4721 = vrot.lane.b32.xlu1 %v4685_v3, %s5759_s0 }
  0x2c   :  { %4716 = vrot.lane.b32.xlu0 %v5888_v14, %s5758_s26 }
  0x2e   :  { %4726 = vrot.lane.b32.xlu1 %v4725_v15, %s5759_s0 }
  0x32   :  { %167 = vrot.lane.b32.xlu1 %v5898_v16, %s5760_s13 }
  0x36   :  { %169 = vrot.lane.b32.xlu1 %v5904_v17, %s5760_s13 }
  0x3a   :  { %4731 = vrot.lane.b32.xlu1 %v4685_v3, %s5761_s16 }
  0x3e   :  { %4736 = vrot.lane.b32.xlu1 %v4725_v15, %s5761_s16 }
  0x42   :  { %4741 = vrot.lane.b32.xlu1 %v4705_v13, %s5761_s16 }
  0x46   :  { %4746 = vrot.lane.b32.xlu1 %v4745_v18, %s5762_s17 }
  0x4a   :  { %4751 = vrot.lane.b32.xlu1 %v4750_v19, %s5762_s17 }
  0x74   :  { %v146_v20 = vpop.permute.xlu1 %145 }
  0x75   :  { %199 = vrot.lane.b32.xlu0 %v146_v20, %s5759_s0 }
  0x76   :  { %v4687_v21 = vpop.permute.xlu0 %4686 }
  0x77   :  { %v5915_v22 = vunpack.i.l.bf16 %v4687_v21  ;;  %v4689_v46 = vunpack.i.h.bf16 %v4687_v21 }
  0x78   :  { %v148_v23 = vpop.permute.xlu1 %147 }
  0x79   :  { %v4755_v24 = vpack.i.bf16 %v5915_v22, %v5865_v10  ;;  %v103_v51 = vsel %vm101_vm1, %v5915_v22, %v4689_v46  ;;  %v159_v62 = vsel %vm122_vm0, %v146_v20, %v148_v23 }
  0x7a   :  { %v4692_v25 = vpop.permute.xlu0 %4691 }
  0x7b   :  { %4756 = vrot.lane.b32.xlu1 %v4755_v24, %s5759_s0  ;;  %v4693_v33 = vunpack.i.l.bf16 %v4692_v25  ;;  %v4694_v59 = vunpack.i.h.bf16 %v4692_v25 }
  0x7c   :  { %v4697_v26 = vpop.permute.xlu1 %4696 }
  0x7d   :  { %v4699_v31 = vunpack.i.h.bf16 %v4697_v26  ;;  %v104_v49 = vsel %vm101_vm1, %v4689_v46, %v4693_v33  ;;  %v4698_v55 = vunpack.i.l.bf16 %v4697_v26 }
  0x7e   :  { %v150_v27 = vpop.permute.xlu0 %149  ;;  %v4760_v52 = vpack.i.bf16 %v104_v49, %v103_v51 }
  0x7f   :  { %v5921_v28 = vsel %vm122_vm0, %v148_v23, %v150_v27  ;;  %v5932_v36 = vsel %vm101_vm1, %v4693_v33, %v4699_v31  ;;  %v107_v63 = vsel %vm101_vm1, %v4694_v59, %v4698_v55  ;;  %v106_v7 = vsel %vm101_vm1, %v4699_v31, %v4694_v59 }
  0x80   :  { %v156_v29 = vpop.permute.xlu1 %155  ;;  %203 = vrot.lane.b32.xlu1 %v5921_v28, %s5759_s0  ;;  %v4780_v39 = vpack.i.bf16 %v5932_v36, %v5831_v2  ;;  %v4765_v2 = vpack.i.bf16 %v4698_v55, %v107_v63  ;;  %v4770_v8 = vpack.i.bf16 %v106_v7, %v5842_v5 }
  0x82   :  { %v154_v30 = vpop.permute.xlu0 %153 }
  0x83   :  { %v163_v9 = vsel %vm122_vm0, %v154_v30, %v156_v29 }
  0x84   :  { %v152_v32 = vpop.permute.xlu1 %151 }
  0x85   :  { %v161_v45 = vsel %vm122_vm0, %v150_v27, %v152_v32  ;;  %v162_v11 = vsel %vm122_vm0, %v152_v32, %v154_v30 }
  0x86   :  { %v5925_v34 = vpop.permute.xlu0 %157 }
  0x87   :  { %v5929_v35 = vsel %vm122_vm0, %v156_v29, %v5925_v34 }
  0x88   :  { %v5934_v37 = vpop.permute.xlu1 %110  ;;  %211 = vrot.lane.b32.xlu1 %v5929_v35, %s5759_s0 }
  0x8a   :  { %v5938_v38 = vpop.permute.xlu0 %4701 }
  0x8b   :  { %v4703_v12 = vunpack.i.l.bf16 %v5938_v38 }
  0x8c   :  { %v115_v40 = vpop.permute.xlu1 %114  ;;  %4781 = vrot.lane.b32.xlu1 %v4780_v39, %s5759_s0 }
  0x8d   :  { %v102_v5 = vsel %vm101_vm1, %v4703_v12, %v5915_v22 }
  0x8e   :  { %v113_v41 = vpop.permute.xlu0 %112  ;;  %v4785_v13 = vpack.i.bf16 %v102_v5, %v5865_v10  ;;  %v4704_v10 = vunpack.i.h.bf16 %v5938_v38  ;;  %v72_v38 = vld [vmem:[%s8170_s3 + $0x8] sm:$0xff] }
  0x8f   :  { %v124_v42 = vsel %vm122_vm0, %v5934_v37, %v113_v41  ;;  %v125_v15 = vsel %vm122_vm0, %v113_v41, %v115_v40 }
  0x90   :  { %v5945_v43 = vpop.permute.xlu1 %118  ;;  %516 = vrot.lane.b32.xlu1 %v124_v42, %s5761_s16 }
  0x92   :  { %v109_v44 = vpop.permute.xlu0 %108 }
  0x93   :  { %v123_v18 = vsel %vm122_vm0, %v109_v44, %v5934_v37 }
  0x94   :  { %v117_v47 = vpop.permute.xlu1 %116  ;;  %205 = vrot.lane.b32.xlu1 %v161_v45, %s5759_s0 }
  0x95   :  { %v126_v53 = vsel %vm122_vm0, %v115_v40, %v117_v47  ;;  %v127_v21 = vsel %vm122_vm0, %v117_v47, %v5945_v43 }
  0x96   :  { %v121_v48 = vpop.permute.xlu0 %120 }
  0x97   :  { %526 = vrot.lane.b32.xlu0 %v121_v48, %s5761_s16  ;;  %v128_v50 = vsel %vm122_vm0, %v5945_v43, %v121_v48 }
  0x98   :  { %524 = vrot.lane.b32.xlu1 %v128_v50, %s5761_s16  ;;  %v4712_v56 = vpop.permute.xlu1 %4711 }
  0x99   :  { %v4714_v58 = vunpack.i.h.bf16 %v4712_v56  ;;  %v4713_v20 = vunpack.i.l.bf16 %v4712_v56 }
  0x9a   :  { %v4707_v57 = vpop.permute.xlu0 %4706 }
  0x9b   :  { %4761 = vrot.lane.b32.xlu0 %v4760_v52, %s5759_s0  ;;  %v4709_v60 = vunpack.i.h.bf16 %v4707_v57  ;;  %v4708_v19 = vunpack.i.l.bf16 %v4707_v57  ;;  %v814_v26 = vsel %vm101_vm1, %v4713_v20, %v4704_v10 }
  0x9c   :  { %520 = vrot.lane.b32.xlu1 %v126_v53, %s5761_s16  ;;  %v6004_v25 = vpop.permute.xlu1 %4721  ;;  %v4805_v27 = vpack.i.bf16 %v814_v26, %v5837_v4 }
  0x9d   :  { %v817_v1 = vsel %vm101_vm1, %v4709_v60, %v4714_v58  ;;  %v815_v22 = vsel %vm101_vm1, %v4704_v10, %v4708_v19  ;;  %v816_v23 = vsel %vm101_vm1, %v4708_v19, %v4709_v60  ;;  %v4724_v48 = vunpack.i.h.bf16 %v6004_v25 }
  0x9e   :  { %v4717_v61 = vpop.permute.xlu0 %4716  ;;  %v4800_v24 = vpack.i.bf16 %v816_v23, %v815_v22 }
  0x9f   :  { %v4718_v0 = vunpack.i.l.bf16 %v4717_v61  ;;  %201 = vrot.lane.b32.xlu0 %v159_v62, %s5759_s0  ;;  %v4719_v31 = vunpack.i.h.bf16 %v4717_v61 }
  0xa0   :  { %v6010_v29 = vpop.permute.xlu1 %4726 }
  0xa1   :  { %v818_v3 = vsel %vm101_vm1, %v4714_v58, %v4718_v0  ;;  %v819_v33 = vsel %vm101_vm1, %v4718_v0, %v4719_v31  ;;  %v4729_v61 = vunpack.i.h.bf16 %v6010_v29 }
  0xa2   :  { %v4810_v6 = vpack.i.bf16 %v818_v3, %v817_v1  ;;  %v4820_v4 = vpack.i.bf16 %v4719_v31, %v819_v33 }
  0xa3   :  { %4766 = vrot.lane.b32.xlu0 %v4765_v2, %s5759_s0 }
  0xa4   :  { %4811 = vrot.lane.b32.xlu1 %v4810_v6, %s5762_s17  ;;  %v6014_v30 = vpop.permute.xlu1 %167 }
  0xa7   :  { %4771 = vrot.lane.b32.xlu0 %v4770_v8, %s5759_s0 }
  0xa8   :  { %856 = vrot.lane.b32.xlu1 %v161_v45, %s5762_s17  ;;  %v6018_v32 = vpop.permute.xlu1 %169 }
  0xab   :  { %209 = vrot.lane.b32.xlu0 %v163_v9, %s5759_s0 }
  0xac   :  { %858 = vrot.lane.b32.xlu1 %v162_v11, %s5762_s17 }
  0xaf   :  { %207 = vrot.lane.b32.xlu0 %v162_v11, %s5759_s0 }
  0xb0   :  { %820 = vrot.lane.b32.xlu1 %v5898_v16, %s5764_s2 }
  0xb3   :  { %4776 = vrot.lane.b32.xlu0 %v4760_v52, %s5761_s16 }
  0xb4   :  { %4816 = vrot.lane.b32.xlu1 %v5888_v14, %s5762_s17  ;;  %v4795_v14 = vpack.i.bf16 %v106_v7, %v5932_v36  ;;  %v71_v36 = vld [vmem:[%s8170_s3] sm:$0xff] }
  0xb7   :  { %4786 = vrot.lane.b32.xlu0 %v4785_v13, %s5761_s16 }
  0xb8   :  { %862 = vrot.lane.b32.xlu1 %v5929_v35, %s5762_s17  ;;  %v6023_v35 = vpop.permute.xlu1 %4731 }
  0xbb   :  { %518 = vrot.lane.b32.xlu0 %v125_v15, %s5761_s16 }
  0xbc   :  { %v6031_v37 = vpop.permute.xlu1 %4736 }
  0xbf   :  { %514 = vrot.lane.b32.xlu0 %v123_v18, %s5761_s16 }
  0xc0   :  { %v6036_v39 = vpop.permute.xlu1 %4741 }
  0xc3   :  { %4791 = vrot.lane.b32.xlu0 %v4765_v2, %s5761_s16 }
  0xc4   :  { %v6038_v40 = vpop.permute.xlu1 %4746 }
  0xc7   :  { %4796 = vrot.lane.b32.xlu0 %v4795_v14, %s5761_s16 }
  0xc8   :  { %v6040_v41 = vpop.permute.xlu1 %4751 }
  0xcb   :  { %522 = vrot.lane.b32.xlu0 %v127_v21, %s5761_s16 }
  0xcf   :  { %4801 = vrot.lane.b32.xlu0 %v4800_v24, %s5762_s17 }
  0xd3   :  { %4806 = vrot.lane.b32.xlu0 %v4805_v27, %s5762_s17 }
  0xd7   :  { %854 = vrot.lane.b32.xlu0 %v5921_v28, %s5762_s17  ;;  %v5765_v28 = vmov 0  }
  0xd8   :  { %4825 = vset.pattern.permute.xlu1 %v5765_v28  ;;  %4826 = vset.pattern.permute.xlu0 %v5765_v28 }
  0xd9   :  { %1152 = vperm.xlu1 %4825, %v71_v36   ;;  %v4734_v36 = vunpack.i.h.bf16 %v6023_v35 }
  0xdb   :  { %852 = vrot.lane.b32.xlu0 %v159_v62, %s5762_s17  ;;  %v4728_v62 = vunpack.i.l.bf16 %v6010_v29 }
  0xdd   :  { %v219_v7 = vsel %vm213_vm2, %v4728_v62, %v4729_v61  ;;  %4828 = vrot.lane.b32.xlu1 %v8179_v54, %s5758_s26 }
  0xdf   :  { %860 = vrot.lane.b32.xlu0 %v163_v9, %s5762_s17 }
  0xe1   :  { %4833 = vrot.lane.b32.xlu1 %v8179_v54, %s5757_s19 }
  0xe3   :  { %822 = vrot.lane.b32.xlu0 %v5904_v17, %s5764_s2 }
  0xe7   :  { %4821 = vrot.lane.b32.xlu0 %v4820_v4, %s5762_s17  ;;  %v200_v42 = vpop.permute.xlu0 %199 }
  0xeb   :  { %864 = vrot.lane.b32.xlu0 %v5925_v34, %s5762_s17  ;;  %v4723_v34 = vunpack.i.l.bf16 %v6004_v25 }
  0xed   :  { %v4757_v43 = vpop.permute.xlu1 %4756  ;;  %v215_v53 = vsel %vm213_vm2, %v4723_v34, %v4724_v48 }
  0xee   :  { %v4758_v46 = vunpack.i.l.bf16 %v4757_v43  ;;  %v4759_v49 = vunpack.i.h.bf16 %v4757_v43 }
  0xef   :  { %1157 = vperm.xlu0 %4826, %v72_v38   ;;  %v4733_v38 = vunpack.i.l.bf16 %v6023_v35 }
  0xf0   :  { %v214_v56 = vsel %vm213_vm2, %v4758_v46, %v4723_v34 }
  0xf1   :  { %v530_v35 = vsel %vm528_vm4, %v4733_v38, %v4734_v36 }
  0xf2   :  { %v6044_v45 = vpop.permute.xlu1 %203 }
  0xf3   :  { %4838 = vrot.lane.b32.xlu0 %v8179_v54, %s5759_s0 }
  0xf7   :  { %4843 = vrot.lane.b32.xlu0 %v8179_v54, %s5758_s26 }
  0xfa   :  { %v212_v50 = vpop.permute.xlu1 %211 }
  0xfe   :  { %v4782_v63 = vpop.permute.xlu1 %4781 }
  0xff   :  { %v4784_v9 = vunpack.i.h.bf16 %v4782_v63  ;;  %v4783_v11 = vunpack.i.l.bf16 %v4782_v63  ;;  %v4743_v63 = vunpack.i.l.bf16 %v6036_v39 }
 0x101   :  { %v216_v25 = vsel %vm213_vm2, %v4724_v48, %v4783_v11 }
 0x102   :  { %v517_v13 = vpop.permute.xlu1 %516 }
 0x106   :  { %v206_v29 = vpop.permute.xlu1 %205 }
 0x107   :  { %v228_v28 = vsel %vm213_vm2, %v6044_v45, %v206_v29 }
 0x109   :  { %v6042_v44 = vpop.permute.xlu0 %526 }
 0x10d   :  { %v4762_v47 = vpop.permute.xlu0 %4761 }
 0x10e   :  { %v4764_v51 = vunpack.i.h.bf16 %v4762_v47  ;;  %v4763_v52 = vunpack.i.l.bf16 %v4762_v47 }
 0x110   :  { %v221_v55 = vsel %vm213_vm2, %v4763_v52, %v4764_v51  ;;  %v220_v57 = vsel %vm213_vm2, %v4759_v49, %v4763_v52  ;;  %v222_v14 = vsel %vm213_vm2, %v4764_v51, %v4784_v9 }
 0x111   :  { %v202_v58 = vpop.permute.xlu0 %201  ;;  %v4351_v59 = vpack.c.bf16 %v221_v55, %v215_v53  ;;  %v4353_v60 = vpack.c.bf16 %v220_v57, %v214_v56  ;;  %v4357_v26 = vpack.c.bf16 %v222_v14, %v216_v25  ;;  %v525_v56 = vpop.permute.xlu1 %524  ;;  %v4739_v57 = vunpack.i.h.bf16 %v6031_v37 }
 0x112   :  { %v227_v0 = vsel %vm213_vm2, %v202_v58, %v6044_v45  ;;  %v226_v6 = vsel %vm213_vm2, %v200_v42, %v202_v58  ;;  %v4738_v58 = vunpack.i.l.bf16 %v6031_v37 }
 0x113   :  { %4352 = vmatprep.subr.bf16.mxu0 %v4351_v59 }
 0x114   :  { %4354 = vmatpush1.bf16.msra.mxu0 %v4353_v60 }
 0x115   :  { %v4767_v1 = vpop.permute.xlu0 %4766  ;;  %259 = vmatprep.subr.mxu0 %v227_v0  ;;  %v521_v0 = vpop.permute.xlu1 %520 }
 0x116   :  { %v4769_v2 = vunpack.i.h.bf16 %v4767_v1  ;;  %v4768_v3 = vunpack.i.l.bf16 %v4767_v1  ;;  %v534_v1 = vsel %vm528_vm4, %v4738_v58, %v4739_v57 }
 0x118   :  { %260 = vmatpush1.msra.mxu0 %v226_v6  ;;  %v225_v8 = vsel %vm213_vm2, %v4768_v3, %v4769_v2 }
 0x119   :  { %v4772_v12 = vpop.permute.xlu0 %4771  ;;  %4293 = vmatmul.mubr.msk.f32.vlgmr.msra.gmra.mrb[0].mxu0 %vm250_vm3, %v6014_v30  ;;  %v4359_v5 = vpack.c.bf16 %v225_v8, %v219_v7  ;;  %v531_v8 = vsel %vm528_vm4, %v4734_v36, %v4743_v63 }
 0x11a   :  { %v4774_v15 = vunpack.i.h.bf16 %v4772_v12  ;;  %v4773_v18 = vunpack.i.l.bf16 %v4772_v12  ;;  %325 = vmatprep.mubr.f32.mxu0 %v8179_v54 }
 0x11b   :  { %4360 = vmatprep.subr.bf16.mxu0 %v4359_v5 }
 0x11c   :  { %v218_v19 = vsel %vm213_vm2, %v4773_v18, %v4728_v62  ;;  %v224_v10 = vsel %vm213_vm2, %v4774_v15, %v4768_v3  ;;  %v217_v20 = vsel %vm213_vm2, %v4783_v11, %v4773_v18  ;;  %v223_v21 = vsel %vm213_vm2, %v4784_v9, %v4774_v15 }
 0x11d   :  { %v210_v22 = vpop.permute.xlu0 %209  ;;  %4294 = vmatmul.mubr.msk.f32.gmra.mrb[2].mxu0 %vm250_vm3, %v6018_v32  ;;  %v4355_v23 = vpack.c.bf16 %v223_v21, %v217_v20  ;;  %v4361_v24 = vpack.c.bf16 %v224_v10, %v218_v19  ;;  %v4744_v62 = vunpack.i.h.bf16 %v6036_v39  ;;  %v546_v10 = vsel %vm528_vm4, %v525_v56, %v6042_v44 }
 0x11e   :  { %v231_v27 = vsel %vm213_vm2, %v210_v22, %v212_v50  ;;  %473 = vmatprep.mubr.f32.mxu0 %v8179_v54  ;;  %v4749_v20 = vunpack.i.h.bf16 %v6038_v40  ;;  %v4748_v21 = vunpack.i.l.bf16 %v6038_v40 }
 0x11f   :  { %4356 = vmatprep.subr.bf16.mxu1 %v4355_v23  ;;  %4362 = vmatpush1.bf16.msra.mxu0 %v4361_v24  ;;  %v533_v9 = vsel %vm528_vm4, %v4744_v62, %v4738_v58  ;;  %v532_v12 = vsel %vm528_vm4, %v4743_v63, %v4744_v62 }
 0x120   :  { %4358 = vmatpush1.bf16.msra.mxu1 %v4357_v26  ;;  %413 = vmatprep.subr.mxu0 %v231_v27 }
 0x121   :  { %v208_v31 = vpop.permute.xlu0 %207 }
 0x122   :  { %v229_v33 = vsel %vm213_vm2, %v206_v29, %v208_v31  ;;  %v230_v4 = vsel %vm213_vm2, %v208_v31, %v210_v22  ;;  %v4753_v31 = vunpack.i.l.bf16 %v6040_v41 }
 0x123   :  { %336 = vmatprep.subr.mxu1 %v229_v33  ;;  %414 = vmatpush1.msra.mxu0 %v230_v4  ;;  %v868_v33 = vsel %vm866_vm5, %v4748_v21, %v4749_v20 }
 0x124   :  { %337 = vmatpush1.msra.mxu1 %v228_v28  ;;  %4297 = vmatmul.mubr.msk.f32.vlgmr.msra.gmra.mrb[4].mxu0 %vm250_vm3, %v6014_v30  ;;  %v4754_v28 = vunpack.i.h.bf16 %v6040_v41 }
 0x125   :  { %v4777_v42 = vpop.permute.xlu0 %4776  ;;  %4295 = vmatmul.mubr.msk.f32.vlgmr.msra.gmra.mrb[0].mxu1 %vm250_vm3, %v6014_v30  ;;  %479 = vmatprep.mubr.f32.mxu0 %v8179_v54 }
 0x126   :  { %v4779_v43 = vunpack.i.h.bf16 %v4777_v42  ;;  %v4778_v34 = vunpack.i.l.bf16 %v4777_v42  ;;  %402 = vmatprep.mubr.f32.mxu1 %v8179_v54 }
 0x128   :  { %4298 = vmatmul.mubr.msk.f32.gmra.mrb[6].mxu0 %vm250_vm3, %v6018_v32  ;;  %v536_v45 = vsel %vm528_vm4, %v4778_v34, %v4779_v43 }
 0x129   :  { %4296 = vmatmul.mubr.msk.f32.gmra.mrb[2].mxu1 %vm250_vm3, %v6018_v32  ;;  %v4787_v46 = vpop.permute.xlu0 %4786  ;;  %v4363_v47 = vpack.c.bf16 %v536_v45, %v530_v35  ;;  %633 = vmatprep.mubr.f32.mxu0 %v8179_v54  ;;  %v867_v35 = vsel %vm866_vm5, %v4753_v31, %v4748_v21 }
 0x12a   :  { %v4789_v30 = vunpack.i.h.bf16 %v4787_v46  ;;  %v4788_v48 = vunpack.i.l.bf16 %v4787_v46  ;;  %710 = vmatprep.mubr.f32.mxu1 %v8179_v54 }
 0x12b   :  { %4364 = vmatprep.subr.bf16.mxu0 %v4363_v47 }
 0x12c   :  { %v535_v49 = vsel %vm528_vm4, %v4789_v30, %v4778_v34  ;;  %v529_v50 = vsel %vm528_vm4, %v4788_v48, %v4733_v38 }
 0x12d   :  { %v519_v51 = vpop.permute.xlu0 %518  ;;  %v4365_v52 = vpack.c.bf16 %v535_v49, %v529_v50 }
 0x12e   :  { %v542_v53 = vsel %vm528_vm4, %v517_v13, %v519_v51  ;;  %v543_v44 = vsel %vm528_vm4, %v519_v51, %v521_v0 }
 0x12f   :  { %4366 = vmatpush1.bf16.msra.mxu0 %v4365_v52 }
 0x130   :  { %573 = vmatprep.subr.mxu0 %v542_v53 }
 0x131   :  { %v515_v32 = vpop.permute.xlu0 %514 }
 0x132   :  { %v541_v55 = vsel %vm528_vm4, %v515_v32, %v517_v13  ;;  %v6114_v13 = vpop.permute.xlu1 %4811 }
 0x133   :  { %574 = vmatpush1.msra.mxu0 %v541_v55  ;;  %v4813_v27 = vunpack.i.l.bf16 %v6114_v13  ;;  %v4814_v40 = vunpack.i.h.bf16 %v6114_v13 }
 0x134   :  { %4299 = vmatmul.mubr.msk.f32.vlgmr.msra.gmra.mrb[0].mxu0 %vm250_vm3, %v5898_v16 }
 0x135   :  { %v4792_v59 = vpop.permute.xlu0 %4791  ;;  %639 = vmatprep.mubr.f32.mxu0 %v8179_v54  ;;  %v876_v46 = vsel %vm866_vm5, %v4813_v27, %v4814_v40 }
 0x136   :  { %v4794_v60 = vunpack.i.h.bf16 %v4792_v59  ;;  %v4793_v61 = vunpack.i.l.bf16 %v4792_v59  ;;  %v857_v29 = vpop.permute.xlu1 %856 }
 0x138   :  { %v540_v2 = vsel %vm528_vm4, %v4793_v61, %v4794_v60  ;;  %4300 = vmatmul.mubr.msk.f32.gmra.mrb[2].mxu0 %vm250_vm3, %v5904_v17 }
 0x139   :  { %v4797_v37 = vpop.permute.xlu0 %4796  ;;  %v4371_v3 = vpack.c.bf16 %v540_v2, %v534_v1  ;;  %787 = vmatprep.mubr.f32.mxu0 %v8179_v54 }
 0x13a   :  { %v4799_v6 = vunpack.i.h.bf16 %v4797_v37  ;;  %v4798_v7 = vunpack.i.l.bf16 %v4797_v37  ;;  %v859_v47 = vpop.permute.xlu1 %858 }
 0x13b   :  { %4372 = vmatprep.subr.bf16.mxu0 %v4371_v3 }
 0x13c   :  { %v537_v39 = vsel %vm528_vm4, %v4779_v43, %v4798_v7  ;;  %v539_v11 = vsel %vm528_vm4, %v4799_v6, %v4793_v61  ;;  %v538_v5 = vsel %vm528_vm4, %v4798_v7, %v4799_v6 }
 0x13d   :  { %v523_v15 = vpop.permute.xlu0 %522  ;;  %v4367_v18 = vpack.c.bf16 %v538_v5, %v532_v12  ;;  %v4373_v14 = vpack.c.bf16 %v539_v11, %v533_v9  ;;  %v4369_v19 = vpack.c.bf16 %v537_v39, %v531_v8  ;;  %v6176_v11 = vld [vmem:[%s8171_s4] sm:$0xff]  ;;  %v6183_v12 = vld [vmem:[%s8171_s4 + $0x10] sm:$0xff]  ;;  %v41_v5 = vlaneseq }
 0x13e   :  { %v544_v22 = vsel %vm528_vm4, %v521_v0, %v523_v15  ;;  %v545_v26 = vsel %vm528_vm4, %v523_v15, %v525_v56  ;;  %v821_v32 = vpop.permute.xlu1 %820  ;;  %v881_v56 = vsel %vm866_vm5, %v857_v29, %v859_v47  ;;  %1402 = vrot.lane.b32.xlu1 %v6176_v11, %s5764_s2 }
 0x13f   :  { %4368 = vmatprep.subr.bf16.mxu1 %v4367_v18  ;;  %4374 = vmatpush1.bf16.msra.mxu0 %v4373_v14  ;;  %v6191_v13 = vshrl.u32 %v41_v5, 7  ;;  %v6199_v14 = vld [vmem:[%s8172_s1] sm:$0x3f] }
 0x140   :  { %4370 = vmatpush1.bf16.msra.mxu1 %v4369_v19  ;;  %727 = vmatprep.subr.mxu0 %v546_v10 }
 0x141   :  { %v4802_v23 = vpop.permute.xlu0 %4801  ;;  %650 = vmatprep.subr.mxu1 %v544_v22  ;;  %v43_v18 = vsub.s32 0, %v6191_v13  ;;  %v47_v10 = vsub.s32 1, %v6191_v13 }
 0x142   :  { %v4804_v24 = vunpack.i.h.bf16 %v4802_v23  ;;  %v4803_v25 = vunpack.i.l.bf16 %v4802_v23  ;;  %v4817_v57 = vpop.permute.xlu1 %4816  ;;  %1404 = vrot.lane.b32.xlu1 %v6183_v12, %s5764_s2 }
 0x143   :  { %728 = vmatpush1.msra.mxu0 %v545_v26  ;;  %v4819_v59 = vunpack.i.h.bf16 %v4817_v57  ;;  %v4818_v60 = vunpack.i.l.bf16 %v4817_v57  ;;  %v6205_v23 = vrot.slane %v6199_v14, %v43_v18  ;;  %v59_v18 = vsub.s32 4, %v6191_v13 }
 0x144   :  { %651 = vmatpush1.msra.mxu1 %v543_v44  ;;  %v874_v4 = vsel %vm866_vm5, %v4803_v25, %v4804_v24  ;;  %4303 = vmatmul.mubr.msk.f32.vlgmr.msra.gmra.mrb[4].mxu0 %vm250_vm3, %v5898_v16  ;;  %v875_v34 = vsel %vm866_vm5, %v4804_v24, %v4813_v27  ;;  %v51_v27 = vsub.s32 2, %v6191_v13 }
 0x145   :  { %v4807_v36 = vpop.permute.xlu0 %4806  ;;  %v4375_v38 = vpack.c.bf16 %v874_v4, %v868_v33  ;;  %793 = vmatprep.mubr.f32.mxu0 %v8179_v54  ;;  %4301 = vmatmul.mubr.msk.f32.vlgmr.msra.gmra.mrb[0].mxu1 %vm250_vm3, %v5898_v16  ;;  %v869_v16 = vsel %vm866_vm5, %v4749_v20, %v4754_v28  ;;  %v872_v0 = vsel %vm866_vm5, %v4818_v60, %v4819_v59 }
 0x146   :  { %v4809_v42 = vunpack.i.h.bf16 %v4807_v36  ;;  %v4808_v43 = vunpack.i.l.bf16 %v4807_v36  ;;  %716 = vmatprep.mubr.f32.mxu1 %v8179_v54  ;;  %v4381_v51 = vpack.c.bf16 %v875_v34, %v869_v16  ;;  %v863_v8 = vpop.permute.xlu1 %862 }
 0x147   :  { %4376 = vmatprep.subr.bf16.mxu0 %v4375_v38 }
 0x148   :  { %v873_v45 = vsel %vm866_vm5, %v4809_v42, %v4803_v25  ;;  %v870_v41 = vsel %vm866_vm5, %v4754_v28, %v4808_v43  ;;  %4304 = vmatmul.mubr.msk.f32.gmra.mrb[6].mxu0 %vm250_vm3, %v5904_v17  ;;  %v871_v1 = vsel %vm866_vm5, %v4808_v43, %v4818_v60  ;;  %v6208_v25 = vrot.slane %v6199_v14, %v47_v10 }
 0x149   :  { %v855_v30 = vpop.permute.xlu0 %854  ;;  %v4377_v48 = vpack.c.bf16 %v873_v45, %v867_v35  ;;  %v4379_v49 = vpack.c.bf16 %v876_v46, %v870_v41  ;;  %971 = vmatprep.mubr.f32.mxu0 %v8179_v54  ;;  %4302 = vmatmul.mubr.msk.f32.gmra.mrb[2].mxu1 %vm250_vm3, %v5904_v17  ;;  %v6220_v45 = vrot.slane %v6199_v14, %v51_v27  ;;  %v63_v10 = vsub.s32 5, %v6191_v13 }
 0x14a   :  { %v880_v50 = vsel %vm866_vm5, %v855_v30, %v857_v29  ;;  %1048 = vmatprep.mubr.f32.mxu1 %v8179_v54 }
 0x14b   :  { %4378 = vmatpush1.bf16.msra.mxu0 %v4377_v48  ;;  %4380 = vmatprep.subr.bf16.mxu1 %v4379_v49  ;;  %v6260_v27 = vrot.slane %v6199_v14, %v63_v10 }
 0x14c   :  { %911 = vmatprep.subr.mxu0 %v880_v50  ;;  %4382 = vmatpush1.bf16.msra.mxu1 %v4381_v51 }
 0x14d   :  { %v853_v52 = vpop.permute.xlu0 %852  ;;  %8211 = vst [vmem:[#allocation3_spill] sm:$0xff] %v6260_v27 }
 0x14e   :  { %v879_v53 = vsel %vm866_vm5, %v853_v52, %v855_v30 }
 0x14f   :  { %912 = vmatpush1.msra.mxu0 %v879_v53 }
 0x150   :  { %4305 = vmatmul.mubr.msk.f32.vlgmr.msra.gmra.mrb[0].mxu0 %vm250_vm3, %v821_v32 }
 0x151   :  { %v861_v55 = vpop.permute.xlu0 %860  ;;  %977 = vmatprep.mubr.f32.mxu0 %v8179_v54 }
 0x152   :  { %v882_v17 = vsel %vm866_vm5, %v859_v47, %v861_v55  ;;  %v883_v39 = vsel %vm866_vm5, %v861_v55, %v863_v8 }
 0x153   :  { %988 = vmatprep.subr.mxu1 %v882_v17 }
 0x154   :  { %989 = vmatpush1.msra.mxu1 %v881_v56 }
 0x155   :  { %v823_v58 = vpop.permute.xlu0 %822  ;;  %4307 = vmatmul.mubr.msk.f32.vlgmr.msra.gmra.mrb[0].mxu1 %vm250_vm3, %v821_v32 }
 0x156   :  { %4306 = vmatmul.mubr.msk.f32.gmra.mrb[2].mxu0 %vm250_vm3, %v823_v58  ;;  %1054 = vmatprep.mubr.f32.mxu1 %v8179_v54 }
 0x157   :  { %1125 = vmatprep.mubr.f32.mxu0 %v8179_v54 }
 0x158   :  { %v6193_v15 = vpop.permute.xlu1 %1152 }
 0x159   :  { %v4822_v61 = vpop.permute.xlu0 %4821  ;;  %4308 = vmatmul.mubr.msk.f32.gmra.mrb[2].mxu1 %vm250_vm3, %v823_v58 }
 0x15a   :  { %v4824_v62 = vunpack.i.h.bf16 %v4822_v61  ;;  %v4823_v63 = vunpack.i.l.bf16 %v4822_v61  ;;  %1631 = vmatprep.mubr.f32.mxu1 %v8179_v54 }
 0x15c   :  { %v877_v2 = vsel %vm866_vm5, %v4814_v40, %v4823_v63  ;;  %v878_v37 = vsel %vm866_vm5, %v4823_v63, %v4824_v62  ;;  %v55_v40 = vsub.s32 3, %v6191_v13 }
 0x15d   :  { %v865_v3 = vpop.permute.xlu0 %864  ;;  %v4383_v6 = vpack.c.bf16 %v878_v37, %v872_v0  ;;  %v4385_v7 = vpack.c.bf16 %v877_v2, %v871_v1 }
 0x15e   :  { %v884_v9 = vsel %vm866_vm5, %v863_v8, %v865_v3  ;;  %v6224_v47 = vrot.slane %v6199_v14, %v55_v40 }
 0x15f   :  { %4384 = vmatprep.subr.bf16.mxu0 %v4383_v6 }
 0x160   :  { %4386 = vmatpush1.bf16.msra.mxu0 %v4385_v7 }
 0x161   :  { %1065 = vmatprep.subr.mxu0 %v884_v9 }
 0x164   :  { %1066 = vmatpush1.msra.mxu0 %v883_v39 }
 0x165   :  { %4309 = vmatmul.mubr.msk.f32.vlgmr.msra.gmra.mrb[4].mxu0 %vm250_vm3, %v821_v32 }
 0x166   :  { %1131 = vmatprep.mubr.f32.mxu0 %v8179_v54 }
 0x169   :  { %4310 = vmatmul.mubr.msk.f32.gmra.mrb[6].mxu0 %vm250_vm3, %v823_v58 }
 0x16a   :  { %2176 = vmatprep.mubr.f32.mxu0 %v8179_v54 }
 0x16e   :  { %v6211_v29 = vpop.permute.xlu0 %1157 }
 0x223   :  { %v973_v19 = vpop.f32.mrb[0].mxu0 }
 0x224   :  { %v1160_v20 = vadd.f32 %v6193_v15, %v973_v19  ;;  %v975_v21 = vpop.f32.mrb[1].mxu0 }
 0x225   :  { %v1161_v22 = vadd.f32 %v6193_v15, %v975_v21 }
 0x226   :  { %v1172_v24 = vmul.f32 0.2, %v1160_v20 }
 0x227   :  { %v1173_v26 = vmul.f32 0.2, %v1161_v22 }
 0x228   :  { %v1184_v44 = vmax.f32 %v1160_v20, %v1172_v24  ;;  %v1050_v31 = vpop.f32.mrb[0].mxu1  ;;  %v6257_v24 = vrot.slane %v6199_v14, %v59_v18 }
 0x229   :  { %v1185_v33 = vmax.f32 %v1161_v22, %v1173_v26  ;;  %v1162_v4 = vadd.f32 %v6193_v15, %v1050_v31  ;;  %v979_v28 = vpop.f32.mrb[2].mxu0  ;;  %v1052_v36 = vpop.f32.mrb[1].mxu1 }
 0x22a   :  { %v1196_v38 = vmul.f32 %v1184_v44, %v6205_v23  ;;  %v1166_v42 = vadd.f32 %v6211_v29, %v979_v28  ;;  %v1163_v43 = vadd.f32 %v6193_v15, %v1052_v36  ;;  %v981_v34 = vpop.f32.mrb[3].mxu0 }
 0x22b   :  { %v1197_v35 = vmul.f32 %v1185_v33, %v6208_v25  ;;  %v1174_v41 = vmul.f32 0.2, %v1162_v4  ;;  %v1167_v46 = vadd.f32 %v6211_v29, %v981_v34 }
 0x22c   :  { %v1178_v16 = vmul.f32 0.2, %v1166_v42  ;;  %v1175_v30 = vmul.f32 0.2, %v1163_v43  ;;  %v1056_v48 = vpop.f32.mrb[2].mxu1 }
 0x22d   :  { %v1186_v49 = vmax.f32 %v1162_v4, %v1174_v41  ;;  %v1179_v50 = vmul.f32 0.2, %v1167_v46  ;;  %v1168_v51 = vadd.f32 %v6211_v29, %v1056_v48  ;;  %v1058_v52 = vpop.f32.mrb[3].mxu1  ;;  %v6227_v53 = vpack.i.bf16 %v1197_v35, %v1196_v38 }
 0x22e   :  { %v1190_v32 = vmax.f32 %v1166_v42, %v1178_v16  ;;  %v1187_v55 = vmax.f32 %v1163_v43, %v1175_v30  ;;  %v1169_v17 = vadd.f32 %v6211_v29, %v1058_v52 }
 0x22f   :  { %v1198_v56 = vmul.f32 %v1186_v49, %v6220_v45  ;;  %v1191_v57 = vmax.f32 %v1167_v46, %v1179_v50  ;;  %v1180_v58 = vmul.f32 0.2, %v1168_v51  ;;  %v6338_v50 = vpop.permute.xlu1 %4828 }
 0x230   :  { %v1202_v59 = vmul.f32 %v1190_v32, %v6205_v23  ;;  %v1199_v60 = vmul.f32 %v1187_v55, %v6224_v47  ;;  %v1181_v61 = vmul.f32 0.2, %v1169_v17 }
 0x231   :  { %v1203_v62 = vmul.f32 %v1191_v57, %v6208_v25  ;;  %v1192_v63 = vmax.f32 %v1168_v51, %v1180_v58  ;;  %v6234_v0 = vpack.i.bf16 %v1198_v56, %v1197_v35 }
 0x232   :  { %v1193_v1 = vmax.f32 %v1169_v17, %v1181_v61  ;;  %v6236_v2 = vpack.i.bf16 %v1199_v60, %v1198_v56  ;;  %v4887_v37 = vpack.i.bf16 %v1202_v59, %v1198_v56  ;;  %v6239_v6 = vpack.i.bf16 %v1202_v59, %v1196_v38 }
 0x233   :  { %v1204_v3 = vmul.f32 %v1192_v63, %v6220_v45  ;;  %v4922_v7 = vpack.i.bf16 %v1203_v62, %v1202_v59  ;;  %v4927_v9 = vpack.i.bf16 %v1203_v62, %v1199_v60  ;;  %v4834_v51 = vpop.permute.xlu1 %4833 }
 0x234   :  { %v1205_v8 = vmul.f32 %v1193_v1, %v6224_v47  ;;  %4848 = vrot.lane.b32.xlu1 %v6236_v2, %s5759_s0 }
 0x235   :  { %v6244_v39 = vpack.i.bf16 %v1204_v3, %v1203_v62 }
 0x236   :  { %v6246_v5 = vpack.i.bf16 %v1205_v8, %v1204_v3 }
 0x237   :  { %v6340_v52 = vpop.permute.xlu1 %1402 }
 0x238   :  { %4853 = vrot.lane.b32.xlu0 %v6246_v5, %s5758_s26  ;;  %4863 = vrot.lane.b32.xlu1 %v6227_v53, %s5758_s26  ;;  %v1127_v19 = vpop.f32.mrb[4].mxu0 }
 0x239   :  { %v1164_v20 = vadd.f32 %v6193_v15, %v1127_v19  ;;  %v1129_v21 = vpop.f32.mrb[5].mxu0 }
 0x23a   :  { %v1165_v22 = vadd.f32 %v6193_v15, %v1129_v21 }
 0x23b   :  { %v1176_v26 = vmul.f32 0.2, %v1164_v20  ;;  %v6344_v32 = vpop.permute.xlu1 %1404 }
 0x23c   :  { %v1177_v44 = vmul.f32 0.2, %v1165_v22  ;;  %4858 = vrot.lane.b32.xlu0 %v6246_v5, %s5759_s0  ;;  %4868 = vrot.lane.b32.xlu1 %v6227_v53, %s5757_s19  ;;  %v1133_v13 = vpop.f32.mrb[6].mxu0 }
 0x23d   :  { %v1188_v31 = vmax.f32 %v1164_v20, %v1176_v26  ;;  %v1170_v40 = vadd.f32 %v6211_v29, %v1133_v13  ;;  %v1135_v33 = vpop.f32.mrb[7].mxu0 }
 0x23e   :  { %v1189_v15 = vmax.f32 %v1165_v22, %v1177_v44  ;;  %v1171_v4 = vadd.f32 %v6211_v29, %v1135_v33 }
 0x23f   :  { %v1200_v28 = vmul.f32 %v1188_v31, %v6257_v24  ;;  %v1182_v36 = vmul.f32 0.2, %v1170_v40  ;;  %v4836_v31 = vunpack.i.h.bf16 %v4834_v51 }
 0x240   :  { %v1201_v14 = vmul.f32 %v1189_v15, %v6260_v27  ;;  %v1183_v38 = vmul.f32 0.2, %v1171_v4  ;;  %4873 = vrot.lane.b32.xlu0 %v6227_v53, %s5757_s19  ;;  %4888 = vrot.lane.b32.xlu1 %v4887_v37, %s5758_s26  ;;  %v4835_v15 = vunpack.i.l.bf16 %v4834_v51 }
 0x241   :  { %v1194_v42 = vmax.f32 %v1170_v40, %v1182_v36  ;;  %v6273_v43 = vpack.i.bf16 %v1200_v28, %v1199_v60 }
 0x242   :  { %v1195_v34 = vmax.f32 %v1171_v4, %v1183_v38  ;;  %v6275_v35 = vpack.i.bf16 %v1201_v14, %v1200_v28  ;;  %v6300_v48 = vpack.i.bf16 %v8179_v54, %v1201_v14 }
 0x243   :  { %v1206_v41 = vmul.f32 %v1194_v42, %v6257_v24 }
 0x244   :  { %v1207_v29 = vmul.f32 %v1195_v34, %v6260_v27  ;;  %4878 = vrot.lane.b32.xlu0 %v6227_v53, %s5759_s0  ;;  %4898 = vrot.lane.b32.xlu1 %v4887_v37, %s5757_s19 }
 0x245   :  { %v6282_v46 = vpack.i.bf16 %v1206_v41, %v1205_v8 }
 0x246   :  { %v4997_v16 = vpack.i.bf16 %v1207_v29, %v1201_v14  ;;  %v6284_v30 = vpack.i.bf16 %v1207_v29, %v1206_v41  ;;  %v6329_v49 = vpack.i.bf16 %v8179_v54, %v1207_v29 }
 0x248   :  { %4883 = vrot.lane.b32.xlu0 %v6234_v0, %s5758_s26  ;;  %4903 = vrot.lane.b32.xlu1 %v6239_v6, %s5758_s26 }
 0x24c   :  { %4893 = vrot.lane.b32.xlu0 %v4887_v37, %s5757_s19  ;;  %4913 = vrot.lane.b32.xlu1 %v6244_v39, %s5757_s19 }
 0x250   :  { %4923 = vrot.lane.b32.xlu1 %v4922_v7, %s5759_s0  ;;  %4908 = vrot.lane.b32.xlu0 %v6244_v39, %s5758_s26 }
 0x254   :  { %4928 = vrot.lane.b32.xlu1 %v4927_v9, %s5758_s26  ;;  %4918 = vrot.lane.b32.xlu0 %v6244_v39, %s5757_s19 }
 0x258   :  { %4933 = vrot.lane.b32.xlu0 %v6273_v43, %s5758_s26  ;;  %4948 = vrot.lane.b32.xlu1 %v6300_v48, %s5757_s19 }
 0x25c   :  { %4938 = vrot.lane.b32.xlu0 %v6273_v43, %s5757_s19  ;;  %4953 = vrot.lane.b32.xlu1 %v6275_v35, %s5758_s26 }
 0x260   :  { %4943 = vrot.lane.b32.xlu0 %v6273_v43, %s5757_s19  ;;  %4963 = vrot.lane.b32.xlu1 %v6282_v46, %s5758_s26 }
 0x264   :  { %4958 = vrot.lane.b32.xlu0 %v6275_v35, %s5759_s0  ;;  %4968 = vrot.lane.b32.xlu1 %v6282_v46, %s5757_s19 }
 0x268   :  { %4978 = vrot.lane.b32.xlu0 %v4922_v7, %s5761_s16  ;;  %4973 = vrot.lane.b32.xlu1 %v6227_v53, %s5761_s16  ;;  %v6342_v53 = vpop.permute.xlu0 %4838 }
 0x269   :  { %v4841_v29 = vunpack.i.h.bf16 %v6342_v53 }
 0x26c   :  { %4988 = vrot.lane.b32.xlu0 %v6236_v2, %s5761_s16  ;;  %4983 = vrot.lane.b32.xlu1 %v8179_v54, %s5761_s16  ;;  %v6346_v55 = vpop.permute.xlu0 %4843 }
 0x270   :  { %4993 = vrot.lane.b32.xlu1 %v6282_v46, %s5757_s19  ;;  %4998 = vrot.lane.b32.xlu0 %v4997_v16, %s5758_s26 }
 0x274   :  { %5018 = vrot.lane.b32.xlu1 %v6284_v30, %s5759_s0  ;;  %5003 = vrot.lane.b32.xlu0 %v6329_v49, %s5757_s19 }
 0x278   :  { %5008 = vrot.lane.b32.xlu0 %v4997_v16, %s5757_s19 }
 0x27c   :  { %5013 = vrot.lane.b32.xlu0 %v6284_v30, %s5758_s26 }
 0x2a6   :  { %v6348_v17 = vpop.permute.xlu1 %4848 }
 0x2aa   :  { %v6350_v56 = vpop.permute.xlu0 %4853  ;;  %v4864_v57 = vpop.permute.xlu1 %4863 }
 0x2ab   :  { %v4866_v60 = vunpack.i.h.bf16 %v4864_v57  ;;  %v6356_v61 = vunpack.i.l.bf16 %v4864_v57 }
 0x2ad   :  { %v1279_v2 = vsel %vm101_vm1, %v6356_v61, %v4866_v60 }
 0x2ae   :  { %v6352_v58 = vpop.permute.xlu0 %4858  ;;  %v6354_v59 = vpop.permute.xlu1 %4868 }
 0x2af   :  { %v4871_v40 = vunpack.i.h.bf16 %v6354_v59  ;;  %v4870_v33 = vunpack.i.l.bf16 %v6354_v59  ;;  %v8181_v16 = vunpack.i.l.bf16 %v6352_v58 }
 0x2b1   :  { %v6401_v51 = vsel %vm122_vm0, %v4870_v33, %v4871_v40 }
 0x2b2   :  { %v4874_v62 = vpop.permute.xlu0 %4873  ;;  %v6358_v63 = vpop.permute.xlu1 %4888 }
 0x2b3   :  { %v8185_v1 = vunpack.i.l.bf16 %v6358_v63  ;;  %v4876_v37 = vunpack.i.h.bf16 %v4874_v62  ;;  %v4875_v3 = vunpack.i.l.bf16 %v4874_v62  ;;  %v6375_v21 = vunpack.i.h.bf16 %v6358_v63 }
 0x2b5   :  { %v1280_v7 = vsel %vm101_vm1, %v4866_v60, %v8185_v1  ;;  %v1319_v10 = vsel %vm122_vm0, %v4875_v3, %v4876_v37  ;;  %v5042_v14 = vpack.i.bf16 %v6375_v21, %v6356_v61  ;;  %v1318_v57 = vsel %vm122_vm0, %v4835_v15, %v4875_v3 }
 0x2b6   :  { %v4879_v8 = vpop.permute.xlu0 %4878  ;;  %v6366_v9 = vpop.permute.xlu1 %4898  ;;  %v5022_v18 = vpack.i.bf16 %v1280_v7, %v1279_v2 }
 0x2b7   :  { %v8184_v19 = vunpack.i.l.bf16 %v6366_v9  ;;  %v8186_v22 = vunpack.i.h.bf16 %v6366_v9  ;;  %v4881_v59 = vunpack.i.h.bf16 %v4879_v8  ;;  %v4880_v60 = vunpack.i.l.bf16 %v4879_v8 }
 0x2b8   :  { %5023 = vrot.lane.b32.xlu1 %v5022_v18, %s5759_s0 }
 0x2b9   :  { %v1320_v20 = vsel %vm122_vm0, %v4876_v37, %v8184_v19  ;;  %v1324_v4 = vsel %vm122_vm0, %v4836_v31, %v8186_v22  ;;  %v4830_v19 = vunpack.i.l.bf16 %v6338_v50 }
 0x2ba   :  { %v6378_v26 = vpop.permute.xlu0 %4883  ;;  %v6380_v44 = vpop.permute.xlu1 %4903  ;;  %v5037_v13 = vpack.i.bf16 %v1320_v20, %v1319_v10  ;;  %v5057_v3 = vpack.i.bf16 %v1324_v4, %v1318_v57 }
 0x2bc   :  { %5038 = vrot.lane.b32.xlu1 %v5037_v13, %s5761_s16 }
 0x2be   :  { %v6388_v28 = vpop.permute.xlu0 %4893  ;;  %v6390_v36 = vpop.permute.xlu1 %4913 }
 0x2bf   :  { %v4896_v38 = vunpack.i.h.bf16 %v6388_v28  ;;  %v8187_v42 = vunpack.i.l.bf16 %v6388_v28  ;;  %v8183_v34 = vunpack.i.h.bf16 %v6390_v36  ;;  %v4915_v41 = vunpack.i.l.bf16 %v6390_v36 }
 0x2c0   :  { %5043 = vrot.lane.b32.xlu1 %v5042_v14, %s5759_s0  ;;  %v4840_v14 = vunpack.i.l.bf16 %v6342_v53 }
 0x2c1   :  { %v6408_v62 = vsel %vm122_vm0, %v4871_v40, %v8187_v42  ;;  %v6411_v2 = vsel %vm122_vm0, %v4896_v38, %v4915_v41  ;;  %v6416_v37 = vsel %vm122_vm0, %v4915_v41, %v8183_v34  ;;  %v8182_v41 = vunpack.i.l.bf16 %v6348_v17 }
 0x2c2   :  { %v4924_v7 = vpop.permute.xlu1 %4923  ;;  %v6418_v10 = vpop.permute.xlu0 %4908  ;;  %v5027_v8 = vpack.i.bf16 %v6408_v62, %v6401_v51  ;;  %v1490_v53 = vsel %vm213_vm2, %v4840_v14, %v4880_v60  ;;  %v5047_v1 = vpack.i.bf16 %v4896_v38, %v4870_v33 }
 0x2c3   :  { %v4926_v13 = vunpack.i.h.bf16 %v4924_v7  ;;  %v4925_v31 = vunpack.i.l.bf16 %v4924_v7  ;;  %v8189_v40 = vunpack.i.h.bf16 %v6418_v10  ;;  %v4910_v15 = vunpack.i.l.bf16 %v6418_v10 }
 0x2c4   :  { %5058 = vrot.lane.b32.xlu1 %v5057_v3, %s5761_s16  ;;  %5028 = vrot.lane.b32.xlu0 %v5027_v8, %s5759_s0  ;;  %v6439_v7 = vsel %vm213_vm2, %v4881_v59, %v8182_v41  ;;  %v5067_v8 = vpack.i.bf16 %v6416_v37, %v6411_v2  ;;  %v1491_v41 = vsel %vm213_vm2, %v4880_v60, %v4881_v59 }
 0x2c5   :  { %v6433_v4 = vsel %vm213_vm2, %v4926_v13, %v8181_v16  ;;  %v1496_v57 = vsel %vm213_vm2, %v4841_v29, %v4925_v31  ;;  %v1497_v3 = vsel %vm213_vm2, %v4925_v31, %v4926_v13  ;;  %v1285_v16 = vsel %vm101_vm1, %v6375_v21, %v4910_v15 }
 0x2c6   :  { %v6442_v54 = vpop.permute.xlu1 %4928  ;;  %v6444_v20 = vpop.permute.xlu0 %4918  ;;  %v1286_v29 = vsel %vm101_vm1, %v4910_v15, %v8189_v40  ;;  %v4389_v34 = vpack.c.bf16 %v1496_v57, %v1490_v53  ;;  %v4387_v14 = vpack.c.bf16 %v1497_v3, %v1491_v41  ;;  %v4831_v31 = vunpack.i.h.bf16 %v6338_v50 }
 0x2c7   :  { %v5072_v15 = vpack.i.bf16 %v1286_v29, %v1285_v16  ;;  %v8188_v16 = vunpack.i.h.bf16 %v6444_v20  ;;  %v8213_v29 = vunpack.i.h.bf16 %v6366_v9  ;;  %v8216_v40 = vunpack.i.h.bf16 %v6390_v36 }
 0x2c8   :  { %5068 = vrot.lane.b32.xlu1 %v5067_v8, %s5759_s0  ;;  %5033 = vrot.lane.b32.xlu0 %v5022_v18, %s5761_s16  ;;  %v1284_v59 = vsel %vm101_vm1, %v4831_v31, %v6375_v21  ;;  %v1278_v18 = vsel %vm101_vm1, %v4830_v19, %v6356_v61  ;;  %v4920_v21 = vunpack.i.l.bf16 %v6444_v20 }
 0x2c9   :  { %4388 = vmatprep.subr.bf16.mxu1 %v4387_v14  ;;  %v5052_v57 = vpack.i.bf16 %v1284_v59, %v1278_v18 }
 0x2ca   :  { %v4934_v22 = vpop.permute.xlu0 %4933  ;;  %v4949_v42 = vpop.permute.xlu1 %4948  ;;  %4390 = vmatpush1.bf16.msra.mxu1 %v4389_v34  ;;  %v1325_v14 = vsel %vm122_vm0, %v8213_v29, %v4920_v21 }
 0x2cb   :  { %v4951_v60 = vunpack.i.h.bf16 %v4949_v42  ;;  %v4950_v41 = vunpack.i.l.bf16 %v4949_v42  ;;  %v8212_v42 = vunpack.i.l.bf16 %v6388_v28  ;;  %v1326_v28 = vsel %vm122_vm0, %v4920_v21, %v8188_v16 }
 0x2cc   :  { %5073 = vrot.lane.b32.xlu1 %v5072_v15, %s5761_s16  ;;  %5048 = vrot.lane.b32.xlu0 %v5047_v1, %s5759_s0  ;;  %v4936_v31 = vunpack.i.h.bf16 %v4934_v22  ;;  %v4935_v59 = vunpack.i.l.bf16 %v4934_v22 }
 0x2cd   :  { %v1393_v50 = vsel %vm122_vm0, %v4950_v41, %v4951_v60 }
 0x2ce   :  { %v6468_v33 = vpack.i.bf16 %v4951_v60, %v1393_v50  ;;  %v4939_v38 = vpop.permute.xlu0 %4938  ;;  %v6494_v60 = vpop.permute.xlu1 %4953  ;;  %v1282_v21 = vsel %vm101_vm1, %v4935_v59, %v4936_v31 }
 0x2cf   :  { %v4941_v34 = vunpack.i.h.bf16 %v4939_v38  ;;  %v4940_v53 = vunpack.i.l.bf16 %v4939_v38  ;;  %v5077_v38 = vpack.i.bf16 %v1326_v28, %v1325_v14 }
 0x2d0   :  { %5053 = vrot.lane.b32.xlu0 %v5052_v57, %s5761_s16  ;;  %v8214_v57 = vunpack.i.l.bf16 %v6358_v63  ;;  %v8215_v63 = vunpack.i.l.bf16 %v6366_v9 }
 0x2d1   :  { %v6476_v1 = vsel %vm122_vm0, %v8212_v42, %v4940_v53  ;;  %v6479_v61 = vsel %vm122_vm0, %v4940_v53, %v4941_v34  ;;  %v6482_v19 = vsel %vm122_vm0, %v4941_v34, %v4950_v41 }
 0x2d2   :  { %v6484_v3 = vpop.permute.xlu0 %4943  ;;  %v5087_v8 = vpack.i.bf16 %v6479_v61, %v6476_v1  ;;  %v1281_v34 = vsel %vm101_vm1, %v8214_v57, %v4935_v59  ;;  %v4964_v22 = vpop.permute.xlu1 %4963 }
 0x2d3   :  { %v5082_v42 = vpack.i.bf16 %v1282_v21, %v1281_v34  ;;  %v4966_v9 = vunpack.i.h.bf16 %v4964_v22 }
 0x2d4   :  { %5088 = vrot.lane.b32.xlu1 %v5087_v8, %s5759_s0  ;;  %5063 = vrot.lane.b32.xlu0 %v5072_v15, %s5759_s0  ;;  %v8191_v15 = vunpack.i.h.bf16 %v6484_v3  ;;  %v4945_v8 = vunpack.i.l.bf16 %v6484_v3 }
 0x2d6   :  { %v6500_v18 = vpop.permute.xlu0 %4958  ;;  %v1321_v14 = vsel %vm122_vm0, %v8215_v63, %v4945_v8  ;;  %v1322_v28 = vsel %vm122_vm0, %v4945_v8, %v8191_v15  ;;  %v4969_v59 = vpop.permute.xlu1 %4968  ;;  %v4965_v63 = vunpack.i.l.bf16 %v4964_v22 }
 0x2d7   :  { %v5117_v57 = vpack.i.bf16 %v1322_v28, %v1321_v14  ;;  %v4971_v34 = vunpack.i.h.bf16 %v4969_v59  ;;  %v4970_v21 = vunpack.i.l.bf16 %v4969_v59 }
 0x2d8   :  { %5078 = vrot.lane.b32.xlu0 %v5077_v38, %s5761_s16 }
 0x2d9   :  { %v6528_v8 = vsel %vm122_vm0, %v8216_v40, %v4970_v21  ;;  %v1288_v40 = vsel %vm101_vm1, %v4965_v63, %v4966_v9 }
 0x2da   :  { %v6507_v53 = vpop.permute.xlu0 %4978  ;;  %v6544_v14 = vpop.permute.xlu1 %4973 }
 0x2dc   :  { %5083 = vrot.lane.b32.xlu0 %v5082_v42, %s5759_s0 }
 0x2de   :  { %v6512_v29 = vpop.permute.xlu0 %4988 }
 0x2e0   :  { %5113 = vrot.lane.b32.xlu0 %v5082_v42, %s5761_s16  ;;  %v6531_v42 = vsel %vm122_vm0, %v4970_v21, %v4971_v34  ;;  %v4931_v21 = vunpack.i.h.bf16 %v6442_v54 }
 0x2e2   :  { %v4999_v38 = vpop.permute.xlu0 %4998 }
 0x2e3   :  { %v5000_v13 = vunpack.i.l.bf16 %v4999_v38  ;;  %v5001_v22 = vunpack.i.h.bf16 %v4999_v38  ;;  %v6556_v38 = vpop.permute.xlu1 %4983 }
 0x2e4   :  { %5118 = vrot.lane.b32.xlu0 %v5117_v57, %s5761_s16 }
 0x2e5   :  { %v1283_v41 = vsel %vm101_vm1, %v4936_v31, %v5000_v13  ;;  %v5097_v31 = vpack.i.bf16 %v1393_v50, %v6482_v19  ;;  %v1289_v59 = vsel %vm101_vm1, %v4966_v9, %v5001_v22 }
 0x2e6   :  { %v6523_v16 = vpack.i.bf16 %v5000_v13, %v1283_v41  ;;  %v5132_v13 = vpack.i.bf16 %v6531_v42, %v6528_v8  ;;  %v8217_v41 = vunpack.i.h.bf16 %v6418_v10  ;;  %v6546_v28 = vpop.permute.xlu0 %5003  ;;  %v5157_v57 = vpack.i.bf16 %v5001_v22, %v1289_v59 }
 0x2e7   :  { %v8190_v50 = vunpack.i.h.bf16 %v6546_v28  ;;  %v5005_v10 = vunpack.i.l.bf16 %v6546_v28  ;;  %v4994_v59 = vpop.permute.xlu1 %4993 }
 0x2e8   :  { %5123 = vrot.lane.b32.xlu0 %v6234_v0, %s5762_s17  ;;  %5093 = vrot.lane.b32.xlu1 %v6523_v16, %s5759_s0  ;;  %v1287_v36 = vsel %vm101_vm1, %v8217_v41, %v4965_v63  ;;  %v8192_v63 = vunpack.i.l.bf16 %v6442_v54  ;;  %v4886_v41 = vunpack.i.h.bf16 %v6378_v26  ;;  %v4995_v15 = vunpack.i.l.bf16 %v4994_v59 }
 0x2e9   :  { %v5102_v0 = vpack.i.bf16 %v1288_v40, %v1287_v36  ;;  %v6563_v9 = vsel %vm122_vm0, %v5005_v10, %v8190_v50  ;;  %v4885_v36 = vunpack.i.l.bf16 %v6378_v26  ;;  %v4996_v50 = vunpack.i.h.bf16 %v4994_v59 }
 0x2ec   :  { %5133 = vrot.lane.b32.xlu0 %v5132_v13, %s5759_s0  ;;  %5098 = vrot.lane.b32.xlu1 %v5097_v31, %s5759_s0  ;;  %v6566_v13 = vsel %vm122_vm0, %v4971_v34, %v5005_v10  ;;  %v4855_v31 = vunpack.i.l.bf16 %v6350_v56  ;;  %v2219_v34 = vsel %vm101_vm1, %v4886_v41, %v8192_v63  ;;  %v8218_v63 = vunpack.i.h.bf16 %v6444_v20 }
 0x2ed   :  { %v5162_v40 = vpack.i.bf16 %v6563_v9, %v6566_v13 }
 0x2ee   :  { %v2224_v22 = vsel %vm101_vm1, %v4931_v21, %v4855_v31  ;;  %v1327_v27 = vsel %vm122_vm0, %v8218_v63, %v4995_v15 }
 0x2f0   :  { %5138 = vrot.lane.b32.xlu0 %v6239_v6, %s5762_s17  ;;  %5103 = vrot.lane.b32.xlu1 %v5102_v0, %s5759_s0  ;;  %v4856_v6 = vunpack.i.h.bf16 %v6350_v56  ;;  %v2218_v56 = vsel %vm101_vm1, %v4885_v36, %v4886_v41  ;;  %v5187_v41 = vpack.i.bf16 %v6476_v1, %v6408_v62  ;;  %v4955_v1 = vunpack.i.l.bf16 %v6494_v60 }
 0x2f1   :  { %v5142_v10 = vpack.i.bf16 %v2219_v34, %v2218_v56  ;;  %v5267_v56 = vpack.i.bf16 %v6566_v13, %v6531_v42  ;;  %v8223_v42 = vunpack.i.h.bf16 %v6546_v28  ;;  %v1220_v28 = vld [vmem:[%s8173_s5] sm:$0xff] }
 0x2f3   :  { %v5277_v13 = vpack.i.bf16 %v8223_v42, %v6563_v9 }
 0x2f4   :  { %5158 = vrot.lane.b32.xlu0 %v5157_v57, %s5759_s0  ;;  %5108 = vrot.lane.b32.xlu1 %v6246_v5, %s5761_s16  ;;  %v2225_v5 = vsel %vm101_vm1, %v4855_v31, %v4856_v6  ;;  %v4905_v31 = vunpack.i.l.bf16 %v6380_v44 }
 0x2f5   :  { %v5167_v26 = vpack.i.bf16 %v2225_v5, %v2224_v22 }
 0x2f6   :  { %v2217_v20 = vsel %vm101_vm1, %v4905_v31, %v4885_v36 }
 0x2f8   :  { %5163 = vrot.lane.b32.xlu0 %v5162_v40, %s5759_s0  ;;  %5128 = vrot.lane.b32.xlu1 %v6244_v39, %s5762_s17  ;;  %v1328_v40 = vsel %vm122_vm0, %v4995_v15, %v4996_v50  ;;  %v4906_v39 = vunpack.i.h.bf16 %v6380_v44  ;;  %v5192_v44 = vpack.i.bf16 %v6528_v8, %v6416_v37  ;;  %v4956_v37 = vunpack.i.h.bf16 %v6494_v60 }
 0x2f9   :  { %v5152_v22 = vpack.i.bf16 %v1328_v40, %v1327_v27  ;;  %v2230_v27 = vld [vmem:[%s8171_s4 + $0x8] sm:$0xff]  ;;  %v8222_v40 = vpack.i.bf16 %v6482_v19, %v6479_v61 }
 0x2fa   :  { %v2223_v34 = vsel %vm101_vm1, %v4906_v39, %v4931_v21  ;;  %v2221_v60 = vsel %vm101_vm1, %v4955_v1, %v4956_v37  ;;  %v4845_v39 = vunpack.i.l.bf16 %v6346_v55 }
 0x2fb   :  { %v5172_v15 = vpack.i.bf16 %v2223_v34, %v2217_v20 }
 0x2fc   :  { %5168 = vrot.lane.b32.xlu0 %v5167_v26, %s5762_s17  ;;  %5143 = vrot.lane.b32.xlu1 %v5142_v10, %s5762_s17  ;;  %v2222_v31 = vsel %vm101_vm1, %v4956_v37, %v4845_v39 }
 0x2fd   :  { %v5242_v61 = vpack.i.bf16 %v4845_v39, %v2222_v31  ;;  %v8225_v39 = vunpack.i.l.bf16 %v6348_v17 }
 0x300   :  { %5178 = vrot.lane.b32.xlu0 %v6275_v35, %s5761_s16  ;;  %5148 = vrot.lane.b32.xlu1 %v5102_v0, %s5761_s16  ;;  %v8219_v35 = vpack.i.bf16 %v6411_v2, %v6401_v51  ;;  %v5009_v51 = vpop.permute.xlu0 %5008 }
 0x301   :  { %v5010_v62 = vunpack.i.l.bf16 %v5009_v51 }
 0x304   :  { %5188 = vrot.lane.b32.xlu0 %v5187_v41, %s5762_s17  ;;  %5153 = vrot.lane.b32.xlu1 %v5152_v22, %s5761_s16  ;;  %v5014_v2 = vpop.permute.xlu0 %5013 }
 0x305   :  { %v5016_v0 = vunpack.i.h.bf16 %v5014_v2  ;;  %v5015_v21 = vunpack.i.l.bf16 %v5014_v2 }
 0x308   :  { %5198 = vrot.lane.b32.xlu0 %v8219_v35, %s5762_s17  ;;  %5173 = vrot.lane.b32.xlu1 %v5172_v15, %s5762_s17 }
 0x30c   :  { %5213 = vrot.lane.b32.xlu0 %v6282_v46, %s5762_s17  ;;  %5183 = vrot.lane.b32.xlu1 %v6284_v30, %s5761_s16  ;;  %v2232_v46 = vld [vmem:[%s8171_s4 + $0x18] sm:$0xff]  ;;  %v5011_v30 = vunpack.i.h.bf16 %v5009_v51 }
 0x310   :  { %2239 = vrot.lane.b32.xlu0 %v2230_v27, %s5766_s30  ;;  %5193 = vrot.lane.b32.xlu1 %v5192_v44, %s5762_s17 }
 0x314   :  { %5233 = vrot.lane.b32.xlu0 %v6329_v49, %s5762_s17  ;;  %5203 = vrot.lane.b32.xlu1 %v6523_v16, %s5761_s16  ;;  %v1329_v49 = vsel %vm122_vm0, %v4996_v50, %v5011_v30  ;;  %v8220_v16 = vunpack.i.h.bf16 %v6484_v3  ;;  %v2226_v50 = vsel %vm101_vm1, %v4856_v6, %v5015_v21  ;;  %v2227_v3 = vsel %vm101_vm1, %v5015_v21, %v5016_v0 }
 0x315   :  { %v5257_v63 = vpack.i.bf16 %v5011_v30, %v1329_v49 }
 0x316   :  { %v1323_v8 = vsel %vm122_vm0, %v8220_v16, %v5010_v62 }
 0x317   :  { %v5217_v36 = vpack.i.bf16 %v5010_v62, %v1323_v8 }
 0x318   :  { %2243 = vrot.lane.b32.xlu0 %v2232_v46, %s5766_s30  ;;  %5208 = vrot.lane.b32.xlu1 %v6273_v43, %s5762_s17  ;;  %v8221_v43 = vunpack.i.l.bf16 %v6442_v54  ;;  %v4846_v54 = vunpack.i.h.bf16 %v6346_v55 }
 0x31a   :  { %v2220_v59 = vsel %vm101_vm1, %v8221_v43, %v4955_v1  ;;  %v2228_v6 = vsel %vm101_vm1, %v5016_v0, %v4846_v54  ;;  %v4861_v1 = vunpack.i.h.bf16 %v6352_v58 }
 0x31b   :  { %v5222_v5 = vpack.i.bf16 %v2221_v60, %v2220_v59  ;;  %v5272_v10 = vpack.i.bf16 %v4846_v54, %v2228_v6 }
 0x31c   :  { %5253 = vrot.lane.b32.xlu0 %v5157_v57, %s5761_s16  ;;  %2237 = vrot.lane.b32.xlu1 %v6176_v11, %s5766_s30  ;;  %v5262_v57 = vpack.i.bf16 %v2227_v3, %v2226_v50  ;;  %v6649_v11 = vpop.permute.xlu1 %5018  ;;  %v4851_v50 = vunpack.i.h.bf16 %v6348_v17 }
 0x31e   :  { %v1493_v42 = vsel %vm213_vm2, %v8225_v39, %v4851_v50 }
 0x320   :  { %5258 = vrot.lane.b32.xlu0 %v5257_v63, %s5761_s16  ;;  %5218 = vrot.lane.b32.xlu1 %v5217_v36, %s5761_s16 }
 0x324   :  { %5263 = vrot.lane.b32.xlu0 %v5262_v57, %s5762_s17  ;;  %5223 = vrot.lane.b32.xlu1 %v5222_v5, %s5762_s17 }
 0x328   :  { %5268 = vrot.lane.b32.xlu0 %v5267_v56, %s5762_s17  ;;  %5228 = vrot.lane.b32.xlu1 %v6300_v48, %s5762_s17  ;;  %v1221_v48 = vld [vmem:[%s8173_s5 + $0x8] sm:$0xff]  ;;  %v8224_v56 = vunpack.i.l.bf16 %v6352_v58  ;;  %v4975_v58 = vunpack.i.l.bf16 %v6544_v14 }
 0x32a   :  { %v6657_v26 = vpop.permute.xlu1 %5023  ;;  %v1499_v6 = vsel %vm213_vm2, %v8224_v56, %v4861_v1 }
 0x32b   :  { %v5026_v15 = vunpack.i.h.bf16 %v6657_v26  ;;  %v5025_v35 = vunpack.i.l.bf16 %v6657_v26  ;;  %v4961_v26 = vunpack.i.h.bf16 %v6500_v18 }
 0x32c   :  { %5273 = vrot.lane.b32.xlu0 %v5272_v10, %s5762_s17  ;;  %5238 = vrot.lane.b32.xlu1 %v8222_v40, %s5762_s17 }
 0x32d   :  { %v1503_v8 = vsel %vm213_vm2, %v5025_v35, %v5026_v15 }
 0x32e   :  { %v6669_v41 = vpop.permute.xlu1 %5038 }
 0x330   :  { %5278 = vrot.lane.b32.xlu0 %v5277_v13, %s5762_s17  ;;  %2241 = vrot.lane.b32.xlu1 %v6183_v12, %s5766_s30  ;;  %v4399_v13 = vpack.c.bf16 %v1499_v6, %v1493_v42 }
 0x332   :  { %v5044_v55 = vpop.permute.xlu1 %5043 }
 0x333   :  { %v5045_v27 = vunpack.i.l.bf16 %v5044_v55  ;;  %v5046_v51 = vunpack.i.h.bf16 %v5044_v55  ;;  %v8227_v55 = vmov 0.0  }
 0x334   :  { %2658 = vperm.xlu0 %4826, %v1221_v48   ;;  %5243 = vrot.lane.b32.xlu1 %v5242_v61, %s5762_s17  ;;  %v8226_v61 = vpack.c.bf16 %v6433_v4, %v6439_v7 }
 0x335   :  { %v1502_v0 = vsel %vm213_vm2, %v5045_v27, %v5025_v35 }
 0x336   :  { %v6678_v19 = vpop.permute.xlu0 %5028  ;;  %v6687_v12 = vpop.permute.xlu1 %5058 }
 0x337   :  { %v5031_v30 = vunpack.i.h.bf16 %v6678_v19  ;;  %v5030_v62 = vunpack.i.l.bf16 %v6678_v19 }
 0x338   :  { %5248 = vrot.lane.b32.xlu1 %v6468_v33, %s5762_s17 }
 0x339   :  { %v1515_v3 = vsel %vm213_vm2, %v5030_v62, %v5031_v30 }
 0x33a   :  { %v6685_v9 = vpop.permute.xlu0 %5033  ;;  %v6689_v34 = vpop.permute.xlu1 %5068 }
 0x33b   :  { %v5071_v33 = vunpack.i.h.bf16 %v6689_v34  ;;  %v5070_v44 = vunpack.i.l.bf16 %v6689_v34 }
 0x33c   :  { %2653 = vperm.xlu1 %4825, %v1220_v28  }
 0x33d   :  { %v1521_v36 = vsel %vm213_vm2, %v5070_v44, %v5071_v33 }
 0x33e   :  { %v5049_v22 = vpop.permute.xlu0 %5048  ;;  %v4395_v54 = vpack.c.bf16 %v1521_v36, %v1515_v3  ;;  %v6729_v31 = vpop.permute.xlu1 %5073  ;;  %v5020_v36 = vunpack.i.l.bf16 %v6649_v11 }
 0x33f   :  { %v5051_v49 = vunpack.i.h.bf16 %v5049_v22  ;;  %v5050_v16 = vunpack.i.l.bf16 %v5049_v22 }
 0x341   :  { %v1520_v57 = vsel %vm213_vm2, %v5051_v49, %v5070_v44  ;;  %v1514_v5 = vsel %vm213_vm2, %v5050_v16, %v5030_v62 }
 0x342   :  { %v6691_v20 = vpop.permute.xlu0 %5053  ;;  %v4397_v40 = vpack.c.bf16 %v1520_v57, %v1514_v5 }
 0x346   :  { %v5064_v46 = vpop.permute.xlu0 %5063  ;;  %v6739_v28 = vpop.permute.xlu1 %5088 }
 0x347   :  { %v5066_v2 = vunpack.i.h.bf16 %v5064_v46  ;;  %v5065_v37 = vunpack.i.l.bf16 %v5064_v46  ;;  %v5091_v16 = vunpack.i.h.bf16 %v6739_v28 }
 0x349   :  { %v1508_v21 = vsel %vm213_vm2, %v5046_v51, %v5065_v37  ;;  %v1509_v63 = vsel %vm213_vm2, %v5065_v37, %v5066_v2 }
 0x34a   :  { %v6709_v43 = vpop.permute.xlu0 %5078  ;;  %v4391_v59 = vpack.c.bf16 %v1509_v63, %v1503_v8  ;;  %v4393_v60 = vpack.c.bf16 %v1508_v21, %v1502_v0  ;;  %v5090_v8 = vunpack.i.l.bf16 %v6739_v28  ;;  %v5021_v63 = vunpack.i.h.bf16 %v6649_v11 }
 0x34c   :  { %4392 = vmatprep.subr.bf16.mxu1 %v4391_v59 }
 0x34d   :  { %4394 = vmatpush1.bf16.msra.mxu1 %v4393_v60 }
 0x34e   :  { %v6722_v10 = vpop.permute.xlu0 %5083  ;;  %4396 = vmatprep.subr.bf16.mxu1 %v4395_v54 }
 0x34f   :  { %v5085_v4 = vunpack.i.l.bf16 %v6722_v10  ;;  %v5086_v7 = vunpack.i.h.bf16 %v6722_v10 }
 0x351   :  { %4398 = vmatpush1.bf16.msra.mxu1 %v4397_v40  ;;  %v1504_v59 = vsel %vm213_vm2, %v5026_v15, %v5085_v4  ;;  %v1505_v3 = vsel %vm213_vm2, %v5085_v4, %v5086_v7  ;;  %v4960_v15 = vunpack.i.l.bf16 %v6500_v18  ;;  %v1516_v4 = vsel %vm213_vm2, %v5031_v30, %v5090_v8 }
 0x352   :  { %v6731_v48 = vpop.permute.xlu0 %5113  ;;  %4400 = vmatprep.subr.bf16.mxu1 %v4399_v13 }
 0x353   :  { %v1494_v19 = vsel %vm213_vm2, %v4851_v50, %v4960_v15 }
 0x354   :  { %4311 = vmatmul.mubr.msk.f32.vlgmr.msra.gmra.mrb[4].mxu1 %vm1562_vm6, %v6340_v52 }
 0x355   :  { %4402 = vmatpush1.bf16.msra.mxu1 %v8226_v61  ;;  %1637 = vmatprep.mubr.f32.mxu1 %v8227_v55  ;;  %v1501_v61 = vsel %vm213_vm2, %v5020_v36, %v5021_v63 }
 0x356   :  { %v6741_v22 = vpop.permute.xlu0 %5118 }
 0x358   :  { %4312 = vmatmul.mubr.msk.f32.gmra.mrb[6].mxu1 %vm1562_vm6, %v6344_v32 }
 0x359   :  { %1708 = vmatprep.mubr.f32.mxu1 %v8227_v55 }
 0x35a   :  { %v6746_v35 = vpop.permute.xlu0 %5123  ;;  %v6748_v27 = vpop.permute.xlu1 %5093 }
 0x35b   :  { %v5095_v34 = vunpack.i.l.bf16 %v6748_v27 }
 0x35e   :  { %v6750_v44 = vpop.permute.xlu0 %5133  ;;  %v6752_v51 = vpop.permute.xlu1 %5098 }
 0x35f   :  { %v5136_v46 = vunpack.i.h.bf16 %v6750_v44  ;;  %v5135_v62 = vunpack.i.l.bf16 %v6750_v44  ;;  %v5101_v17 = vunpack.i.h.bf16 %v6752_v51  ;;  %v5100_v50 = vunpack.i.l.bf16 %v6752_v51 }
 0x361   :  { %v1523_v5 = vsel %vm213_vm2, %v5135_v62, %v5136_v46  ;;  %v1522_v40 = vsel %vm213_vm2, %v5071_v33, %v5135_v62  ;;  %v1495_v62 = vsel %vm213_vm2, %v4960_v15, %v4961_v26  ;;  %v1506_v15 = vsel %vm213_vm2, %v5086_v7, %v5095_v34 }
 0x362   :  { %v6758_v37 = vpop.permute.xlu0 %5138  ;;  %v5104_v49 = vpop.permute.xlu1 %5103  ;;  %v4409_v33 = vpack.c.bf16 %v1522_v40, %v1516_v4  ;;  %v4411_v63 = vpack.c.bf16 %v1501_v61, %v1495_v62  ;;  %v1519_v7 = vsel %vm213_vm2, %v5100_v50, %v5101_v17  ;;  %v5075_v61 = vunpack.i.l.bf16 %v6729_v31 }
 0x363   :  { %v5106_v0 = vunpack.i.h.bf16 %v5104_v49  ;;  %v5105_v21 = vunpack.i.l.bf16 %v5104_v49  ;;  %v5040_v17 = vunpack.i.l.bf16 %v6669_v41 }
 0x365   :  { %v1510_v60 = vsel %vm213_vm2, %v5066_v2, %v5105_v21  ;;  %v1511_v57 = vsel %vm213_vm2, %v5105_v21, %v5106_v0  ;;  %v1517_v2 = vsel %vm213_vm2, %v5090_v8, %v5091_v16  ;;  %v5096_v21 = vunpack.i.h.bf16 %v6748_v27 }
 0x366   :  { %v5159_v54 = vpop.permute.xlu0 %5158  ;;  %v6775_v56 = vpop.permute.xlu1 %5108  ;;  %v4403_v11 = vpack.c.bf16 %v1511_v57, %v1505_v3  ;;  %v4405_v6 = vpack.c.bf16 %v1510_v60, %v1504_v59  ;;  %v4407_v39 = vpack.c.bf16 %v1523_v5, %v1517_v2  ;;  %v1500_v59 = vsel %vm213_vm2, %v4861_v1, %v5020_v36 }
 0x367   :  { %v5161_v42 = vunpack.i.h.bf16 %v5159_v54  ;;  %v5160_v13 = vunpack.i.l.bf16 %v5159_v54  ;;  %v4981_v3 = vunpack.i.h.bf16 %v6507_v53  ;;  %v4980_v27 = vunpack.i.l.bf16 %v6507_v53 }
 0x368   :  { %4404 = vmatprep.subr.bf16.mxu1 %v4403_v11  ;;  %v4976_v57 = vunpack.i.h.bf16 %v6544_v14  ;;  %v4413_v36 = vpack.c.bf16 %v1500_v59, %v1494_v19  ;;  %v1507_v54 = vsel %vm213_vm2, %v5095_v34, %v5096_v21  ;;  %v5035_v21 = vunpack.i.l.bf16 %v6685_v9 }
 0x369   :  { %4406 = vmatpush1.bf16.msra.mxu1 %v4405_v6  ;;  %v1513_v60 = vsel %vm213_vm2, %v5160_v13, %v5161_v42  ;;  %v1512_v11 = vsel %vm213_vm2, %v5106_v0, %v5160_v13  ;;  %v1889_v40 = vsel %vm528_vm4, %v4980_v27, %v4981_v3  ;;  %v4985_v42 = vunpack.i.l.bf16 %v6556_v38 }
 0x36a   :  { %v5164_v18 = vpop.permute.xlu0 %5163  ;;  %v6789_v49 = vpop.permute.xlu1 %5128  ;;  %4408 = vmatprep.subr.bf16.mxu1 %v4407_v39  ;;  %v4415_v6 = vpack.c.bf16 %v1513_v60, %v1507_v54  ;;  %v1883_v0 = vsel %vm528_vm4, %v4975_v58, %v4976_v57  ;;  %v4986_v39 = vunpack.i.h.bf16 %v6556_v38  ;;  %v4417_v10 = vpack.c.bf16 %v1512_v11, %v1506_v15 }
 0x36b   :  { %v5166_v30 = vunpack.i.h.bf16 %v5164_v18  ;;  %v5165_v8 = vunpack.i.l.bf16 %v5164_v18  ;;  %v5076_v13 = vunpack.i.h.bf16 %v6729_v31  ;;  %v5036_v38 = vunpack.i.h.bf16 %v6685_v9 }
 0x36c   :  { %v1518_v34 = vsel %vm213_vm2, %v5091_v16, %v5100_v50  ;;  %v4423_v59 = vpack.c.bf16 %v1889_v40, %v1883_v0  ;;  %v1882_v19 = vsel %vm528_vm4, %v4985_v42, %v4975_v58  ;;  %v5081_v16 = vunpack.i.h.bf16 %v6709_v43 }
 0x36d   :  { %4410 = vmatpush1.bf16.msra.mxu1 %v4409_v33  ;;  %v1525_v26 = vsel %vm213_vm2, %v5165_v8, %v5166_v30  ;;  %v1524_v4 = vsel %vm213_vm2, %v5136_v46, %v5165_v8  ;;  %v5056_v46 = vunpack.i.h.bf16 %v6691_v20  ;;  %v5055_v30 = vunpack.i.l.bf16 %v6691_v20 }
 0x36e   :  { %v6805_v5 = vpop.permute.xlu0 %5168  ;;  %v6807_v1 = vpop.permute.xlu1 %5143  ;;  %4412 = vmatprep.subr.bf16.mxu1 %v4411_v63  ;;  %v4419_v18 = vpack.c.bf16 %v1525_v26, %v1519_v7  ;;  %v4421_v62 = vpack.c.bf16 %v1524_v4, %v1518_v34  ;;  %v1888_v63 = vsel %vm528_vm4, %v4986_v39, %v4980_v27  ;;  %v1901_v28 = vsel %vm528_vm4, %v5075_v61, %v5076_v13 }
 0x36f   :  { %v5080_v8 = vunpack.i.l.bf16 %v6709_v43  ;;  %v5041_v60 = vunpack.i.h.bf16 %v6669_v41  ;;  %v5060_v50 = vunpack.i.l.bf16 %v6687_v12  ;;  %v1895_v20 = vsel %vm528_vm4, %v5035_v21, %v5036_v38 }
 0x370   :  { %4313 = vmatmul.mubr.msk.f32.vlgmr.msra.gmra.mrb[8].mxu1 %vm1562_vm6, %v6340_v52  ;;  %v4425_v54 = vpack.c.bf16 %v1888_v63, %v1882_v19  ;;  %v4427_v11 = vpack.c.bf16 %v1901_v28, %v1895_v20  ;;  %v5111_v26 = vunpack.i.h.bf16 %v6775_v56  ;;  %v5110_v15 = vunpack.i.l.bf16 %v6775_v56 }
 0x371   :  { %4414 = vmatpush1.bf16.msra.mxu1 %v4413_v36  ;;  %1714 = vmatprep.mubr.f32.mxu1 %v8227_v55  ;;  %v1900_v36 = vsel %vm528_vm4, %v5056_v46, %v5075_v61  ;;  %v5061_v40 = vunpack.i.h.bf16 %v6687_v12  ;;  %v1913_v42 = vsel %vm528_vm4, %v5080_v8, %v5081_v16  ;;  %v4990_v56 = vunpack.i.l.bf16 %v6512_v29 }
 0x372   :  { %v6820_v2 = vpop.permute.xlu0 %5178  ;;  %v6822_v51 = vpop.permute.xlu1 %5148  ;;  %4416 = vmatprep.subr.bf16.mxu1 %v4415_v6  ;;  %v1894_v6 = vsel %vm528_vm4, %v5055_v30, %v5035_v21  ;;  %v1906_v7 = vsel %vm528_vm4, %v5060_v50, %v5040_v17  ;;  %v1907_v12 = vsel %vm528_vm4, %v5040_v17, %v5041_v60  ;;  %v5116_v28 = vunpack.i.h.bf16 %v6731_v48 }
 0x373   :  { %v5180_v0 = vunpack.i.l.bf16 %v6820_v2  ;;  %v5181_v39 = vunpack.i.h.bf16 %v6820_v2  ;;  %v1912_v2 = vsel %vm528_vm4, %v5061_v40, %v5080_v8  ;;  %v4429_v21 = vpack.c.bf16 %v1900_v36, %v1894_v6 }
 0x374   :  { %4314 = vmatmul.mubr.msk.f32.gmra.mrb[10].mxu1 %vm1562_vm6, %v6344_v32  ;;  %v5151_v46 = vunpack.i.h.bf16 %v6822_v51  ;;  %v5115_v8 = vunpack.i.l.bf16 %v6731_v48  ;;  %v4433_v36 = vpack.c.bf16 %v1912_v2, %v1906_v7  ;;  %v5121_v53 = vunpack.i.h.bf16 %v6741_v22 }
 0x375   :  { %4418 = vmatpush1.bf16.msra.mxu1 %v4417_v10  ;;  %1785 = vmatprep.mubr.f32.mxu1 %v8227_v55  ;;  %v4991_v10 = vunpack.i.h.bf16 %v6512_v29  ;;  %v4431_v29 = vpack.c.bf16 %v1913_v42, %v1907_v12  ;;  %v1887_v19 = vsel %vm528_vm4, %v5180_v0, %v5181_v39  ;;  %v5130_v7 = vunpack.i.l.bf16 %v6789_v49 }
 0x376   :  { %v6846_v33 = vpop.permute.xlu0 %5188  ;;  %v6848_v44 = vpop.permute.xlu1 %5153  ;;  %4420 = vmatprep.subr.bf16.mxu1 %v4419_v18  ;;  %v5141_v12 = vunpack.i.h.bf16 %v6758_v37  ;;  %v5171_v2 = vunpack.i.h.bf16 %v6805_v5 }
 0x377   :  { %v1886_v34 = vsel %vm528_vm4, %v4991_v10, %v5180_v0  ;;  %v5156_v0 = vunpack.i.h.bf16 %v6848_v44  ;;  %v5155_v40 = vunpack.i.l.bf16 %v6848_v44 }
 0x379   :  { %4422 = vmatpush1.bf16.msra.mxu1 %v4421_v62  ;;  %v1891_v62 = vsel %vm528_vm4, %v5110_v15, %v5111_v26  ;;  %v1915_v31 = vsel %vm528_vm4, %v5155_v40, %v5156_v0 }
 0x37a   :  { %v6862_v27 = vpop.permute.xlu0 %5198  ;;  %v6864_v58 = vpop.permute.xlu1 %5173  ;;  %4424 = vmatprep.subr.bf16.mxu1 %v4423_v59  ;;  %v5150_v59 = vunpack.i.l.bf16 %v6822_v51 }
 0x37c   :  { %4315 = vmatmul.mubr.msk.f32.vlgmr.msra.gmra.mrb[12].mxu1 %vm1562_vm6, %v6340_v52  ;;  %v1903_v39 = vsel %vm528_vm4, %v5150_v59, %v5151_v46 }
 0x37d   :  { %4426 = vmatpush1.bf16.msra.mxu1 %v4425_v54  ;;  %1791 = vmatprep.mubr.f32.mxu1 %v8227_v55  ;;  %v1885_v54 = vsel %vm528_vm4, %v4990_v56, %v4991_v10  ;;  %v5125_v10 = vunpack.i.l.bf16 %v6746_v35 }
 0x37e   :  { %v6885_v61 = vpop.permute.xlu0 %5213  ;;  %v5184_v52 = vpop.permute.xlu1 %5183  ;;  %4428 = vmatprep.subr.bf16.mxu1 %v4427_v11  ;;  %v1890_v11 = vsel %vm528_vm4, %v4981_v3, %v5110_v15  ;;  %v4435_v6 = vpack.c.bf16 %v1891_v62, %v1885_v54  ;;  %v5120_v3 = vunpack.i.l.bf16 %v6741_v22  ;;  %v5126_v15 = vunpack.i.h.bf16 %v6746_v35  ;;  %v6978_v54 = vld [vmem:[%s8171_s4 + $0x10] sm:$0xff] }
 0x37f   :  { %v5186_v4 = vunpack.i.h.bf16 %v5184_v52  ;;  %v5185_v18 = vunpack.i.l.bf16 %v5184_v52  ;;  %v5145_v62 = vunpack.i.l.bf16 %v6807_v1 }
 0x380   :  { %4316 = vmatmul.mubr.msk.f32.gmra.mrb[14].mxu1 %vm1562_vm6, %v6344_v32  ;;  %v2333_v41 = vsel %vm866_vm5, %v5125_v10, %v5126_v15 }
 0x381   :  { %v1892_v63 = vsel %vm528_vm4, %v5111_v26, %v5185_v18  ;;  %4430 = vmatpush1.bf16.msra.mxu1 %v4429_v21  ;;  %v1893_v30 = vsel %vm528_vm4, %v5185_v18, %v5186_v4  ;;  %2022 = vmatprep.mubr.f32.mxu1 %v8227_v55  ;;  %v1884_v26 = vsel %vm528_vm4, %v4976_v57, %v4990_v56  ;;  %v5131_v56 = vunpack.i.h.bf16 %v6789_v49  ;;  %v6938_v18 = vld [vmem:[%s8171_s4] sm:$0xff] }
 0x382   :  { %v6903_v17 = vpop.permute.xlu0 %2239  ;;  %v6905_v32 = vpop.permute.xlu1 %5193  ;;  %4432 = vmatprep.subr.bf16.mxu1 %v4431_v29  ;;  %v4447_v50 = vpack.c.bf16 %v1893_v30, %v1887_v19  ;;  %v4449_v20 = vpack.c.bf16 %v1892_v63, %v1886_v34  ;;  %v1897_v57 = vsel %vm528_vm4, %v5115_v8, %v5116_v28  ;;  %v4437_v52 = vpack.c.bf16 %v1890_v11, %v1884_v26 }
 0x383   :  { %v1902_v4 = vsel %vm528_vm4, %v5076_v13, %v5150_v59  ;;  %v4439_v21 = vpack.c.bf16 %v1903_v39, %v1897_v57  ;;  %v5170_v34 = vunpack.i.l.bf16 %v6805_v5  ;;  %v5146_v29 = vunpack.i.h.bf16 %v6807_v1 }
 0x384   :  { %4448 = vmatprep.subr.bf16.mxu0 %v4447_v50  ;;  %v1896_v13 = vsel %vm528_vm4, %v5036_v38, %v5115_v8  ;;  %v1908_v59 = vsel %vm528_vm4, %v5041_v60, %v5120_v3  ;;  %v5140_v63 = vunpack.i.l.bf16 %v6758_v37  ;;  %v1909_v50 = vsel %vm528_vm4, %v5120_v3, %v5121_v53 }
 0x385   :  { %4434 = vmatpush1.bf16.msra.mxu1 %v4433_v36  ;;  %4450 = vmatpush1.bf16.msra.mxu0 %v4449_v20  ;;  %v2338_v20 = vsel %vm866_vm5, %v5141_v12, %v5130_v7  ;;  %v4441_v9 = vpack.c.bf16 %v1902_v4, %v1896_v13  ;;  %v2339_v37 = vsel %vm866_vm5, %v5130_v7, %v5131_v56  ;;  %v5191_v38 = vunpack.i.h.bf16 %v6846_v33 }
 0x386   :  { %v6922_v42 = vpop.permute.xlu0 %5233  ;;  %v5204_v14 = vpop.permute.xlu1 %5203  ;;  %4436 = vmatprep.subr.bf16.mxu1 %v4435_v6  ;;  %v5190_v60 = vunpack.i.l.bf16 %v6846_v33  ;;  %v1914_v8 = vsel %vm528_vm4, %v5081_v16, %v5155_v40  ;;  %v4443_v36 = vpack.c.bf16 %v1915_v31, %v1909_v50  ;;  %v2345_v43 = vsel %vm866_vm5, %v5145_v62, %v5146_v29 }
 0x387   :  { %v5206_v11 = vunpack.i.h.bf16 %v5204_v14  ;;  %v5205_v6 = vunpack.i.l.bf16 %v5204_v14  ;;  %v2351_v16 = vsel %vm866_vm5, %v5170_v34, %v5171_v2  ;;  %v2332_v26 = vsel %vm866_vm5, %v5140_v63, %v5125_v10 }
 0x388   :  { %4317 = vmatmul.mubr.msk.f32.vlgmr.msra.gmra.mrb[4].mxu1 %vm1562_vm6, %v6938_v18  ;;  %v5176_v40 = vunpack.i.h.bf16 %v6864_v58  ;;  %v5175_v39 = vunpack.i.l.bf16 %v6864_v58  ;;  %v4459_v14 = vpack.c.bf16 %v2339_v37, %v2333_v41  ;;  %v4445_v12 = vpack.c.bf16 %v1914_v8, %v1908_v59 }
 0x389   :  { %4438 = vmatpush1.bf16.msra.mxu1 %v4437_v52  ;;  %2028 = vmatprep.mubr.f32.mxu1 %v8227_v55  ;;  %v4461_v4 = vpack.c.bf16 %v2338_v20, %v2332_v26  ;;  %v5195_v31 = vunpack.i.l.bf16 %v6905_v32  ;;  %v4463_v13 = vpack.c.bf16 %v2351_v16, %v2345_v43  ;;  %v2357_v58 = vsel %vm866_vm5, %v5190_v60, %v5191_v38 }
 0x38a   :  { %v6956_v19 = vpop.permute.xlu0 %2243  ;;  %v6958_v30 = vpop.permute.xlu1 %5208  ;;  %4440 = vmatprep.subr.bf16.mxu1 %v4439_v21  ;;  %v5196_v21 = vunpack.i.h.bf16 %v6905_v32  ;;  %v1898_v10 = vsel %vm528_vm4, %v5116_v28, %v5205_v6  ;;  %v1899_v63 = vsel %vm528_vm4, %v5205_v6, %v5206_v11  ;;  %v2350_v20 = vsel %vm866_vm5, %v5176_v40, %v5170_v34 }
 0x38b   :  { %v5211_v16 = vunpack.i.h.bf16 %v6958_v30  ;;  %v5210_v11 = vunpack.i.l.bf16 %v6958_v30  ;;  %v5216_v40 = vunpack.i.h.bf16 %v6885_v61 }
 0x38c   :  { %4318 = vmatmul.mubr.msk.f32.gmra.mrb[6].mxu1 %vm1562_vm6, %v6978_v54  ;;  %v2363_v34 = vsel %vm866_vm5, %v5195_v31, %v5196_v21 }
 0x38d   :  { %4442 = vmatpush1.bf16.msra.mxu1 %v4441_v9  ;;  %2099 = vmatprep.mubr.f32.mxu1 %v8227_v55  ;;  %v2344_v9 = vsel %vm866_vm5, %v5175_v39, %v5145_v62  ;;  %v5200_v62 = vunpack.i.l.bf16 %v6862_v27  ;;  %v5215_v39 = vunpack.i.l.bf16 %v6885_v61  ;;  %v2334_v61 = vsel %vm866_vm5, %v5126_v15, %v5210_v11 }
 0x38e   :  { %v5254_v3 = vpop.permute.xlu0 %5253  ;;  %v6992_v57 = vpop.permute.xlu1 %2237  ;;  %4444 = vmatprep.subr.bf16.mxu1 %v4443_v36 }
 0x38f   :  { %v5256_v7 = vunpack.i.h.bf16 %v5254_v3  ;;  %v5255_v52 = vunpack.i.l.bf16 %v5254_v3  ;;  %v2356_v35 = vsel %vm866_vm5, %v5200_v62, %v5190_v60  ;;  %v2340_v15 = vsel %vm866_vm5, %v5131_v56, %v5215_v39 }
 0x390   :  { %v4473_v49 = vpack.c.bf16 %v2340_v15, %v2334_v61 }
 0x391   :  { %v1904_v59 = vsel %vm528_vm4, %v5151_v46, %v5255_v52  ;;  %4446 = vmatpush1.bf16.msra.mxu1 %v4445_v12  ;;  %v1905_v50 = vsel %vm528_vm4, %v5255_v52, %v5256_v7  ;;  %v5201_v46 = vunpack.i.h.bf16 %v6862_v27  ;;  %v4465_v27 = vpack.c.bf16 %v2350_v20, %v2344_v9 }
 0x392   :  { %v5259_v41 = vpop.permute.xlu0 %5258  ;;  %v5219_v37 = vpop.permute.xlu1 %5218  ;;  %4460 = vmatprep.subr.bf16.mxu1 %v4459_v14  ;;  %v4451_v8 = vpack.c.bf16 %v1905_v50, %v1899_v63  ;;  %v4453_v48 = vpack.c.bf16 %v1904_v59, %v1898_v10  ;;  %v4467_v7 = vpack.c.bf16 %v2363_v34, %v2357_v58  ;;  %v5235_v52 = vunpack.i.l.bf16 %v6922_v42 }
 0x393   :  { %v5261_v36 = vunpack.i.h.bf16 %v5259_v41  ;;  %v5260_v28 = vunpack.i.l.bf16 %v5259_v41  ;;  %v5221_v43 = vunpack.i.h.bf16 %v5219_v37  ;;  %v5220_v51 = vunpack.i.l.bf16 %v5219_v37 }
 0x394   :  { %4452 = vmatprep.subr.bf16.mxu0 %v4451_v8  ;;  %4319 = vmatmul.mubr.msk.f32.vlgmr.msra.gmra.mrb[8].mxu1 %vm1562_vm6, %v6938_v18  ;;  %v2362_v22 = vsel %vm866_vm5, %v5201_v46, %v5195_v31  ;;  %v2341_v9 = vsel %vm866_vm5, %v5215_v39, %v5216_v40  ;;  %v2342_v41 = vsel %vm866_vm5, %v5216_v40, %v5235_v52 }
 0x395   :  { %v1916_v6 = vsel %vm528_vm4, %v5156_v0, %v5260_v28  ;;  %v1910_v26 = vsel %vm528_vm4, %v5121_v53, %v5220_v51  ;;  %4454 = vmatpush1.bf16.msra.mxu0 %v4453_v48  ;;  %4462 = vmatpush1.bf16.msra.mxu1 %v4461_v4  ;;  %v1911_v30 = vsel %vm528_vm4, %v5220_v51, %v5221_v43  ;;  %v5236_v0 = vunpack.i.h.bf16 %v6922_v42 }
 0x396   :  { %v7029_v3 = vpop.permute.xlu0 %5263  ;;  %v7031_v14 = vpop.permute.xlu1 %5223  ;;  %4464 = vmatprep.subr.bf16.mxu1 %v4463_v13  ;;  %v1917_v44 = vsel %vm528_vm4, %v5260_v28, %v5261_v36  ;;  %2105 = vmatprep.mubr.f32.mxu1 %v8227_v55  ;;  %v4457_v53 = vpack.c.bf16 %v1916_v6, %v1910_v26  ;;  %v2335_v4 = vsel %vm866_vm5, %v5210_v11, %v5211_v16 }
 0x397   :  { %v4455_v12 = vpack.c.bf16 %v1917_v44, %v1911_v30  ;;  %v5266_v13 = vunpack.i.h.bf16 %v7029_v3  ;;  %v5265_v31 = vunpack.i.l.bf16 %v7029_v3  ;;  %v5226_v10 = vunpack.i.h.bf16 %v7031_v14 }
 0x398   :  { %4320 = vmatmul.mubr.msk.f32.gmra.mrb[10].mxu1 %vm1562_vm6, %v6978_v54  ;;  %v5225_v58 = vunpack.i.l.bf16 %v7031_v14  ;;  %v4469_v20 = vpack.c.bf16 %v2362_v22, %v2356_v35  ;;  %v4471_v37 = vpack.c.bf16 %v2341_v9, %v2335_v4  ;;  %v2343_v60 = vsel %vm866_vm5, %v5235_v52, %v5236_v0 }
 0x399   :  { %4466 = vmatpush1.bf16.msra.mxu1 %v4465_v27  ;;  %2472 = vmatprep.mubr.f32.mxu1 %v8227_v55  ;;  %v2353_v36 = vsel %vm866_vm5, %v5265_v31, %v5266_v13  ;;  %v7071_v28 = vsel %vm2245_vm7, %v6992_v57, %v6903_v17  ;;  %v2352_v17 = vsel %vm866_vm5, %v5171_v2, %v5265_v31 }
 0x39a   :  { %4456 = vmatprep.subr.bf16.mxu0 %v4455_v12  ;;  %v7055_v42 = vpop.permute.xlu0 %5268  ;;  %v5229_v59 = vpop.permute.xlu1 %5228  ;;  %4468 = vmatprep.subr.bf16.mxu1 %v4467_v7  ;;  %v2347_v48 = vsel %vm866_vm5, %v5225_v58, %v5226_v10  ;;  %v2346_v57 = vsel %vm866_vm5, %v5146_v29, %v5225_v58 }
 0x39b   :  { %4458 = vmatpush1.bf16.msra.mxu0 %v4457_v53  ;;  %v5231_v63 = vunpack.i.h.bf16 %v5229_v59  ;;  %v5230_v50 = vunpack.i.l.bf16 %v5229_v59  ;;  %v5270_v11 = vunpack.i.l.bf16 %v7055_v42  ;;  %v4477_v2 = vpack.c.bf16 %v2352_v17, %v2346_v57 }
 0x39d   :  { %v2336_v56 = vsel %vm866_vm5, %v5211_v16, %v5230_v50  ;;  %4470 = vmatpush1.bf16.msra.mxu1 %v4469_v20  ;;  %v2337_v8 = vsel %vm866_vm5, %v5230_v50, %v5231_v63  ;;  %v5271_v16 = vunpack.i.h.bf16 %v7055_v42 }
 0x39e   :  { %v5239_v43 = vpop.permute.xlu1 %5238  ;;  %4472 = vmatprep.subr.bf16.mxu1 %v4471_v37  ;;  %v4483_v51 = vpack.c.bf16 %v2343_v60, %v2337_v8  ;;  %4321 = vmatmul.mubr.msk.f32.vlgmr.msra.gmra.mrb[8].mxu0 %vm1562_vm6, %v6938_v18  ;;  %v4485_v46 = vpack.c.bf16 %v2342_v41, %v2336_v56  ;;  %v5274_v34 = vpop.permute.xlu0 %5273  ;;  %v4475_v18 = vpack.c.bf16 %v2353_v36, %v2347_v48 }
 0x39f   :  { %v5241_v62 = vunpack.i.h.bf16 %v5239_v43  ;;  %v5240_v6 = vunpack.i.l.bf16 %v5239_v43  ;;  %2182 = vmatprep.mubr.f32.mxu0 %v8227_v55  ;;  %v2365_v1 = vsel %vm866_vm5, %v5270_v11, %v5271_v16  ;;  %v5275_v29 = vunpack.i.l.bf16 %v5274_v34 }
 0x3a0   :  { %4323 = vmatmul.mubr.msk.f32.vlgmr.msra.gmra.mrb[4].mxu1 %vm1562_vm6, %v7071_v28  ;;  %4484 = vmatprep.subr.bf16.mxu0 %v4483_v51  ;;  %v5276_v44 = vunpack.i.h.bf16 %v5274_v34 }
 0x3a1   :  { %4474 = vmatpush1.bf16.msra.mxu1 %v4473_v49  ;;  %4486 = vmatpush1.bf16.msra.mxu0 %v4485_v46  ;;  %v2359_v26 = vsel %vm866_vm5, %v5240_v6, %v5241_v62  ;;  %v2358_v40 = vsel %vm866_vm5, %v5191_v38, %v5240_v6  ;;  %v2354_v38 = vsel %vm866_vm5, %v5266_v13, %v5275_v29 }
 0x3a2   :  { %v2242_v30 = vpop.permute.xlu1 %2241  ;;  %4476 = vmatprep.subr.bf16.mxu1 %v4475_v18  ;;  %2478 = vmatprep.mubr.f32.mxu1 %v8227_v55  ;;  %v4479_v39 = vpack.c.bf16 %v2365_v1, %v2359_v26  ;;  %v5279_v27 = vpop.permute.xlu0 %5278 }
 0x3a3   :  { %v2247_v5 = vsel %vm2245_vm7, %v2242_v30, %v6956_v19  ;;  %4322 = vmatmul.mubr.msk.f32.gmra.mrb[10].mxu0 %vm1562_vm6, %v6978_v54  ;;  %v2364_v19 = vsel %vm866_vm5, %v5196_v21, %v5270_v11  ;;  %v5280_v53 = vunpack.i.l.bf16 %v5279_v27  ;;  %v5281_v7 = vunpack.i.h.bf16 %v5279_v27 }
 0x3a4   :  { %4324 = vmatmul.mubr.msk.f32.gmra.mrb[6].mxu1 %vm1562_vm6, %v2247_v5  ;;  %2626 = vmatprep.mubr.f32.mxu0 %v8227_v55  ;;  %v4481_v0 = vpack.c.bf16 %v2364_v19, %v2358_v40  ;;  %v2355_v21 = vsel %vm866_vm5, %v5275_v29, %v5276_v44 }
 0x3a5   :  { %4478 = vmatpush1.bf16.msra.mxu1 %v4477_v2  ;;  %2549 = vmatprep.mubr.f32.mxu1 %v8227_v55  ;;  %v2366_v3 = vsel %vm866_vm5, %v5271_v16, %v5280_v53 }
 0x3a6   :  { %v5244_v54 = vpop.permute.xlu1 %5243  ;;  %4480 = vmatprep.subr.bf16.mxu1 %v4479_v39 }
 0x3a7   :  { %v5246_v22 = vunpack.i.h.bf16 %v5244_v54  ;;  %v5245_v33 = vunpack.i.l.bf16 %v5244_v54 }
 0x3a9   :  { %v2348_v52 = vsel %vm866_vm5, %v5226_v10, %v5245_v33  ;;  %4482 = vmatpush1.bf16.msra.mxu1 %v4481_v0  ;;  %v2349_v32 = vsel %vm866_vm5, %v5245_v33, %v5246_v22  ;;  %v2367_v10 = vsel %vm866_vm5, %v5280_v53, %v5281_v7 }
 0x3aa   :  { %v5249_v61 = vpop.permute.xlu1 %5248  ;;  %v4487_v12 = vpack.c.bf16 %v2355_v21, %v2349_v32  ;;  %v4489_v4 = vpack.c.bf16 %v2354_v38, %v2348_v52 }
 0x3ab   :  { %v5251_v31 = vunpack.i.h.bf16 %v5249_v61  ;;  %v5250_v58 = vunpack.i.l.bf16 %v5249_v61 }
 0x3ac   :  { %4325 = vmatmul.mubr.msk.f32.vlgmr.msra.gmra.mrb[8].mxu1 %vm1562_vm6, %v7071_v28  ;;  %4488 = vmatprep.subr.bf16.mxu0 %v4487_v12 }
 0x3ad   :  { %v2360_v14 = vsel %vm866_vm5, %v5241_v62, %v5250_v58  ;;  %4490 = vmatpush1.bf16.msra.mxu0 %v4489_v4  ;;  %2555 = vmatprep.mubr.f32.mxu1 %v8227_v55  ;;  %v2361_v13 = vsel %vm866_vm5, %v5250_v58, %v5251_v31 }
 0x3ae   :  { %v4491_v35 = vpack.c.bf16 %v2367_v10, %v2361_v13  ;;  %v4493_v15 = vpack.c.bf16 %v2366_v3, %v2360_v14 }
 0x3b0   :  { %4326 = vmatmul.mubr.msk.f32.gmra.mrb[10].mxu1 %vm1562_vm6, %v2247_v5  ;;  %4492 = vmatprep.subr.bf16.mxu0 %v4491_v35 }
 0x3b1   :  { %4494 = vmatpush1.bf16.msra.mxu0 %v4493_v15  ;;  %3388 = vmatprep.mubr.f32.mxu1 %v8227_v55 }
 0x3b3   :  { %v2659_v8 = vpop.permute.xlu0 %2658 }
 0x3b4   :  { %4327 = vmatmul.mubr.msk.f32.vlgmr.msra.gmra.mrb[8].mxu0 %vm1562_vm6, %v7071_v28 }
 0x3b5   :  { %2632 = vmatprep.mubr.f32.mxu0 %v8227_v55 }
 0x3b8   :  { %4328 = vmatmul.mubr.msk.f32.gmra.mrb[10].mxu0 %vm1562_vm6, %v2247_v5 }
 0x3b9   :  { %3234 = vmatprep.mubr.f32.mxu0 %v8227_v55 }
 0x3bb   :  { %v2654_v9 = vpop.permute.xlu1 %2653 }
 0x44f   :  { %v1787_v42 = vpop.f32.mrb[12].mxu1 }
 0x450   :  { %v1789_v59 = vpop.f32.mrb[13].mxu1 }
 0x453   :  { %v1793_v63 = vpop.f32.mrb[14].mxu1 }
 0x454   :  { %v1795_v50 = vpop.f32.mrb[15].mxu1 }
 0x473   :  { %v2474_v20 = vpop.f32.mrb[4].mxu1 }
 0x474   :  { %v2476_v41 = vpop.f32.mrb[5].mxu1  ;;  %v2661_v37 = vadd.f32 %v2654_v9, %v2474_v20 }
 0x475   :  { %v2662_v60 = vadd.f32 %v2654_v9, %v2476_v41 }
 0x476   :  { %v2673_v48 = vmul.f32 0.2, %v2661_v37 }
 0x477   :  { %v2480_v49 = vpop.f32.mrb[6].mxu1  ;;  %v2674_v36 = vmul.f32 0.2, %v2662_v60 }
 0x478   :  { %v2482_v56 = vpop.f32.mrb[7].mxu1  ;;  %v2667_v28 = vadd.f32 %v2659_v8, %v2480_v49  ;;  %v2685_v51 = vmax.f32 %v2661_v37, %v2673_v48 }
 0x479   :  { %v2668_v43 = vadd.f32 %v2659_v8, %v2482_v56  ;;  %v2686_v46 = vmax.f32 %v2662_v60, %v2674_v36 }
 0x47a   :  { %v2679_v16 = vmul.f32 0.2, %v2667_v28  ;;  %v7125_v17 = vmul.f32 %v2685_v51, %v6205_v23 }
 0x47b   :  { %v2680_v11 = vmul.f32 0.2, %v2668_v43  ;;  %v7128_v57 = vmul.f32 %v2686_v46, %v6208_v25 }
 0x47c   :  { %v2691_v18 = vmax.f32 %v2667_v28, %v2679_v16 }
 0x47d   :  { %v2692_v26 = vmax.f32 %v2668_v43, %v2680_v11  ;;  %v2709_v39 = vadd.f32 %v7128_v57, %v7125_v17 }
 0x47e   :  { %v7133_v44 = vmul.f32 %v2691_v18, %v6205_v23 }
 0x47f   :  { %v2551_v34 = vpop.f32.mrb[8].mxu1  ;;  %v7136_v27 = vmul.f32 %v2692_v26, %v6208_v25 }
 0x480   :  { %v2663_v62 = vadd.f32 %v2654_v9, %v2551_v34  ;;  %v2553_v6 = vpop.f32.mrb[9].mxu1 }
 0x481   :  { %v2664_v1 = vadd.f32 %v2654_v9, %v2553_v6  ;;  %v2713_v25 = vadd.f32 %v7136_v27, %v7133_v44 }
 0x482   :  { %v2675_v30 = vmul.f32 0.2, %v2663_v62 }
 0x483   :  { %v2557_v5 = vpop.f32.mrb[10].mxu1  ;;  %v2676_v33 = vmul.f32 0.2, %v2664_v1 }
 0x484   :  { %v2687_v2 = vmax.f32 %v2663_v62, %v2675_v30  ;;  %v2669_v29 = vadd.f32 %v2659_v8, %v2557_v5  ;;  %v2559_v40 = vpop.f32.mrb[11].mxu1 }
 0x485   :  { %v2688_v12 = vmax.f32 %v2664_v1, %v2676_v33  ;;  %v2735_v33 = vld [vmem:[%s8175_s7 + $0x8] sm:$0xff] }
 0x486   :  { %v7139_v19 = vmul.f32 %v2687_v2, %v6220_v45  ;;  %v2681_v54 = vmul.f32 0.2, %v2669_v29 }
 0x487   :  { %v2628_v22 = vpop.f32.mrb[8].mxu0 }
 0x488   :  { %v2693_v0 = vmax.f32 %v2669_v29, %v2681_v54  ;;  %v4603_v38 = vadd.f32 %v2628_v22, %v1787_v42  ;;  %v2630_v53 = vpop.f32.mrb[9].mxu0  ;;  %v2710_v7 = vadd.f32 %v2709_v39, %v7139_v19  ;;  %v8228_v42 = vld [vmem:[#allocation3_spill] sm:$0xff] }
 0x489   :  { %v4604_v52 = vadd.f32 %v2630_v53, %v1789_v59  ;;  %v2734_v22 = vld [vmem:[%s8175_s7] sm:$0xff] }
 0x48a   :  { %v7143_v32 = vmul.f32 %v2693_v0, %v6220_v45  ;;  %v2665_v23 = vadd.f32 %v4603_v38, %v2654_v9  ;;  %2711 = vadd.xlane.f32.xlu1 %v2710_v7  ;;  %v7149_v45 = vmul.f32 %v2688_v12, %v6224_v47 }
 0x48b   :  { %v2666_v21 = vadd.f32 %v4604_v52, %v2654_v9  ;;  %v2634_v61 = vpop.f32.mrb[10].mxu0  ;;  %v2670_v9 = vadd.f32 %v2659_v8, %v2559_v40 }
 0x48c   :  { %v2677_v4 = vmul.f32 0.2, %v2665_v23  ;;  %v4605_v31 = vadd.f32 %v2634_v61, %v1793_v63  ;;  %v2636_v58 = vpop.f32.mrb[11].mxu0  ;;  %v2714_v3 = vadd.f32 %v2713_v25, %v7143_v32 }
 0x48d   :  { %v2678_v14 = vmul.f32 0.2, %v2666_v21  ;;  %v4606_v13 = vadd.f32 %v2636_v58, %v1795_v50  ;;  %v2682_v60 = vmul.f32 0.2, %v2670_v9 }
 0x48e   :  { %v2689_v10 = vmax.f32 %v2665_v23, %v2677_v4  ;;  %2715 = vadd.xlane.f32.xlu0 %v2714_v3  ;;  %v2671_v50 = vadd.f32 %v4605_v31, %v2659_v8  ;;  %v2935_v23 = vld [vmem:[%s8176_s8 + $0x10] sm:$0xff] }
 0x48f   :  { %v2690_v35 = vmax.f32 %v2666_v21, %v2678_v14  ;;  %v2672_v37 = vadd.f32 %v4606_v13, %v2659_v8  ;;  %v2694_v48 = vmax.f32 %v2670_v9, %v2682_v60 }
 0x490   :  { %v7152_v15 = vmul.f32 %v2689_v10, %v6257_v24  ;;  %v2683_v41 = vmul.f32 0.2, %v2671_v50 }
 0x491   :  { %v7155_v59 = vmul.f32 %v2690_v35, %v8228_v42  ;;  %v2684_v56 = vmul.f32 0.2, %v2672_v37  ;;  %v7166_v43 = vmul.f32 %v2694_v48, %v6224_v47  ;;  %v2720_v47 = vld [vmem:[%s8174_s6 + $0x8] sm:$0xff]  ;;  %v2934_v48 = vld [vmem:[%s8176_s8] sm:$0xff] }
 0x492   :  { %v2768_v63 = vadd.f32 %v7152_v15, %v7149_v45  ;;  %v2695_v49 = vmax.f32 %v2671_v50, %v2683_v41 }
 0x493   :  { %v2696_v28 = vmax.f32 %v2672_v37, %v2684_v56  ;;  %v3833_v56 = vld [vmem:[%s8176_s8 + $0x8] sm:$0xff] }
 0x494   :  { %v2769_v20 = vadd.f32 %v2768_v63, %v7155_v59  ;;  %v7163_v36 = vmul.f32 %v2695_v49, %v6257_v24  ;;  %v2719_v24 = vld [vmem:[%s8174_s6] sm:$0xff] }
 0x495   :  { %v7169_v51 = vmul.f32 %v2696_v28, %v8228_v42 }
 0x496   :  { %2770 = vadd.xlane.f32.xlu0 %v2769_v20  ;;  %v2772_v46 = vadd.f32 %v7163_v36, %v7166_v43 }
 0x498   :  { %v2773_v16 = vadd.f32 %v2772_v46, %v7169_v51 }
 0x49b   :  { %5283 = vrot.lane.b32.xlu1 %v8227_v55, %s5758_s26 }
 0x4bf   :  { %2774 = vadd.xlane.f32.xlu1 %v2773_v16 }
 0x4d0   :  { %5288 = vrot.lane.b32.xlu1 %v8227_v55, %s5757_s19 }
 0x517   :  { %v2712_v8 = vpop.xlane.xlu1 %2711 }
 0x518   :  { %v2717_v11 = vmul.f32 0.00390625, %v2712_v8 }
 0x51a   :  { %v2721_v62 = vmul.f32 %v2719_v24, %v2717_v11 }
 0x51b   :  { %v2716_v34 = vpop.xlane.xlu0 %2715  ;;  %v7196_v21 = vpop.permute.xlu1 %5283 }
 0x51c   :  { %v2718_v6 = vmul.f32 0.00390625, %v2716_v34  ;;  %v2724_v26 = vsel %vm2723_vm8, %v2721_v62, 0.0 }
 0x51e   :  { %v2722_v18 = vmul.f32 %v2720_v47, %v2718_v6 }
 0x520   :  { %v2725_v30 = vsel %vm2723_vm8, %v2722_v18, 0.0 }
 0x521   :  { %v2726_v5 = vadd.f32 %v2725_v30, %v2724_v26 }
 0x523   :  { %v2727_v2 = vrot.slane %v2726_v5, 4  ;;  %v2771_v25 = vpop.xlane.xlu0 %2770 }
 0x524   :  { %v2776_v61 = vmul.f32 0.00390625, %v2771_v25 }
 0x525   :  { %v2728_v1 = vadd.f32 %v2727_v2, %v2726_v5 }
 0x526   :  { %v2780_v4 = vmul.f32 %v2776_v61, %v2719_v24 }
 0x527   :  { %v2729_v29 = vrot.slane %v2728_v1, 2 }
 0x528   :  { %v2782_v3 = vsel %vm2723_vm8, %v2780_v4, 0.0 }
 0x529   :  { %v2730_v40 = vadd.f32 %v2729_v29, %v2728_v1 }
 0x52b   :  { %v2731_v39 = vrot.slane %v2730_v40, 1 }
 0x52d   :  { %v2732_v54 = vadd.f32 %v2731_v39, %v2730_v40 }
 0x52f   :  { %v2733_v0 = vmax.f32 %v2732_v54, 0.0 }
 0x531   :  { %v2736_v38 = vmul.f32 %v2734_v22, %v2733_v0  ;;  %v2737_v53 = vmul.f32 %v2735_v33, %v2733_v0 }
 0x533   :  { %v2738_v7 = vsel %vm2723_vm8, %v2736_v38, 0.0  ;;  %v2741_v52 = vsel %vm2723_vm8, %v2737_v53, 0.0 }
 0x534   :  { %2739 = vadd.xlane.f32.xlu0 %v2738_v7  ;;  %2742 = vadd.xlane.f32.xlu1 %v2741_v52 }
 0x545   :  { %3008 = vrot.lane.b32.xlu1 %v2935_v23, %s5764_s2 }
 0x54a   :  { %5293 = vrot.lane.b32.xlu0 %v8227_v55, %s5759_s0 }
 0x54c   :  { %v2775_v12 = vpop.xlane.xlu1 %2774 }
 0x54d   :  { %v2777_v31 = vmul.f32 0.00390625, %v2775_v12 }
 0x54f   :  { %v2781_v58 = vmul.f32 %v2777_v31, %v2720_v47 }
 0x550   :  { %v7215_v28 = vpop.permute.xlu1 %5288 }
 0x551   :  { %v2783_v14 = vsel %vm2723_vm8, %v2781_v58, 0.0 }
 0x552   :  { %v2784_v13 = vadd.f32 %v2783_v14, %v2782_v3 }
 0x554   :  { %v2785_v10 = vrot.slane %v2784_v13, 4 }
 0x556   :  { %v2786_v35 = vadd.f32 %v2785_v10, %v2784_v13 }
 0x558   :  { %v2787_v42 = vrot.slane %v2786_v35, 2 }
 0x55a   :  { %v2788_v63 = vadd.f32 %v2787_v42, %v2786_v35 }
 0x55c   :  { %v2789_v20 = vrot.slane %v2788_v63, 1 }
 0x55e   :  { %v2790_v50 = vadd.f32 %v2789_v20, %v2788_v63 }
 0x560   :  { %v2791_v9 = vmax.f32 %v2790_v50, 0.0 }
 0x562   :  { %v2795_v41 = vmul.f32 %v2791_v9, %v2735_v33  ;;  %v2794_v37 = vmul.f32 %v2791_v9, %v2734_v22 }
 0x564   :  { %v2799_v60 = vsel %vm2723_vm8, %v2795_v41, 0.0  ;;  %v2796_v49 = vsel %vm2723_vm8, %v2794_v37, 0.0 }
 0x569   :  { %2800 = vadd.xlane.f32.xlu1 %v2799_v60  ;;  %2797 = vadd.xlane.f32.xlu0 %v2796_v49 }
 0x57a   :  { %3842 = vrot.lane.b32.xlu1 %v3833_v56, %s5766_s30 }
 0x57f   :  { %3006 = vrot.lane.b32.xlu0 %v2934_v48, %s5764_s2 }
 0x583   :  { %5298 = vrot.lane.b32.xlu0 %v8227_v55, %s5761_s16 }
 0x587   :  { %3840 = vrot.lane.b32.xlu0 %v2934_v48, %s5766_s30 }
 0x5c1   :  { %v2740_v46 = vpop.xlane.xlu0 %2739  ;;  %v2743_v16 = vpop.xlane.xlu1 %2742 }
 0x5c2   :  { %v4329_v8 = vmul.f32 -1.442695, %v2740_v46  ;;  %v4330_v11 = vmul.f32 -1.442695, %v2743_v16 }
 0x5c4   :  { %5737 = vpow2.f32 %v4329_v8 }
 0x5c5   :  { %5739 = vpow2.f32 %v4330_v11 }
 0x5ce   :  { %v5738_v24 = vpop.eup %5737 }
 0x5cf   :  { %v5740_v47 = vpop.eup %5739  ;;  %v2750_v34 = vadd.f32 1.0, %v5738_v24 }
 0x5d0   :  { %v2751_v62 = vadd.f32 1.0, %v5740_v47 }
 0x5d1   :  { %5741 = vrcp.f32 %v2750_v34 }
 0x5d2   :  { %5743 = vrcp.f32 %v2751_v62 }
 0x5db   :  { %v5742_v6 = vpop.eup %5741 }
 0x5dc   :  { %v5744_v18 = vpop.eup %5743  ;;  %v2756_v26 = vmul.f32 %v5742_v6, %v7125_v17  ;;  %v2757_v30 = vmul.f32 %v5742_v6, %v7128_v57  ;;  %v7220_v5 = vmul.f32 %v5742_v6, %v7139_v19 }
 0x5dd   :  { %v2759_v2 = vmul.f32 %v5744_v18, %v7133_v44  ;;  %v7224_v29 = vmul.f32 %v5744_v18, %v7136_v27  ;;  %v2761_v40 = vmul.f32 %v5744_v18, %v7143_v32  ;;  %v7240_v44 = vpop.permute.xlu1 %3008  ;;  %v7242_v27 = vpop.permute.xlu0 %5293 }
 0x5de   :  { %v5302_v1 = vpack.i.bf16 %v2757_v30, %v2756_v26  ;;  %v5347_v57 = vpack.i.bf16 %v7220_v5, %v2757_v30 }
 0x5df   :  { %v5307_v39 = vpack.i.bf16 %v2759_v2, %v7220_v5  ;;  %v5312_v17 = vpack.i.bf16 %v2761_v40, %v7224_v29  ;;  %v5352_v19 = vpack.i.bf16 %v2759_v2, %v2756_v26  ;;  %v5362_v32 = vpack.i.bf16 %v7224_v29, %v2759_v2 }
 0x5e0   :  { %5303 = vrot.lane.b32.xlu0 %v5302_v1, %s5758_s26 }
 0x5e1   :  { %5308 = vrot.lane.b32.xlu1 %v5307_v39, %s5758_s26 }
 0x5e4   :  { %5318 = vrot.lane.b32.xlu0 %v5302_v1, %s5757_s19 }
 0x5e5   :  { %5313 = vrot.lane.b32.xlu1 %v5312_v17, %s5758_s26 }
 0x5e8   :  { %5328 = vrot.lane.b32.xlu0 %v5312_v17, %s5757_s19 }
 0x5e9   :  { %5323 = vrot.lane.b32.xlu1 %v5307_v39, %s5757_s19 }
 0x5ec   :  { %5333 = vrot.lane.b32.xlu0 %v5302_v1, %s5757_s19 }
 0x5ed   :  { %5338 = vrot.lane.b32.xlu1 %v5307_v39, %s5757_s19 }
 0x5f0   :  { %5343 = vrot.lane.b32.xlu0 %v5312_v17, %s5757_s19 }
 0x5f1   :  { %5348 = vrot.lane.b32.xlu1 %v5347_v57, %s5758_s26 }
 0x5f4   :  { %5353 = vrot.lane.b32.xlu0 %v5352_v19, %s5758_s26 }
 0x5f5   :  { %5363 = vrot.lane.b32.xlu1 %v5362_v32, %s5759_s0 }
 0x5f6   :  { %v2798_v54 = vpop.xlane.xlu0 %2797  ;;  %v2801_v22 = vpop.xlane.xlu1 %2800 }
 0x5f7   :  { %v4331_v33 = vmul.f32 -1.442695, %v2798_v54  ;;  %v4332_v0 = vmul.f32 -1.442695, %v2801_v22 }
 0x5f8   :  { %5358 = vrot.lane.b32.xlu0 %v5302_v1, %s5759_s0 }
 0x5f9   :  { %5745 = vpow2.f32 %v4331_v33  ;;  %5373 = vrot.lane.b32.xlu1 %v5362_v32, %s5761_s16 }
 0x5fa   :  { %5747 = vpow2.f32 %v4332_v0  ;;  %v7286_v63 = vpop.permute.xlu0 %3006  ;;  %v7297_v9 = vpop.permute.xlu1 %3842 }
 0x5fb   :  { %8230 = vst [vmem:[#allocation4_spill] sm:$0xff] %v7297_v9 }
 0x5fc   :  { %5368 = vrot.lane.b32.xlu0 %v5302_v1, %s5761_s16 }
 0x5fd   :  { %5378 = vrot.lane.b32.xlu1 %v5347_v57, %s5762_s17 }
 0x5fe   :  { %v7292_v20 = vpop.permute.xlu0 %5298 }
 0x600   :  { %5383 = vrot.lane.b32.xlu0 %v5312_v17, %s5762_s17 }
 0x601   :  { %5388 = vrot.lane.b32.xlu1 %v5352_v19, %s5762_s17 }
 0x602   :  { %v7295_v50 = vpop.permute.xlu0 %3840 }
 0x603   :  { %v5746_v38 = vpop.eup %5745  ;;  %8229 = vst [vmem:[#allocation3_spill] sm:$0xff] %v7295_v50 }
 0x604   :  { %v5748_v53 = vpop.eup %5747  ;;  %v2808_v7 = vadd.f32 1.0, %v5746_v38 }
 0x605   :  { %v2809_v52 = vadd.f32 1.0, %v5748_v53 }
 0x606   :  { %5749 = vrcp.f32 %v2808_v7 }
 0x607   :  { %5751 = vrcp.f32 %v2809_v52 }
 0x610   :  { %v5750_v23 = vpop.eup %5749 }
 0x611   :  { %v5752_v25 = vpop.eup %5751  ;;  %v2814_v61 = vmul.f32 %v5750_v23, %v7149_v45  ;;  %v2815_v12 = vmul.f32 %v5750_v23, %v7152_v15  ;;  %v2816_v14 = vmul.f32 %v5750_v23, %v7155_v59 }
 0x612   :  { %v2817_v4 = vmul.f32 %v5752_v25, %v7166_v43  ;;  %v2818_v31 = vmul.f32 %v5752_v25, %v7163_v36  ;;  %v2819_v13 = vmul.f32 %v5752_v25, %v7169_v51 }
 0x613   :  { %v5392_v58 = vpack.i.bf16 %v2815_v12, %v2814_v61  ;;  %v5427_v15 = vpack.i.bf16 %v8227_v55, %v2816_v14  ;;  %v5437_v43 = vpack.i.bf16 %v7224_v29, %v2814_v61  ;;  %v5452_v10 = vpack.i.bf16 %v2816_v14, %v2815_v12 }
 0x614   :  { %v5397_v3 = vpack.i.bf16 %v2818_v31, %v2817_v4  ;;  %v5412_v45 = vpack.i.bf16 %v2819_v13, %v2816_v14  ;;  %v5442_v36 = vpack.i.bf16 %v2817_v4, %v2761_v40  ;;  %v5432_v59 = vpack.i.bf16 %v8227_v55, %v2819_v13 }
 0x615   :  { %5393 = vrot.lane.b32.xlu1 %v5392_v58, %s5758_s26  ;;  %v5457_v51 = vpack.i.bf16 %v2818_v31, %v8227_v55  ;;  %v5467_v35 = vpack.i.bf16 %v2814_v61, %v7220_v5  ;;  %v5482_v42 = vpack.i.bf16 %v2819_v13, %v2818_v31  ;;  %v5291_v4 = vunpack.i.h.bf16 %v7215_v28 }
 0x616   :  { %5398 = vrot.lane.b32.xlu0 %v5397_v3, %s5758_s26  ;;  %v5290_v31 = vunpack.i.l.bf16 %v7215_v28  ;;  %v5285_v28 = vunpack.i.l.bf16 %v7196_v21 }
 0x619   :  { %5403 = vrot.lane.b32.xlu1 %v5392_v58, %s5757_s19 }
 0x61a   :  { %5408 = vrot.lane.b32.xlu0 %v5397_v3, %s5757_s19 }
 0x61d   :  { %5418 = vrot.lane.b32.xlu1 %v5392_v58, %s5757_s19 }
 0x61e   :  { %5413 = vrot.lane.b32.xlu0 %v5412_v45, %s5758_s26 }
 0x621   :  { %5428 = vrot.lane.b32.xlu1 %v5427_v15, %s5757_s19 }
 0x622   :  { %5423 = vrot.lane.b32.xlu0 %v5397_v3, %s5757_s19 }
 0x625   :  { %5443 = vrot.lane.b32.xlu1 %v5442_v36, %s5758_s26 }
 0x626   :  { %5433 = vrot.lane.b32.xlu0 %v5432_v59, %s5757_s19 }
 0x629   :  { %5448 = vrot.lane.b32.xlu1 %v5412_v45, %s5757_s19 }
 0x62a   :  { %5438 = vrot.lane.b32.xlu0 %v5437_v43, %s5758_s26  ;;  %v5296_v43 = vunpack.i.h.bf16 %v7242_v27 }
 0x62d   :  { %5458 = vrot.lane.b32.xlu1 %v5457_v51, %s5758_s26 }
 0x62e   :  { %5453 = vrot.lane.b32.xlu0 %v5452_v10, %s5758_s26 }
 0x631   :  { %5473 = vrot.lane.b32.xlu1 %v5442_v36, %s5759_s0 }
 0x632   :  { %5463 = vrot.lane.b32.xlu0 %v5432_v59, %s5758_s26 }
 0x635   :  { %5478 = vrot.lane.b32.xlu1 %v5452_v10, %s5759_s0 }
 0x636   :  { %5468 = vrot.lane.b32.xlu0 %v5467_v35, %s5759_s0 }
 0x639   :  { %5488 = vrot.lane.b32.xlu1 %v5467_v35, %s5761_s16  ;;  %v5295_v35 = vunpack.i.l.bf16 %v7242_v27  ;;  %v5301_v27 = vunpack.i.h.bf16 %v7292_v20 }
 0x63a   :  { %5483 = vrot.lane.b32.xlu0 %v5482_v42, %s5759_s0 }
 0x63d   :  { %5498 = vrot.lane.b32.xlu1 %v5452_v10, %s5761_s16 }
 0x63e   :  { %5493 = vrot.lane.b32.xlu0 %v5442_v36, %s5761_s16 }
 0x641   :  { %5513 = vrot.lane.b32.xlu1 %v5427_v15, %s5762_s17 }
 0x642   :  { %5503 = vrot.lane.b32.xlu0 %v5482_v42, %s5761_s16 }
 0x645   :  { %5523 = vrot.lane.b32.xlu1 %v5432_v59, %s5762_s17  ;;  %v5286_v59 = vunpack.i.h.bf16 %v7196_v21 }
 0x646   :  { %5508 = vrot.lane.b32.xlu0 %v5392_v58, %s5762_s17 }
 0x64a   :  { %5518 = vrot.lane.b32.xlu0 %v5397_v3, %s5762_s17 }
 0x652   :  { %v5304_v41 = vpop.permute.xlu0 %5303 }
 0x653   :  { %v7299_v37 = vunpack.i.l.bf16 %v5304_v41  ;;  %v7301_v60 = vpop.permute.xlu1 %5308  ;;  %v5306_v11 = vunpack.i.h.bf16 %v5304_v41 }
 0x654   :  { %v5311_v49 = vunpack.i.h.bf16 %v7301_v60  ;;  %v5310_v62 = vunpack.i.l.bf16 %v7301_v60 }
 0x655   :  { %v2883_v17 = vsel %vm101_vm1, %v7299_v37, %v5306_v11  ;;  %v2882_v42 = vsel %vm101_vm1, %v5285_v28, %v7299_v37 }
 0x656   :  { %v5527_v56 = vpack.i.bf16 %v5311_v49, %v7299_v37  ;;  %v5319_v48 = vpop.permute.xlu0 %5318  ;;  %v2884_v57 = vsel %vm101_vm1, %v5306_v11, %v5310_v62  ;;  %v2888_v41 = vsel %vm101_vm1, %v5286_v59, %v5311_v49 }
 0x657   :  { %v7305_v46 = vpop.permute.xlu1 %5313  ;;  %v5320_v5 = vunpack.i.l.bf16 %v5319_v48  ;;  %v5321_v38 = vunpack.i.h.bf16 %v5319_v48  ;;  %v5557_v53 = vpack.i.bf16 %v2884_v57, %v2883_v17 }
 0x658   :  { %v5316_v16 = vunpack.i.h.bf16 %v7305_v46  ;;  %v5315_v8 = vunpack.i.l.bf16 %v7305_v46  ;;  %5528 = vrot.lane.b32.xlu1 %v5527_v56, %s5759_s0 }
 0x659   :  { %v7362_v58 = vsel %vm122_vm0, %v5320_v5, %v5321_v38 }
 0x65a   :  { %v2889_v24 = vsel %vm101_vm1, %v5311_v49, %v5315_v8  ;;  %v2890_v47 = vsel %vm101_vm1, %v5315_v8, %v5316_v16  ;;  %v7314_v34 = vpop.permute.xlu0 %5328 }
 0x65b   :  { %v5562_v6 = vpack.i.bf16 %v2890_v47, %v2889_v24  ;;  %v5331_v18 = vunpack.i.h.bf16 %v7314_v34  ;;  %v5330_v26 = vunpack.i.l.bf16 %v7314_v34  ;;  %v7319_v30 = vpop.permute.xlu1 %5323 }
 0x65c   :  { %v5326_v2 = vunpack.i.h.bf16 %v7319_v30  ;;  %v5325_v32 = vunpack.i.l.bf16 %v7319_v30 }
 0x65d   :  { %v7325_v1 = vsel %vm122_vm0, %v5330_v26, %v5331_v18  ;;  %5543 = vrot.lane.b32.xlu0 %v5562_v6, %s5759_s0 }
 0x65e   :  { %v7329_v29 = vsel %vm122_vm0, %v5326_v2, %v5330_v26  ;;  %v5532_v40 = vpack.i.bf16 %v5326_v2, %v5320_v5  ;;  %v5334_v39 = vpop.permute.xlu0 %5333  ;;  %v7349_v52 = vsel %vm122_vm0, %v5321_v38, %v5325_v32 }
 0x65f   :  { %v5552_v19 = vpack.i.bf16 %v7325_v1, %v7329_v29  ;;  %v7339_v54 = vpop.permute.xlu1 %5338  ;;  %v5336_v22 = vunpack.i.h.bf16 %v5334_v39  ;;  %v5335_v33 = vunpack.i.l.bf16 %v5334_v39  ;;  %v5547_v3 = vpack.i.bf16 %v7349_v52, %v7362_v58 }
 0x660   :  { %v5340_v0 = vunpack.i.l.bf16 %v7339_v54  ;;  %5533 = vrot.lane.b32.xlu1 %v5532_v40, %s5759_s0  ;;  %v5341_v23 = vunpack.i.h.bf16 %v7339_v54  ;;  %v5567_v40 = vpack.i.bf16 %v2888_v41, %v2882_v42 }
 0x661   :  { %5553 = vrot.lane.b32.xlu0 %v5552_v19, %s5759_s0  ;;  %v2923_v61 = vsel %vm122_vm0, %v5335_v33, %v5336_v22  ;;  %v2922_v13 = vsel %vm122_vm0, %v5290_v31, %v5335_v33 }
 0x662   :  { %v7344_v7 = vpop.permute.xlu0 %5343  ;;  %v2924_v12 = vsel %vm122_vm0, %v5336_v22, %v5340_v0  ;;  %v2928_v15 = vsel %vm122_vm0, %v5291_v4, %v5341_v23 }
 0x663   :  { %v7352_v25 = vpop.permute.xlu1 %5348  ;;  %v5572_v45 = vpack.i.bf16 %v2924_v12, %v2923_v61  ;;  %v5582_v56 = vpack.i.bf16 %v2928_v15, %v2922_v13  ;;  %v8199_v21 = vunpack.i.h.bf16 %v7344_v7  ;;  %v5345_v8 = vunpack.i.l.bf16 %v7344_v7 }
 0x664   :  { %5538 = vrot.lane.b32.xlu1 %v5557_v53, %s5759_s0 }
 0x665   :  { %5563 = vrot.lane.b32.xlu0 %v5562_v6, %s5761_s16  ;;  %v5300_v6 = vunpack.i.l.bf16 %v7292_v20  ;;  %v2929_v22 = vsel %vm122_vm0, %v5341_v23, %v5345_v8  ;;  %v2930_v33 = vsel %vm122_vm0, %v5345_v8, %v8199_v21  ;;  %v5592_v8 = vpack.i.bf16 %v7329_v29, %v7362_v58 }
 0x666   :  { %v7367_v14 = vpop.permute.xlu0 %5353  ;;  %v5577_v13 = vpack.i.bf16 %v2930_v33, %v2929_v22 }
 0x667   :  { %v7371_v36 = vpop.permute.xlu1 %5363 }
 0x668   :  { %5548 = vrot.lane.b32.xlu1 %v5547_v3, %s5759_s0  ;;  %v5366_v51 = vunpack.i.h.bf16 %v7371_v36  ;;  %v5365_v10 = vunpack.i.l.bf16 %v7371_v36 }
 0x669   :  { %5573 = vrot.lane.b32.xlu0 %v5572_v45, %s5761_s16 }
 0x66a   :  { %v7384_v48 = vpop.permute.xlu0 %5358  ;;  %v3100_v26 = vsel %vm213_vm2, %v5296_v43, %v5365_v10  ;;  %v3101_v20 = vsel %vm213_vm2, %v5365_v10, %v5366_v51 }
 0x66b   :  { %v5361_v11 = vunpack.i.h.bf16 %v7384_v48  ;;  %v5360_v24 = vunpack.i.l.bf16 %v7384_v48  ;;  %v7390_v47 = vpop.permute.xlu1 %5373 }
 0x66c   :  { %v8202_v37 = vunpack.i.h.bf16 %v7390_v47  ;;  %v5375_v49 = vunpack.i.l.bf16 %v7390_v47  ;;  %5558 = vrot.lane.b32.xlu1 %v5557_v53, %s5761_s16 }
 0x66d   :  { %v3094_v5 = vsel %vm213_vm2, %v5295_v35, %v5360_v24  ;;  %5583 = vrot.lane.b32.xlu0 %v5582_v56, %s5761_s16  ;;  %v3095_v2 = vsel %vm213_vm2, %v5360_v24, %v5361_v11 }
 0x66e   :  { %v4497_v39 = vpack.c.bf16 %v3100_v26, %v3094_v5  ;;  %v7407_v17 = vsel %vm528_vm4, %v5301_v27, %v5375_v49  ;;  %v7409_v57 = vpop.permute.xlu0 %5368  ;;  %v4495_v19 = vpack.c.bf16 %v3101_v20, %v3095_v2  ;;  %v7423_v12 = vsel %vm528_vm4, %v5375_v49, %v8202_v37 }
 0x66f   :  { %v5371_v38 = vunpack.i.h.bf16 %v7409_v57  ;;  %v5370_v53 = vunpack.i.l.bf16 %v7409_v57  ;;  %v7417_v61 = vpop.permute.xlu1 %5378  ;;  %v5356_v49 = vunpack.i.h.bf16 %v7367_v14 }
 0x670   :  { %5568 = vrot.lane.b32.xlu1 %v5567_v40, %s5761_s16  ;;  %4496 = vmatprep.subr.bf16.mxu0 %v4495_v19  ;;  %v8197_v4 = vunpack.i.h.bf16 %v7417_v61  ;;  %v5380_v31 = vunpack.i.l.bf16 %v7417_v61 }
 0x671   :  { %v7426_v23 = vsel %vm528_vm4, %v5300_v6, %v5370_v53  ;;  %4498 = vmatpush1.bf16.msra.mxu0 %v4497_v39  ;;  %v7433_v3 = vsel %vm528_vm4, %v5370_v53, %v5371_v38 }
 0x672   :  { %v7437_v15 = vpop.permute.xlu0 %5383  ;;  %v7447_v41 = vsel %vm866_vm5, %v5380_v31, %v8197_v4 }
 0x673   :  { %v8195_v28 = vunpack.i.h.bf16 %v7437_v15  ;;  %v5385_v43 = vunpack.i.l.bf16 %v7437_v15  ;;  %v5389_v10 = vpop.permute.xlu1 %5388 }
 0x674   :  { %v5391_v35 = vunpack.i.h.bf16 %v5389_v10  ;;  %v5390_v42 = vunpack.i.l.bf16 %v5389_v10  ;;  %5578 = vrot.lane.b32.xlu1 %v5577_v13, %s5761_s16 }
 0x675   :  { %v7452_v56 = vsel %vm866_vm5, %v5385_v43, %v8195_v28 }
 0x676   :  { %v7457_v24 = vsel %vm866_vm5, %v5391_v35, %v5385_v43  ;;  %v7460_v27 = vsel %vm866_vm5, %v5390_v42, %v5380_v31 }
 0x678   :  { %5593 = vrot.lane.b32.xlu1 %v5592_v8, %s5762_s17 }
 0x687   :  { %v5394_v26 = vpop.permute.xlu1 %5393 }
 0x688   :  { %v5399_v5 = vpop.permute.xlu0 %5398  ;;  %v5396_v2 = vunpack.i.h.bf16 %v5394_v26  ;;  %v5395_v20 = vunpack.i.l.bf16 %v5394_v26 }
 0x689   :  { %v5401_v6 = vunpack.i.h.bf16 %v5399_v5 }
 0x68a   :  { %v2885_v29 = vsel %vm101_vm1, %v5310_v62, %v5395_v20  ;;  %v2886_v58 = vsel %vm101_vm1, %v5395_v20, %v5396_v2 }
 0x68b   :  { %v5627_v40 = vpack.i.bf16 %v2886_v58, %v2885_v29  ;;  %v5404_v39 = vpop.permute.xlu1 %5403 }
 0x68c   :  { %v7471_v19 = vpop.permute.xlu0 %5408  ;;  %v5406_v22 = vunpack.i.h.bf16 %v5404_v39  ;;  %v5405_v33 = vunpack.i.l.bf16 %v5404_v39 }
 0x68d   :  { %v5410_v53 = vunpack.i.l.bf16 %v7471_v19  ;;  %5598 = vrot.lane.b32.xlu1 %v5627_v40, %s5759_s0 }
 0x68e   :  { %v7478_v31 = vsel %vm122_vm0, %v5325_v32, %v5405_v33  ;;  %v7481_v60 = vsel %vm122_vm0, %v5405_v33, %v5406_v22 }
 0x68f   :  { %v7486_v62 = vsel %vm122_vm0, %v5331_v18, %v5410_v53  ;;  %v5607_v13 = vpack.i.bf16 %v7481_v60, %v7478_v31  ;;  %v7490_v43 = vpop.permute.xlu1 %5418 }
 0x690   :  { %v5414_v30 = vpop.permute.xlu0 %5413  ;;  %v5421_v58 = vunpack.i.h.bf16 %v7490_v43 }
 0x691   :  { %v5415_v35 = vunpack.i.l.bf16 %v5414_v30  ;;  %5608 = vrot.lane.b32.xlu1 %v5607_v13, %s5759_s0  ;;  %v8198_v13 = vunpack.i.l.bf16 %v7352_v25  ;;  %v5416_v10 = vunpack.i.h.bf16 %v5414_v30 }
 0x693   :  { %v2887_v32 = vsel %vm101_vm1, %v5396_v2, %v5415_v35  ;;  %v7496_v42 = vpop.permute.xlu1 %5428  ;;  %v5420_v2 = vunpack.i.l.bf16 %v7490_v43  ;;  %v5400_v43 = vunpack.i.l.bf16 %v5399_v5 }
 0x694   :  { %v7498_v34 = vpack.i.bf16 %v5415_v35, %v2887_v32  ;;  %v7500_v18 = vpop.permute.xlu0 %5423  ;;  %v8196_v8 = vunpack.i.h.bf16 %v7496_v42  ;;  %v5430_v26 = vunpack.i.l.bf16 %v7496_v42  ;;  %v5355_v35 = vunpack.i.l.bf16 %v7367_v14 }
 0x695   :  { %v2891_v54 = vsel %vm101_vm1, %v5316_v16, %v5400_v43 }
 0x696   :  { %5618 = vrot.lane.b32.xlu1 %v7498_v34, %s5759_s0  ;;  %v7515_v39 = vsel %vm122_vm0, %v5430_v26, %v8196_v8  ;;  %v7518_v33 = vsel %vm122_vm0, %v5406_v22, %v5430_v26  ;;  %v2926_v22 = vsel %vm122_vm0, %v5420_v2, %v5421_v58  ;;  %v3820_v14 = vsel %vm101_vm1, %v5355_v35, %v8198_v13 }
 0x697   :  { %v7506_v20 = vpop.permute.xlu1 %5443  ;;  %v5637_v45 = vpack.i.bf16 %v7515_v39, %v7518_v33 }
 0x698   :  { %v7508_v29 = vpop.permute.xlu0 %5433  ;;  %v5445_v35 = vunpack.i.l.bf16 %v7506_v20 }
 0x699   :  { %v5435_v48 = vunpack.i.l.bf16 %v7508_v29 }
 0x69a   :  { %5628 = vrot.lane.b32.xlu1 %v5627_v40, %s5761_s16  ;;  %v2925_v40 = vsel %vm122_vm0, %v5340_v0, %v5420_v2  ;;  %v2892_v0 = vsel %vm101_vm1, %v5400_v43, %v5401_v6  ;;  %v2893_v2 = vsel %vm101_vm1, %v5401_v6, %v5416_v10 }
 0x69b   :  { %v7523_v32 = vpop.permute.xlu1 %5448  ;;  %v5647_v8 = vpack.i.bf16 %v2926_v22, %v2925_v40  ;;  %v7556_v22 = vpack.i.bf16 %v2892_v0, %v2891_v54  ;;  %v5662_v46 = vpack.i.bf16 %v5416_v10, %v2893_v2  ;;  %v5687_v2 = vpack.i.bf16 %v7478_v31, %v7349_v52 }
 0x69c   :  { %v7528_v59 = vpop.permute.xlu0 %5438 }
 0x69d   :  { %v5441_v26 = vunpack.i.h.bf16 %v7528_v59 }
 0x69e   :  { %5638 = vrot.lane.b32.xlu1 %v5637_v45, %s5759_s0  ;;  %v8204_v45 = vunpack.i.h.bf16 %v7471_v19 }
 0x69f   :  { %v3826_v5 = vsel %vm101_vm1, %v5356_v49, %v5441_v26  ;;  %v7540_v28 = vpop.permute.xlu1 %5458  ;;  %v8201_v49 = vunpack.i.h.bf16 %v7506_v20  ;;  %v3827_v6 = vsel %vm101_vm1, %v5441_v26, %v5445_v35 }
 0x6a0   :  { %v5587_v30 = vpack.i.bf16 %v3826_v5, %v3820_v14  ;;  %v7542_v4 = vpop.permute.xlu0 %5453  ;;  %v7563_v43 = vsel %vm122_vm0, %v5410_v53, %v8204_v45 }
 0x6a1   :  { %v3828_v10 = vsel %vm101_vm1, %v5445_v35, %v8201_v49  ;;  %v5612_v53 = vpack.i.bf16 %v7563_v43, %v7486_v62  ;;  %v8231_v50 = vunpack.i.h.bf16 %v7542_v4 }
 0x6a2   :  { %5648 = vrot.lane.b32.xlu1 %v5647_v8, %s5761_s16  ;;  %5588 = vrot.lane.b32.xlu0 %v5587_v30, %s5762_s17  ;;  %v5450_v8 = vunpack.i.l.bf16 %v7523_v32  ;;  %v5672_v30 = vpack.i.bf16 %v3828_v10, %v3827_v6 }
 0x6a3   :  { %v7554_v40 = vpop.permute.xlu1 %5473 }
 0x6a4   :  { %v7558_v16 = vpop.permute.xlu0 %5463  ;;  %v8200_v14 = vunpack.i.l.bf16 %v7554_v40  ;;  %v2927_v26 = vsel %vm122_vm0, %v5421_v58, %v5450_v8 }
 0x6a5   :  { %v5677_v10 = vpack.i.bf16 %v5450_v8, %v2927_v26 }
 0x6a6   :  { %5663 = vrot.lane.b32.xlu1 %v5662_v46, %s5761_s16  ;;  %5603 = vrot.lane.b32.xlu0 %v7556_v22, %s5759_s0  ;;  %v7590_v6 = vsel %vm213_vm2, %v5366_v51, %v8200_v14  ;;  %v5460_v51 = vunpack.i.l.bf16 %v7540_v28  ;;  %v8206_v14 = vunpack.i.h.bf16 %v7554_v40 }
 0x6a7   :  { %v5479_v5 = vpop.permute.xlu1 %5478 }
 0x6a8   :  { %v7576_v54 = vpop.permute.xlu0 %5468  ;;  %v5481_v13 = vunpack.i.h.bf16 %v5479_v5  ;;  %v5480_v21 = vunpack.i.l.bf16 %v5479_v5 }
 0x6a9   :  { %v8203_v0 = vunpack.i.l.bf16 %v7576_v54  ;;  %v8205_v58 = vunpack.i.h.bf16 %v7576_v54 }
 0x6aa   :  { %5673 = vrot.lane.b32.xlu1 %v5672_v30, %s5762_s17  ;;  %5613 = vrot.lane.b32.xlu0 %v5612_v53, %s5759_s0  ;;  %v3099_v26 = vsel %vm213_vm2, %v5480_v21, %v5481_v13  ;;  %v5426_v13 = vunpack.i.h.bf16 %v7500_v18 }
 0x6ab   :  { %v7598_v52 = vsel %vm213_vm2, %v5361_v11, %v8203_v0  ;;  %v5489_v31 = vpop.permute.xlu1 %5488  ;;  %v5466_v11 = vunpack.i.h.bf16 %v7558_v16  ;;  %v3098_v53 = vsel %vm213_vm2, %v8205_v58, %v5480_v21  ;;  %v3825_v21 = vsel %vm101_vm1, %v8231_v50, %v5460_v51 }
 0x6ac   :  { %v5484_v36 = vpop.permute.xlu0 %5483  ;;  %v5490_v30 = vunpack.i.l.bf16 %v5489_v31  ;;  %v5491_v0 = vunpack.i.h.bf16 %v5489_v31  ;;  %v8232_v31 = vunpack.i.h.bf16 %v7508_v29  ;;  %v8234_v50 = vunpack.i.h.bf16 %v7390_v47 }
 0x6ad   :  { %v5486_v49 = vunpack.i.h.bf16 %v5484_v36  ;;  %v5485_v37 = vunpack.i.l.bf16 %v5484_v36 }
 0x6ae   :  { %v7610_v8 = vsel %vm528_vm4, %v5371_v38, %v5490_v30  ;;  %5678 = vrot.lane.b32.xlu1 %v5677_v10, %s5761_s16  ;;  %5623 = vrot.lane.b32.xlu0 %v5662_v46, %s5759_s0  ;;  %v8207_v38 = vunpack.i.l.bf16 %v7558_v16 }
 0x6af   :  { %v3104_v36 = vsel %vm213_vm2, %v8206_v14, %v5485_v37  ;;  %v5499_v45 = vpop.permute.xlu1 %5498  ;;  %v3105_v57 = vsel %vm213_vm2, %v5485_v37, %v5486_v49  ;;  %v5425_v14 = vunpack.i.l.bf16 %v7500_v18  ;;  %v3003_v37 = vsel %vm122_vm0, %v5435_v48, %v8232_v31  ;;  %v4254_v18 = vld [vmem:[%s8177_s9 + $0x8] sm:$0xff] }
 0x6b0   :  { %v4521_v35 = vpack.c.bf16 %v3104_v36, %v3098_v53  ;;  %v5494_v10 = vpop.permute.xlu0 %5493  ;;  %v5500_v5 = vunpack.i.l.bf16 %v5499_v45  ;;  %v4519_v46 = vpack.c.bf16 %v3105_v57, %v3099_v26  ;;  %v8233_v49 = vunpack.i.h.bf16 %v7471_v19 }
 0x6b1   :  { %v5496_v58 = vunpack.i.h.bf16 %v5494_v10  ;;  %v5495_v9 = vunpack.i.l.bf16 %v5494_v10  ;;  %v5501_v57 = vunpack.i.h.bf16 %v5499_v45  ;;  %v3831_v47 = vsel %vm101_vm1, %v8207_v38, %v5466_v11 }
 0x6b2   :  { %v7634_v53 = vsel %vm122_vm0, %v8233_v49, %v5435_v48  ;;  %v7637_v26 = vsel %vm528_vm4, %v5491_v0, %v5500_v5  ;;  %4520 = vmatprep.subr.bf16.mxu1 %v4519_v46  ;;  %5688 = vrot.lane.b32.xlu1 %v5687_v2, %s5762_s17  ;;  %v7648_v48 = vsel %vm528_vm4, %v5490_v30, %v5491_v0  ;;  %v8235_v30 = vunpack.i.h.bf16 %v7344_v7 }
 0x6b3   :  { %v7643_v36 = vsel %vm528_vm4, %v8234_v50, %v5495_v9  ;;  %5633 = vrot.lane.b32.xlu0 %v7556_v22, %s5761_s16  ;;  %4522 = vmatpush1.bf16.msra.mxu1 %v4521_v35  ;;  %v5514_v19 = vpop.permute.xlu1 %5513  ;;  %v7651_v10 = vsel %vm528_vm4, %v5495_v9, %v5496_v58  ;;  %v5702_v46 = vpack.i.bf16 %v5460_v51, %v3825_v21 }
 0x6b4   :  { %v5504_v45 = vpop.permute.xlu0 %5503  ;;  %v5642_v35 = vpack.i.bf16 %v3003_v37, %v7634_v53  ;;  %v2931_v9 = vsel %vm122_vm0, %v8235_v30, %v5425_v14  ;;  %v2932_v51 = vsel %vm122_vm0, %v5425_v14, %v5426_v13  ;;  %v5516_v21 = vunpack.i.h.bf16 %v5514_v19 }
 0x6b5   :  { %v5506_v31 = vunpack.i.h.bf16 %v5504_v45  ;;  %v5505_v0 = vunpack.i.l.bf16 %v5504_v45  ;;  %v5515_v49 = vunpack.i.l.bf16 %v5514_v19  ;;  %v5712_v50 = vpack.i.bf16 %v5466_v11, %v3831_v47 }
 0x6b6   :  { %5703 = vrot.lane.b32.xlu1 %v5702_v46, %s5762_s17  ;;  %v7673_v45 = vsel %vm528_vm4, %v5500_v5, %v5501_v57  ;;  %v5440_v5 = vunpack.i.l.bf16 %v7528_v59 }
 0x6b7   :  { %v7669_v2 = vsel %vm528_vm4, %v5496_v58, %v5505_v0  ;;  %5643 = vrot.lane.b32.xlu0 %v5642_v35, %s5759_s0  ;;  %v5524_v22 = vpop.permute.xlu1 %5523  ;;  %v7676_v7 = vsel %vm528_vm4, %v5505_v0, %v5506_v31  ;;  %v5652_v58 = vpack.i.bf16 %v2932_v51, %v2931_v9  ;;  %v5351_v35 = vunpack.i.h.bf16 %v7352_v25 }
 0x6b8   :  { %v5509_v30 = vpop.permute.xlu0 %5508  ;;  %v5526_v19 = vunpack.i.h.bf16 %v5524_v22  ;;  %v5525_v38 = vunpack.i.l.bf16 %v5524_v22  ;;  %v7686_v57 = vsel %vm866_vm5, %v5515_v49, %v5516_v21  ;;  %v8236_v22 = vunpack.i.h.bf16 %v7417_v61 }
 0x6b9   :  { %v5511_v46 = vunpack.i.h.bf16 %v5509_v30  ;;  %v5510_v47 = vunpack.i.l.bf16 %v5509_v30  ;;  %v8238_v51 = vunpack.i.h.bf16 %v7496_v42  ;;  %v8239_v61 = vunpack.i.l.bf16 %v7352_v25 }
 0x6ba   :  { %5713 = vrot.lane.b32.xlu1 %v5712_v50, %s5762_s17  ;;  %v7689_v31 = vsel %vm866_vm5, %v5525_v38, %v5526_v19  ;;  %v3822_v14 = vsel %vm101_vm1, %v5351_v35, %v5440_v5 }
 0x6bb   :  { %v7694_v0 = vsel %vm866_vm5, %v8236_v22, %v5510_v47  ;;  %v7697_v9 = vsel %vm866_vm5, %v5511_v46, %v5515_v49  ;;  %5653 = vrot.lane.b32.xlu0 %v5652_v58, %s5761_s16  ;;  %v5722_v21 = vpack.i.bf16 %v8238_v51, %v7515_v39  ;;  %v3821_v22 = vsel %vm101_vm1, %v8239_v61, %v5351_v35 }
 0x6bc   :  { %8237 = vst [vmem:[#allocation5_spill] sm:$0xff] %v7694_v0  ;;  %v5519_v50 = vpop.permute.xlu0 %5518  ;;  %v5451_v49 = vunpack.i.h.bf16 %v7523_v32  ;;  %v8240_v58 = vunpack.i.h.bf16 %v7437_v15  ;;  %v7722_v25 = vsel %vm866_vm5, %v5510_v47, %v5511_v46  ;;  %v8241_v32 = vunpack.i.h.bf16 %v7508_v29  ;;  %v3835_v29 = vld [vmem:[%s8176_s8 + $0x18] sm:$0xff] }
 0x6bd   :  { %v5521_v30 = vunpack.i.h.bf16 %v5519_v50  ;;  %v5520_v19 = vunpack.i.l.bf16 %v5519_v50  ;;  %v5455_v46 = vunpack.i.l.bf16 %v7542_v4  ;;  %v8243_v50 = vpack.i.bf16 %v7486_v62, %v7325_v1 }
 0x6be   :  { %5723 = vrot.lane.b32.xlu1 %v5722_v21, %s5762_s17  ;;  %v5732_v35 = vpack.i.bf16 %v8241_v32, %v3003_v37  ;;  %v5667_v21 = vpack.i.bf16 %v3822_v14, %v3821_v22  ;;  %v8242_v14 = vunpack.i.h.bf16 %v7542_v4  ;;  %v8244_v61 = vunpack.i.l.bf16 %v7558_v16 }
 0x6bf   :  { %v7714_v59 = vsel %vm866_vm5, %v8240_v58, %v5520_v19  ;;  %v7717_v42 = vsel %vm866_vm5, %v5521_v30, %v5525_v38  ;;  %5658 = vrot.lane.b32.xlu0 %v7498_v34, %s5761_s16  ;;  %v7725_v39 = vsel %vm866_vm5, %v5520_v19, %v5521_v30  ;;  %v2933_v34 = vsel %vm122_vm0, %v5426_v13, %v5451_v49 }
 0x6c0   :  { %v5682_v37 = vpack.i.bf16 %v5451_v49, %v2933_v34  ;;  %v3823_v13 = vsel %vm101_vm1, %v5440_v5, %v5455_v46  ;;  %v3824_v47 = vsel %vm101_vm1, %v5455_v46, %v8242_v14  ;;  %v5461_v30 = vunpack.i.h.bf16 %v7540_v28 }
 0x6c1   :  { %v5697_v19 = vpack.i.bf16 %v3824_v47, %v3823_v13  ;;  %v8245_v4 = vunpack.i.h.bf16 %v7506_v20  ;;  %v5717_v62 = vpack.i.bf16 %v7518_v33, %v7481_v60  ;;  %v5727_v46 = vpack.i.bf16 %v7634_v53, %v7563_v43 }
 0x6c2   :  { %5733 = vrot.lane.b32.xlu1 %v5732_v35, %s5762_s17  ;;  %v3830_v22 = vsel %vm101_vm1, %v5461_v30, %v8244_v61 }
 0x6c3   :  { %5668 = vrot.lane.b32.xlu0 %v5667_v21, %s5762_s17  ;;  %v3829_v5 = vsel %vm101_vm1, %v8245_v4, %v5461_v30  ;;  %v8246_v4 = vunpack.i.h.bf16 %v7576_v54 }
 0x6c4   :  { %v5707_v32 = vpack.i.bf16 %v3830_v22, %v3829_v5  ;;  %v8247_v5 = vunpack.i.l.bf16 %v7576_v54  ;;  %v8249_v54 = vunpack.i.l.bf16 %v7554_v40 }
 0x6c6   :  { %3846 = vrot.lane.b32.xlu1 %v3835_v29, %s5766_s30 }
 0x6c7   :  { %5683 = vrot.lane.b32.xlu0 %v5682_v37, %s5761_s16 }
 0x6ca   :  { %4262 = vperm.xlu1 %4825, %v4254_v18   ;;  %v5529_v49 = vpop.permute.xlu1 %5528 }
 0x6cb   :  { %5693 = vrot.lane.b32.xlu0 %v8243_v50, %s5762_s17  ;;  %v5531_v16 = vunpack.i.h.bf16 %v5529_v49  ;;  %v5530_v20 = vunpack.i.l.bf16 %v5529_v49  ;;  %v3834_v49 = vld [vmem:[%s8176_s8 + $0x10] sm:$0xff] }
 0x6cf   :  { %5698 = vrot.lane.b32.xlu0 %v5697_v19, %s5762_s17  ;;  %v7765_v58 = vpop.permute.xlu0 %5543 }
 0x6d0   :  { %v5546_v1 = vunpack.i.h.bf16 %v7765_v58  ;;  %v5545_v28 = vunpack.i.l.bf16 %v7765_v58 }
 0x6d2   :  { %v5534_v35 = vpop.permute.xlu1 %5533  ;;  %v3112_v18 = vsel %vm213_vm2, %v5531_v16, %v5545_v28  ;;  %v3113_v60 = vsel %vm213_vm2, %v5545_v28, %v5546_v1 }
 0x6d3   :  { %5708 = vrot.lane.b32.xlu0 %v5707_v32, %s5762_s17  ;;  %v7772_v21 = vpop.permute.xlu0 %5553  ;;  %v5536_v13 = vunpack.i.h.bf16 %v5534_v35  ;;  %v5535_v53 = vunpack.i.l.bf16 %v5534_v35  ;;  %v3097_v32 = vsel %vm213_vm2, %v8247_v5, %v8246_v4 }
 0x6d4   :  { %v5556_v33 = vunpack.i.h.bf16 %v7772_v21  ;;  %v5555_v14 = vunpack.i.l.bf16 %v7772_v21 }
 0x6d6   :  { %v7774_v34 = vpop.permute.xlu1 %5538  ;;  %v3124_v28 = vsel %vm213_vm2, %v5536_v13, %v5555_v14  ;;  %v3125_v16 = vsel %vm213_vm2, %v5555_v14, %v5556_v33  ;;  %v8250_v14 = vpack.c.bf16 %v7590_v6, %v7598_v52 }
 0x6d7   :  { %v5541_v29 = vunpack.i.h.bf16 %v7774_v34  ;;  %v5540_v37 = vunpack.i.l.bf16 %v7774_v34  ;;  %5718 = vrot.lane.b32.xlu0 %v5717_v62, %s5762_s17  ;;  %v7838_v6 = vpop.permute.xlu0 %5563 }
 0x6d8   :  { %v5565_v51 = vunpack.i.l.bf16 %v7838_v6 }
 0x6d9   :  { %v3106_v47 = vsel %vm213_vm2, %v5530_v20, %v5540_v37  ;;  %v3107_v50 = vsel %vm213_vm2, %v5540_v37, %v5541_v29 }
 0x6da   :  { %v4501_v30 = vpack.c.bf16 %v3112_v18, %v3106_v47  ;;  %v7791_v19 = vpop.permute.xlu1 %5548  ;;  %v4499_v43 = vpack.c.bf16 %v3113_v60, %v3107_v50  ;;  %v4253_v60 = vld [vmem:[%s8177_s9] sm:$0xff] }
 0x6db   :  { %v5551_v61 = vunpack.i.h.bf16 %v7791_v19  ;;  %v5550_v22 = vunpack.i.l.bf16 %v7791_v19  ;;  %5728 = vrot.lane.b32.xlu0 %v5727_v46, %s5762_s17  ;;  %v8248_v46 = vunpack.i.h.bf16 %v7554_v40 }
 0x6dc   :  { %4500 = vmatprep.subr.bf16.mxu0 %v4499_v43 }
 0x6dd   :  { %v3118_v35 = vsel %vm213_vm2, %v5535_v53, %v5550_v22  ;;  %4502 = vmatpush1.bf16.msra.mxu0 %v4501_v30  ;;  %v3119_v62 = vsel %vm213_vm2, %v5550_v22, %v5551_v61  ;;  %v3103_v18 = vsel %vm213_vm2, %v8249_v54, %v8248_v46  ;;  %v7840_v53 = vpop.permute.xlu0 %5573 }
 0x6de   :  { %v4505_v20 = vpack.c.bf16 %v3124_v28, %v3118_v35  ;;  %v4503_v37 = vpack.c.bf16 %v3125_v16, %v3119_v62  ;;  %v4507_v13 = vpack.c.bf16 %v3103_v18, %v3097_v32  ;;  %v7827_v40 = vpop.permute.xlu1 %5558 }
 0x6df   :  { %3844 = vrot.lane.b32.xlu0 %v3834_v49, %s5766_s30  ;;  %v5560_v34 = vunpack.i.l.bf16 %v7827_v40 }
 0x6e0   :  { %4504 = vmatprep.subr.bf16.mxu0 %v4503_v37 }
 0x6e1   :  { %4506 = vmatpush1.bf16.msra.mxu0 %v4505_v20  ;;  %v7844_v49 = vpop.permute.xlu0 %5583 }
 0x6e2   :  { %4508 = vmatprep.subr.bf16.mxu0 %v4507_v13  ;;  %v7830_v47 = vpop.permute.xlu1 %5568 }
 0x6e3   :  { %4257 = vperm.xlu0 %4826, %v4253_v60  }
 0x6e4   :  { %4333 = vmatmul.mubr.msk.f32.vlgmr.msra.gmra.mrb[12].mxu0 %vm1562_vm6, %v7286_v63 }
 0x6e5   :  { %4510 = vmatpush1.bf16.msra.mxu0 %v8250_v14  ;;  %3240 = vmatprep.mubr.f32.mxu0 %v8227_v55 }
 0x6e6   :  { %v7832_v50 = vpop.permute.xlu1 %5578 }
 0x6e8   :  { %4334 = vmatmul.mubr.msk.f32.gmra.mrb[14].mxu0 %vm1562_vm6, %v7240_v44 }
 0x6e9   :  { %3311 = vmatprep.mubr.f32.mxu0 %v8227_v55 }
 0x6ea   :  { %v7834_v30 = vpop.permute.xlu1 %5593 }
 0x6ff   :  { %v5599_v19 = vpop.permute.xlu1 %5598 }
 0x700   :  { %v5601_v28 = vunpack.i.h.bf16 %v5599_v19  ;;  %v5600_v35 = vunpack.i.l.bf16 %v5599_v19 }
 0x702   :  { %v3108_v18 = vsel %vm213_vm2, %v5541_v29, %v5600_v35  ;;  %v3109_v60 = vsel %vm213_vm2, %v5600_v35, %v5601_v28 }
 0x703   :  { %v7836_v43 = vpop.permute.xlu1 %5608 }
 0x704   :  { %v8209_v46 = vunpack.i.h.bf16 %v7836_v43  ;;  %v5610_v54 = vunpack.i.l.bf16 %v7836_v43 }
 0x706   :  { %v3121_v35 = vsel %vm213_vm2, %v5610_v54, %v8209_v46  ;;  %v5576_v46 = vunpack.i.h.bf16 %v7840_v53 }
 0x708   :  { %v5619_v52 = vpop.permute.xlu1 %5618 }
 0x70c   :  { %v7842_v22 = vpop.permute.xlu1 %5628 }
 0x710   :  { %v7846_v4 = vpop.permute.xlu1 %5638 }
 0x714   :  { %v7848_v5 = vpop.permute.xlu1 %5648  ;;  %v7850_v32 = vpop.permute.xlu0 %5588 }
 0x718   :  { %v7852_v62 = vpop.permute.xlu1 %5663  ;;  %v5604_v16 = vpop.permute.xlu0 %5603 }
 0x719   :  { %v5606_v20 = vunpack.i.h.bf16 %v5604_v16  ;;  %v5605_v37 = vunpack.i.l.bf16 %v5604_v16 }
 0x71b   :  { %v3114_v13 = vsel %vm213_vm2, %v5546_v1, %v5605_v37  ;;  %v3115_v14 = vsel %vm213_vm2, %v5605_v37, %v5606_v20  ;;  %v3120_v1 = vsel %vm213_vm2, %v5551_v61, %v5610_v54  ;;  %v5621_v37 = vunpack.i.h.bf16 %v5619_v52 }
 0x71c   :  { %v4513_v19 = vpack.c.bf16 %v3114_v13, %v3108_v18  ;;  %v7864_v15 = vpop.permute.xlu1 %5673  ;;  %v7866_v16 = vpop.permute.xlu0 %5613  ;;  %v4511_v38 = vpack.c.bf16 %v3115_v14, %v3109_v60  ;;  %v5620_v18 = vunpack.i.l.bf16 %v5619_v52  ;;  %v8251_v52 = vunpack.i.h.bf16 %v7827_v40 }
 0x71d   :  { %v8210_v29 = vunpack.i.h.bf16 %v7866_v16  ;;  %v5615_v58 = vunpack.i.l.bf16 %v7866_v16  ;;  %v5575_v14 = vunpack.i.l.bf16 %v7840_v53 }
 0x71e   :  { %4512 = vmatprep.subr.bf16.mxu0 %v4511_v38  ;;  %v3498_v21 = vsel %vm528_vm4, %v5560_v34, %v8251_v52 }
 0x71f   :  { %v3126_v13 = vsel %vm213_vm2, %v5556_v33, %v5615_v58  ;;  %4514 = vmatpush1.bf16.msra.mxu0 %v4513_v19  ;;  %v3127_v60 = vsel %vm213_vm2, %v5615_v58, %v8210_v29  ;;  %v5571_v33 = vunpack.i.h.bf16 %v7830_v47  ;;  %v5570_v19 = vunpack.i.l.bf16 %v7830_v47 }
 0x720   :  { %v4517_v11 = vpack.c.bf16 %v3126_v13, %v3120_v1  ;;  %v5624_v61 = vpop.permute.xlu0 %5623  ;;  %v4515_v38 = vpack.c.bf16 %v3127_v60, %v3121_v35  ;;  %v5580_v58 = vunpack.i.l.bf16 %v7832_v50  ;;  %v7891_v29 = vpop.permute.xlu1 %5678  ;;  %v3110_v1 = vsel %vm213_vm2, %v5601_v28, %v5620_v18 }
 0x721   :  { %v5626_v0 = vunpack.i.h.bf16 %v5624_v61  ;;  %v5625_v54 = vunpack.i.l.bf16 %v5624_v61  ;;  %v3111_v13 = vsel %vm213_vm2, %v5620_v18, %v5621_v37  ;;  %v8252_v47 = vpack.c.bf16 %v7423_v12, %v7433_v3 }
 0x722   :  { %4516 = vmatprep.subr.bf16.mxu0 %v4515_v38  ;;  %v5586_v38 = vunpack.i.h.bf16 %v7844_v49  ;;  %v3503_v37 = vsel %vm528_vm4, %v5571_v33, %v5565_v51  ;;  %v3497_v12 = vsel %vm528_vm4, %v5570_v19, %v5560_v34  ;;  %v8254_v18 = vpack.c.bf16 %v7407_v17, %v7426_v23 }
 0x723   :  { %v3116_v35 = vsel %vm213_vm2, %v5606_v20, %v5625_v54  ;;  %4518 = vmatpush1.bf16.msra.mxu0 %v4517_v11  ;;  %v3117_v60 = vsel %vm213_vm2, %v5625_v54, %v5626_v0  ;;  %v8253_v11 = vunpack.i.h.bf16 %v7838_v6  ;;  %v5585_v0 = vunpack.i.l.bf16 %v7844_v49 }
 0x724   :  { %v4525_v61 = vpack.c.bf16 %v3116_v35, %v3110_v1  ;;  %4532 = vmatprep.subr.bf16.mxu0 %v8252_v47  ;;  %v4523_v52 = vpack.c.bf16 %v3117_v60, %v3111_v13  ;;  %v8255_v54 = vunpack.i.h.bf16 %v7832_v50  ;;  %v3515_v49 = vsel %vm528_vm4, %v5586_v38, %v5580_v58  ;;  %v7922_v33 = vpop.permute.xlu1 %5688 }
 0x725   :  { %v7903_v28 = vpop.permute.xlu0 %5633  ;;  %v3504_v20 = vsel %vm528_vm4, %v5565_v51, %v8253_v11  ;;  %v5641_v51 = vunpack.i.h.bf16 %v7846_v4  ;;  %v5640_v34 = vunpack.i.l.bf16 %v7846_v4  ;;  %v3510_v17 = vsel %vm528_vm4, %v5575_v14, %v5576_v46 }
 0x726   :  { %4335 = vmatmul.mubr.msk.f32.vlgmr.msra.gmra.mrb[16].mxu0 %vm1562_vm6, %v7286_v63  ;;  %4524 = vmatprep.subr.bf16.mxu1 %v4523_v52  ;;  %v4535_v3 = vpack.c.bf16 %v3504_v20, %v3498_v21  ;;  %v3516_v1 = vsel %vm528_vm4, %v5580_v58, %v8255_v54  ;;  %v4537_v21 = vpack.c.bf16 %v3503_v37, %v3497_v12  ;;  %v5636_v60 = vunpack.i.h.bf16 %v7903_v28 }
 0x727   :  { %4526 = vmatpush1.bf16.msra.mxu1 %v4525_v61  ;;  %4534 = vmatpush1.bf16.msra.mxu0 %v8254_v18  ;;  %v3509_v23 = vsel %vm528_vm4, %v5585_v0, %v5575_v14  ;;  %v4539_v58 = vpack.c.bf16 %v3516_v1, %v3510_v17  ;;  %v5635_v61 = vunpack.i.l.bf16 %v7903_v28  ;;  %v8256_v47 = vunpack.i.h.bf16 %v7836_v43 }
 0x728   :  { %4536 = vmatprep.subr.bf16.mxu0 %v4535_v3  ;;  %3317 = vmatprep.mubr.f32.mxu0 %v8227_v55  ;;  %v4541_v4 = vpack.c.bf16 %v3515_v49, %v3509_v23  ;;  %v8257_v14 = vunpack.i.h.bf16 %v7866_v16  ;;  %v3123_v11 = vsel %vm213_vm2, %v5640_v34, %v5641_v51  ;;  %v5631_v0 = vunpack.i.h.bf16 %v7842_v22  ;;  %v7946_v43 = vpop.permute.xlu1 %5703 }
 0x729   :  { %v5644_v19 = vpop.permute.xlu0 %5643  ;;  %v3122_v52 = vsel %vm213_vm2, %v8256_v47, %v5640_v34  ;;  %v5630_v28 = vunpack.i.l.bf16 %v7842_v22  ;;  %v5666_v18 = vunpack.i.h.bf16 %v7852_v62  ;;  %v5665_v16 = vunpack.i.l.bf16 %v7852_v62 }
 0x72a   :  { %v5646_v35 = vunpack.i.h.bf16 %v5644_v19  ;;  %v5645_v13 = vunpack.i.l.bf16 %v5644_v19  ;;  %4336 = vmatmul.mubr.msk.f32.gmra.mrb[18].mxu0 %vm1562_vm6, %v7240_v44  ;;  %v3506_v54 = vsel %vm528_vm4, %v5635_v61, %v5636_v60  ;;  %v8258_v22 = vpack.c.bf16 %v7651_v10, %v7648_v48 }
 0x72b   :  { %4538 = vmatpush1.bf16.msra.mxu0 %v4537_v21  ;;  %3625 = vmatprep.mubr.f32.mxu0 %v8227_v55  ;;  %v5651_v51 = vunpack.i.h.bf16 %v7848_v5  ;;  %v8259_v21 = vpack.c.bf16 %v7676_v7, %v7673_v45  ;;  %v3500_v62 = vsel %vm528_vm4, %v5630_v28, %v5631_v0  ;;  %v5650_v19 = vunpack.i.l.bf16 %v7848_v5 }
 0x72c   :  { %v3128_v38 = vsel %vm213_vm2, %v8257_v14, %v5645_v13  ;;  %4540 = vmatprep.subr.bf16.mxu0 %v4539_v58  ;;  %v3129_v20 = vsel %vm213_vm2, %v5645_v13, %v5646_v35  ;;  %v7965_v35 = vld [vmem:[%s8176_s8] sm:$0xff]  ;;  %v4547_v48 = vpack.c.bf16 %v3506_v54, %v3500_v62  ;;  %v3507_v10 = vsel %vm528_vm4, %v5636_v60, %v5665_v16  ;;  %v7979_v58 = vpop.permute.xlu1 %5713 }
 0x72d   :  { %v4529_v37 = vpack.c.bf16 %v3128_v38, %v3122_v52  ;;  %v7944_v12 = vpop.permute.xlu0 %5653  ;;  %v4527_v3 = vpack.c.bf16 %v3129_v20, %v3123_v11  ;;  %v8260_v45 = vunpack.i.h.bf16 %v7838_v6  ;;  %v8261_v5 = vpack.c.bf16 %v7643_v36, %v7610_v8  ;;  %v7999_v38 = vld [vmem:[%s8176_s8 + $0x10] sm:$0xff] }
 0x72e   :  { %v5656_v1 = vunpack.i.h.bf16 %v7944_v12  ;;  %v5655_v49 = vunpack.i.l.bf16 %v7944_v12  ;;  %v3508_v13 = vsel %vm528_vm4, %v5665_v16, %v5666_v18  ;;  %v8262_v60 = vpack.c.bf16 %v7669_v2, %v7637_v26 }
 0x72f   :  { %4528 = vmatprep.subr.bf16.mxu1 %v4527_v3  ;;  %4542 = vmatpush1.bf16.msra.mxu0 %v4541_v4  ;;  %v3505_v7 = vsel %vm528_vm4, %v8260_v45, %v5635_v61  ;;  %v5676_v26 = vunpack.i.h.bf16 %v7864_v15  ;;  %v3512_v14 = vsel %vm528_vm4, %v5650_v19, %v5651_v51  ;;  %v5680_v11 = vunpack.i.l.bf16 %v7891_v29 }
 0x730   :  { %4530 = vmatpush1.bf16.msra.mxu1 %v4529_v37  ;;  %4544 = vmatprep.subr.bf16.mxu0 %v8258_v22  ;;  %v3518_v61 = vsel %vm528_vm4, %v5655_v49, %v5656_v1  ;;  %v8264_v20 = vunpack.i.h.bf16 %v7832_v50  ;;  %v5681_v37 = vunpack.i.h.bf16 %v7891_v29  ;;  %v3511_v18 = vsel %vm528_vm4, %v5576_v46, %v5650_v19  ;;  %v8018_v54 = vpop.permute.xlu1 %5723 }
 0x731   :  { %v5659_v34 = vpop.permute.xlu0 %5658  ;;  %4556 = vmatprep.subr.bf16.mxu1 %v8259_v21  ;;  %v3513_v22 = vsel %vm528_vm4, %v5651_v51, %v5680_v11  ;;  %v5715_v53 = vunpack.i.l.bf16 %v7979_v58  ;;  %v5706_v51 = vunpack.i.h.bf16 %v7946_v43  ;;  %v8265_v45 = vpack.c.bf16 %v7452_v56, %v7447_v41 }
 0x732   :  { %v5661_v17 = vunpack.i.h.bf16 %v5659_v34  ;;  %v5660_v23 = vunpack.i.l.bf16 %v5659_v34  ;;  %4339 = vmatmul.mubr.msk.f32.vlgmr.msra.gmra.mrb[12].mxu0 %vm1562_vm6, %v7965_v35  ;;  %v5716_v34 = vunpack.i.h.bf16 %v7979_v58  ;;  %v3514_v62 = vsel %vm528_vm4, %v5680_v11, %v5681_v37 }
 0x733   :  { %4337 = vmatmul.mubr.msk.f32.vlgmr.msra.gmra.mrb[16].mxu1 %vm1562_vm6, %v7286_v63  ;;  %4546 = vmatpush1.bf16.msra.mxu0 %v8261_v5  ;;  %v8263_v63 = vunpack.i.h.bf16 %v7827_v40  ;;  %v5675_v40 = vunpack.i.l.bf16 %v7864_v15  ;;  %v5690_v5 = vunpack.i.l.bf16 %v7922_v33  ;;  %v5726_v37 = vunpack.i.h.bf16 %v8018_v54 }
 0x734   :  { %v3501_v4 = vsel %vm528_vm4, %v5631_v0, %v5660_v23  ;;  %4558 = vmatpush1.bf16.msra.mxu1 %v8262_v60  ;;  %4548 = vmatprep.subr.bf16.mxu0 %v4547_v48  ;;  %v3502_v6 = vsel %vm528_vm4, %v5660_v23, %v5661_v17  ;;  %v3517_v0 = vsel %vm528_vm4, %v8264_v20, %v5655_v49  ;;  %v5705_v23 = vunpack.i.l.bf16 %v7946_v43  ;;  %v8051_v56 = vpop.permute.xlu1 %5733 }
 0x735   :  { %v3499_v8 = vsel %vm528_vm4, %v8263_v63, %v5630_v28  ;;  %v4561_v36 = vpack.c.bf16 %v3507_v10, %v3501_v4  ;;  %v7990_v47 = vpop.permute.xlu0 %5668  ;;  %3394 = vmatprep.mubr.f32.mxu1 %v8227_v55  ;;  %v4559_v52 = vpack.c.bf16 %v3508_v13, %v3502_v6  ;;  %3631 = vmatprep.mubr.f32.mxu0 %v8227_v55  ;;  %v5591_v60 = vunpack.i.h.bf16 %v7850_v32 }
 0x736   :  { %v4549_v2 = vpack.c.bf16 %v3505_v7, %v3499_v8  ;;  %4340 = vmatmul.mubr.msk.f32.gmra.mrb[14].mxu0 %vm1562_vm6, %v7999_v38  ;;  %v4551_v28 = vpack.c.bf16 %v3518_v61, %v3512_v14  ;;  %v5671_v12 = vunpack.i.h.bf16 %v7990_v47  ;;  %v5670_v3 = vunpack.i.l.bf16 %v7990_v47 }
 0x737   :  { %4338 = vmatmul.mubr.msk.f32.gmra.mrb[18].mxu1 %vm1562_vm6, %v7240_v44  ;;  %4560 = vmatprep.subr.bf16.mxu1 %v4559_v52  ;;  %v5590_v44 = vunpack.i.l.bf16 %v7850_v32  ;;  %v4553_v16 = vpack.c.bf16 %v3517_v0, %v3511_v18  ;;  %v3953_v46 = vsel %vm866_vm5, %v5675_v40, %v5676_v26  ;;  %v5691_v7 = vunpack.i.h.bf16 %v7922_v33 }
 0x738   :  { %4550 = vmatpush1.bf16.msra.mxu0 %v4549_v2  ;;  %4562 = vmatpush1.bf16.msra.mxu1 %v4561_v36  ;;  %v3947_v17 = vsel %vm866_vm5, %v5670_v3, %v5671_v12  ;;  %v3957_v41 = vsel %vm866_vm5, %v5715_v53, %v5716_v34  ;;  %v8266_v61 = vpack.c.bf16 %v7457_v24, %v7460_v27  ;;  %v5596_v63 = vunpack.i.h.bf16 %v7834_v30 }
 0x739   :  { %v5684_v50 = vpop.permute.xlu0 %5683  ;;  %4552 = vmatprep.subr.bf16.mxu0 %v4551_v28  ;;  %3702 = vmatprep.mubr.f32.mxu0 %v8227_v55  ;;  %v3946_v43 = vsel %vm866_vm5, %v5590_v44, %v5670_v3  ;;  %v4571_v6 = vpack.c.bf16 %v3953_v46, %v3947_v17  ;;  %v3952_v8 = vsel %vm866_vm5, %v5591_v60, %v5675_v40  ;;  %v5595_v14 = vunpack.i.l.bf16 %v7834_v30 }
 0x73a   :  { %v5686_v29 = vunpack.i.h.bf16 %v5684_v50  ;;  %v5685_v49 = vunpack.i.l.bf16 %v5684_v50  ;;  %3779 = vmatprep.mubr.f32.mxu1 %v8227_v55  ;;  %v8267_v52 = vpack.c.bf16 %v7689_v31, %v7686_v57  ;;  %v3951_v2 = vsel %vm866_vm5, %v5705_v23, %v5706_v51 }
 0x73b   :  { %v4573_v24 = vpack.c.bf16 %v3952_v8, %v3946_v43  ;;  %v3959_v27 = vsel %vm866_vm5, %v5690_v5, %v5691_v7  ;;  %v4595_v11 = vpack.c.bf16 %v3957_v41, %v3951_v2  ;;  %v5736_v40 = vunpack.i.h.bf16 %v8051_v56  ;;  %v3847_v43 = vpop.permute.xlu1 %3846 }
 0x73c   :  { %v3519_v21 = vsel %vm528_vm4, %v5656_v1, %v5685_v49  ;;  %4554 = vmatpush1.bf16.msra.mxu0 %v4553_v16  ;;  %v3520_v19 = vsel %vm528_vm4, %v5685_v49, %v5686_v29  ;;  %v5735_v20 = vunpack.i.l.bf16 %v8051_v56  ;;  %v8268_v30 = vpack.c.bf16 %v7717_v42, %v7697_v9 }
 0x73d   :  { %v4565_v48 = vpack.c.bf16 %v3519_v21, %v3513_v22  ;;  %v8035_v10 = vpop.permute.xlu0 %5693  ;;  %4568 = vmatprep.subr.bf16.mxu0 %v8265_v45  ;;  %v4563_v1 = vpack.c.bf16 %v3520_v19, %v3514_v62  ;;  %v3958_v28 = vsel %vm866_vm5, %v5595_v14, %v5690_v5  ;;  %v5725_v3 = vunpack.i.l.bf16 %v8018_v54  ;;  %v8271_v21 = vld [vmem:[#allocation3_spill] sm:$0xff] }
 0x73e   :  { %v5696_v13 = vunpack.i.h.bf16 %v8035_v10  ;;  %v5695_v4 = vunpack.i.l.bf16 %v8035_v10  ;;  %v3969_v9 = vsel %vm866_vm5, %v5735_v20, %v5736_v40  ;;  %v8269_v34 = vpack.c.bf16 %v7725_v39, %v7722_v25  ;;  %v8272_v39 = vld [vmem:[#allocation5_spill] sm:$0xff] }
 0x73f   :  { %4564 = vmatprep.subr.bf16.mxu1 %v4563_v1  ;;  %4341 = vmatmul.mubr.msk.f32.vlgmr.msra.gmra.mrb[16].mxu0 %vm1562_vm6, %v7965_v35  ;;  %v3963_v46 = vsel %vm866_vm5, %v5725_v3, %v5726_v37 }
 0x740   :  { %4566 = vmatpush1.bf16.msra.mxu1 %v4565_v48  ;;  %4570 = vmatpush1.bf16.msra.mxu0 %v8266_v61  ;;  %v3965_v32 = vsel %vm866_vm5, %v5695_v4, %v5696_v13  ;;  %v3964_v0 = vsel %vm866_vm5, %v5596_v63, %v5695_v4  ;;  %v4599_v58 = vpack.c.bf16 %v3969_v9, %v3963_v46 }
 0x741   :  { %v5699_v36 = vpop.permute.xlu0 %5698  ;;  %4572 = vmatprep.subr.bf16.mxu0 %v4571_v6  ;;  %4592 = vmatprep.subr.bf16.mxu1 %v8267_v52  ;;  %v4575_v57 = vpack.c.bf16 %v3965_v32, %v3959_v27 }
 0x742   :  { %3708 = vmatprep.mubr.f32.mxu0 %v8227_v55  ;;  %v5701_v31 = vunpack.i.h.bf16 %v5699_v36  ;;  %v5700_v50 = vunpack.i.l.bf16 %v5699_v36 }
 0x743   :  { %4343 = vmatmul.mubr.msk.f32.vlgmr.msra.gmra.mrb[16].mxu1 %vm1562_vm6, %v7965_v35  ;;  %4342 = vmatmul.mubr.msk.f32.gmra.mrb[18].mxu0 %vm1562_vm6, %v7999_v38  ;;  %v4577_v35 = vpack.c.bf16 %v3964_v0, %v3958_v28 }
 0x744   :  { %4574 = vmatpush1.bf16.msra.mxu0 %v4573_v24  ;;  %4594 = vmatpush1.bf16.msra.mxu1 %v8268_v30  ;;  %v3950_v42 = vsel %vm866_vm5, %v5701_v31, %v5705_v23  ;;  %v8273_v23 = vpack.c.bf16 %v7714_v59, %v8272_v39  ;;  %v3948_v48 = vsel %vm866_vm5, %v5671_v12, %v5700_v50 }
 0x745   :  { %v5709_v18 = vpop.permute.xlu0 %5708  ;;  %4576 = vmatprep.subr.bf16.mxu0 %v4575_v57  ;;  %4596 = vmatprep.subr.bf16.mxu1 %v4595_v11 }
 0x746   :  { %v5711_v44 = vunpack.i.h.bf16 %v5709_v18  ;;  %v5710_v16 = vunpack.i.l.bf16 %v5709_v18  ;;  %4074 = vmatprep.mubr.f32.mxu0 %v8227_v55  ;;  %3785 = vmatprep.mubr.f32.mxu1 %v8227_v55 }
 0x747   :  { %4344 = vmatmul.mubr.msk.f32.gmra.mrb[18].mxu1 %vm1562_vm6, %v7999_v38  ;;  %v8270_v38 = vld [vmem:[#allocation4_spill] sm:$0xff] }
 0x748   :  { %v3956_v54 = vsel %vm866_vm5, %v5711_v44, %v5715_v53  ;;  %4578 = vmatpush1.bf16.msra.mxu0 %v4577_v35  ;;  %v3955_v29 = vsel %vm866_vm5, %v5710_v16, %v5711_v44  ;;  %4228 = vmatprep.mubr.f32.mxu1 %v8227_v55  ;;  %v3848_v62 = vsel %vm2245_vm7, %v8271_v21, %v8270_v38 }
 0x749   :  { %v4597_v49 = vpack.c.bf16 %v3956_v54, %v3950_v42  ;;  %v5719_v22 = vpop.permute.xlu0 %5718  ;;  %4580 = vmatprep.subr.bf16.mxu0 %v8269_v34  ;;  %v3949_v53 = vsel %vm866_vm5, %v5700_v50, %v5701_v31  ;;  %v3954_v19 = vsel %vm866_vm5, %v5676_v26, %v5710_v16  ;;  %v4263_v8 = vpop.permute.xlu1 %4262 }
 0x74a   :  { %v5721_v17 = vunpack.i.h.bf16 %v5719_v22  ;;  %v5720_v51 = vunpack.i.l.bf16 %v5719_v22  ;;  %v4583_v25 = vpack.c.bf16 %v3955_v29, %v3949_v53  ;;  %v4585_v15 = vpack.c.bf16 %v3954_v19, %v3948_v48 }
 0x74b   :  { %4345 = vmatmul.mubr.msk.f32.vlgmr.msra.gmra.mrb[12].mxu0 %vm1562_vm6, %v3848_v62  ;;  %4598 = vmatpush1.bf16.msra.mxu1 %v4597_v49 }
 0x74c   :  { %4582 = vmatpush1.bf16.msra.mxu0 %v8273_v23  ;;  %4600 = vmatprep.subr.bf16.mxu1 %v4599_v58  ;;  %v3962_v5 = vsel %vm866_vm5, %v5721_v17, %v5725_v3  ;;  %v3960_v4 = vsel %vm866_vm5, %v5691_v7, %v5720_v51  ;;  %v3961_v12 = vsel %vm866_vm5, %v5720_v51, %v5721_v17 }
 0x74d   :  { %v5729_v45 = vpop.permute.xlu0 %5728  ;;  %4584 = vmatprep.subr.bf16.mxu0 %v4583_v25  ;;  %4080 = vmatprep.mubr.f32.mxu0 %v8227_v55 }
 0x74e   :  { %v5731_v26 = vunpack.i.h.bf16 %v5729_v45  ;;  %v5730_v1 = vunpack.i.l.bf16 %v5729_v45 }
 0x750   :  { %v3968_v59 = vsel %vm866_vm5, %v5731_v26, %v5735_v20  ;;  %v3966_v47 = vsel %vm866_vm5, %v5696_v13, %v5730_v1  ;;  %4586 = vmatpush1.bf16.msra.mxu0 %v4585_v15  ;;  %v3967_v60 = vsel %vm866_vm5, %v5730_v1, %v5731_v26 }
 0x751   :  { %v4589_v6 = vpack.c.bf16 %v3966_v47, %v3960_v4  ;;  %v4601_v41 = vpack.c.bf16 %v3968_v59, %v3962_v5  ;;  %v3845_v56 = vpop.permute.xlu0 %3844  ;;  %v4587_v61 = vpack.c.bf16 %v3967_v60, %v3961_v12 }
 0x752   :  { %v3849_v33 = vsel %vm2245_vm7, %v3845_v56, %v3847_v43 }
 0x753   :  { %4346 = vmatmul.mubr.msk.f32.gmra.mrb[14].mxu0 %vm1562_vm6, %v3849_v33  ;;  %4588 = vmatprep.subr.bf16.mxu0 %v4587_v61 }
 0x754   :  { %4602 = vmatpush1.bf16.msra.mxu1 %v4601_v41  ;;  %4590 = vmatpush1.bf16.msra.mxu0 %v4589_v6 }
 0x755   :  { %4151 = vmatprep.mubr.f32.mxu0 %v8227_v55 }
 0x757   :  { %4349 = vmatmul.mubr.msk.f32.vlgmr.msra.gmra.mrb[16].mxu1 %vm1562_vm6, %v3848_v62  ;;  %4347 = vmatmul.mubr.msk.f32.vlgmr.msra.gmra.mrb[16].mxu0 %vm1562_vm6, %v3848_v62 }
 0x758   :  { %4234 = vmatprep.mubr.f32.mxu1 %v8227_v55  ;;  %4157 = vmatprep.mubr.f32.mxu0 %v8227_v55 }
 0x75b   :  { %4350 = vmatmul.mubr.msk.f32.gmra.mrb[18].mxu1 %vm1562_vm6, %v3849_v33  ;;  %4348 = vmatmul.mubr.msk.f32.gmra.mrb[18].mxu0 %vm1562_vm6, %v3849_v33 }
 0x762   :  { %v4258_v10 = vpop.permute.xlu0 %4257 }
 0x81e   :  { %v4076_v7 = vpop.f32.mrb[12].mxu0 }
 0x81f   :  { %v4265_v13 = vadd.f32 %v4258_v10, %v4076_v7  ;;  %v4078_v32 = vpop.f32.mrb[13].mxu0 }
 0x820   :  { %v4266_v63 = vadd.f32 %v4258_v10, %v4078_v32 }
 0x821   :  { %4277 = vst [vmem:[%s8178_s10] sm:$0xff] %v4265_v13 }
 0x822   :  { %4278 = vst [vmem:[%s8178_s10 + $0x8] sm:$0xff] %v4266_v63 }
 0x826   :  { %v4082_v36 = vpop.f32.mrb[14].mxu0 }
 0x827   :  { %v4271_v55 = vadd.f32 %v4263_v8, %v4082_v36  ;;  %v4084_v52 = vpop.f32.mrb[15].mxu0 }
 0x828   :  { %v4272_v2 = vadd.f32 %v4263_v8, %v4084_v52 }
 0x829   :  { %4283 = vst [vmem:[%s8178_s10 + $0x30] sm:$0xff] %v4271_v55 }
 0x82a   :  { %4284 = vst [vmem:[%s8178_s10 + $0x38] sm:$0xff] %v4272_v2  ;;  %v4230_v14 = vpop.f32.mrb[16].mxu1  ;;  %v4153_v24 = vpop.f32.mrb[16].mxu0 }
 0x82b   :  { %v4269_v27 = vadd.f32 %v4258_v10, %v4230_v14  ;;  %v4267_v11 = vadd.f32 %v4258_v10, %v4153_v24  ;;  %v4232_v40 = vpop.f32.mrb[17].mxu1  ;;  %v4155_v20 = vpop.f32.mrb[17].mxu0 }
 0x82c   :  { %v4270_v0 = vadd.f32 %v4258_v10, %v4232_v40  ;;  %v4268_v57 = vadd.f32 %v4258_v10, %v4155_v20 }
 0x82d   :  { %4281 = vst [vmem:[%s8178_s10 + $0x20] sm:$0xff] %v4269_v27  ;;  %4279 = vst [vmem:[%s8178_s10 + $0x10] sm:$0xff] %v4267_v11 }
 0x82e   :  { %4282 = vst [vmem:[%s8178_s10 + $0x28] sm:$0xff] %v4270_v0  ;;  %4280 = vst [vmem:[%s8178_s10 + $0x18] sm:$0xff] %v4268_v57  ;;  %v4236_v31 = vpop.f32.mrb[18].mxu1  ;;  %v4159_v30 = vpop.f32.mrb[18].mxu0 }
 0x82f   :  { %v4275_v28 = vadd.f32 %v4263_v8, %v4236_v31  ;;  %v4273_v37 = vadd.f32 %v4263_v8, %v4159_v30  ;;  %v4238_v3 = vpop.f32.mrb[19].mxu1  ;;  %v4161_v18 = vpop.f32.mrb[19].mxu0 }
 0x830   :  { %v4276_v35 = vadd.f32 %v4263_v8, %v4238_v3  ;;  %v4274_v50 = vadd.f32 %v4263_v8, %v4161_v18 }
 0x831   :  { %4287 = vst [vmem:[%s8178_s10 + $0x50] sm:$0xff] %v4275_v28  ;;  %4285 = vst [vmem:[%s8178_s10 + $0x40] sm:$0xff] %v4273_v37 }
 0x832   :  { %4288 = vst [vmem:[%s8178_s10 + $0x58] sm:$0xff] %v4276_v35  ;;  %4286 = vst [vmem:[%s8178_s10 + $0x48] sm:$0xff] %v4274_v50 }

</bundles_post_ra>
